<compile_context>
chip_gen: v5e
topology: v5e:2x2
jax: 0.10.0
libtpu: 0.0.40
codegen_flags: <defaults>
</compile_context>

<pallas_src>
import functools

import jax
import jax.numpy as jnp
import numpy as np
from jax.experimental import pallas as pl
from jax.experimental.pallas import tpu as pltpu

# Left halo of the flattened-spatial scratch, rounded up to a full lane tile so
# the interior store is lane-aligned.  Only needs to be >= W + 1.
_LANE_HALO = 128


# ----------------------------------------------------------------------------
# Fused kernel: 3 x (conv3x3 -> ReLU -> conv3x3) with residuals, one batch item
# ----------------------------------------------------------------------------
def _recon_kernel(x_ref, w1s_ref, b1s_ref, w2s_ref, b2s_ref, o_ref, xpad_ref,
                  *, H, W):
    """Shapes (F = #folds, CP = channels padded to multiple of 8, HW = H*W):
       x_ref   : (1, CP, HW)        f32   input, spatial on the lane axis
       w1s_ref : (F, HID, 9*CP)     bf16  conv1 weights, im2col layout
       b1s_ref : (F, HID, 1)        f32
       w2s_ref : (F, CP, 9*HID)     bf16  conv2 weights, im2col layout
       b2s_ref : (F, CP, 1)         f32
       o_ref   : (1, CP, HW)        f32
       xpad_ref: (max(HID,CP), _LANE_HALO + HW + W + 1) f32  zero-haloed image
    """
    HW = H * W
    n_folds = w1s_ref.shape[0]

    # Column index of every flattened pixel; masks for taps shifted in W.
    col = jax.lax.broadcasted_iota(jnp.int32, (1, HW), 1) % W
    ok_left = col >= 1            # valid source pixels when dw == -1
    ok_right = col <= W - 2       # valid source pixels when dw == +1

    # Zero the halo scratch once; interiors are rewritten before every read,
    # the halo columns are never written so they stay zero.
    xpad_ref[...] = jnp.zeros(xpad_ref.shape, xpad_ref.dtype)

    def conv3x3(x, w2d, b, relu):
        # x: (Cin, HW) f32, w2d: (Cout, 9*Cin) bf16, b: (Cout, 1) f32.
        cin = x.shape[0]
        xpad_ref[0:cin, _LANE_HALO:_LANE_HALO + HW] = x       # aligned store
        taps = []
        for dh in (-1, 0, 1):
            for dw in (-1, 0, 1):
                off = _LANE_HALO + dh * W + dw                # static offset
                t = xpad_ref[0:cin, off:off + HW]
                if dw == -1:                                  # mask W wrap
                    t = jnp.where(ok_left, t, 0.0)
                elif dw == 1:
                    t = jnp.where(ok_right, t, 0.0)
                taps.append(t)
        patches = jnp.concatenate(taps, axis=0)               # (9*Cin, HW)
        acc = jnp.dot(w2d, patches.astype(jnp.bfloat16),      # one MXU dot
                      preferred_element_type=jnp.float32)     # f32 accumulate
        acc = acc + b                                         # f32 epilogue
        return jnp.maximum(acc, 0.0) if relu else acc

    x0 = x_ref[0]                                             # (CP, HW) f32
    cur = x0
    for f in range(n_folds):                                  # static unroll
        h = conv3x3(cur, w1s_ref[f], b1s_ref[f], relu=True)   # (HID, HW)
        y = conv3x3(h, w2s_ref[f], b2s_ref[f], relu=False)    # (CP, HW)
        cur = (y + x0) if f < n_folds - 1 else y              # residual to x
    o_ref[0] = cur.astype(o_ref.dtype)


# ----------------------------------------------------------------------------
# Wrapper: layout plumbing + pallas_call
# ----------------------------------------------------------------------------
def _pack_params(params, c_in, c_pad, hidden):
    """HWIO conv weights -> fold-stacked im2col slabs (bf16), biases (f32)."""
    w1s, b1s, w2s, b2s = [], [], [], []
    for (w1, b1, w2, b2) in params:
        w1p = jnp.pad(w1, ((0, 0), (0, 0), (0, c_pad - c_in), (0, 0)))
        w1s.append(jnp.transpose(w1p, (3, 0, 1, 2)).reshape(hidden, 9 * c_pad))
        b1s.append(b1.reshape(hidden, 1))
        w2m = jnp.transpose(w2, (3, 0, 1, 2)).reshape(c_in, 9 * hidden)
        w2s.append(jnp.pad(w2m, ((0, c_pad - c_in), (0, 0))))
        b2s.append(jnp.pad(b2.reshape(c_in, 1), ((0, c_pad - c_in), (0, 0))))
    return (jnp.stack(w1s).astype(jnp.bfloat16), jnp.stack(b1s),
            jnp.stack(w2s).astype(jnp.bfloat16), jnp.stack(b2s))


def single_domain_reconstruction(x_nchw, params):
    N, C, H, W = x_nchw.shape
    HW = H * W
    HID = params[0][0].shape[-1]
    CP = max(8, ((C + 7) // 8) * 8)      # channels padded to sublane multiple
    F = len(params)
    assert _LANE_HALO >= W + 1

    x2d = jnp.pad(x_nchw.reshape(N, C, HW), ((0, 0), (0, CP - C), (0, 0)))
    w1s, b1s, w2s, b2s = _pack_params(params, C, CP, HID)

    # TODO(synk): for batch-1 inference on v7x, add a second "parallel" grid
    # axis over H (1-row halo) so the second TensorCore is not idle.
    out = pl.pallas_call(
        functools.partial(_recon_kernel, H=H, W=W),
        out_shape=jax.ShapeDtypeStruct((N, CP, HW), x_nchw.dtype),
        grid=(N,),
        in_specs=[
            pl.BlockSpec((1, CP, HW), lambda n: (n, 0, 0)),
            pl.BlockSpec((F, HID, 9 * CP), lambda n: (0, 0, 0)),
            pl.BlockSpec((F, HID, 1), lambda n: (0, 0, 0)),
            pl.BlockSpec((F, CP, 9 * HID), lambda n: (0, 0, 0)),
            pl.BlockSpec((F, CP, 1), lambda n: (0, 0, 0)),
        ],
        out_specs=pl.BlockSpec((1, CP, HW), lambda n: (n, 0, 0)),
        scratch_shapes=[
            pltpu.VMEM((max(HID, CP), _LANE_HALO + HW + W + 1), jnp.float32)],
        compiler_params=pltpu.CompilerParams(
            dimension_semantics=("parallel",)),
    )(x2d, w1s, b1s, w2s, b2s)
    return out[:, :C, :].reshape(N, C, H, W)


# ----------------------------------------------------------------------------
# Pure-JAX reference (lax.conv, same bf16 operand / f32 accumulate contract)
# ----------------------------------------------------------------------------
def _ref_conv3x3(x, w, b, relu):
    y = jax.lax.conv_general_dilated(
        x.astype(jnp.bfloat16), w.astype(jnp.bfloat16),
        window_strides=(1, 1), padding="SAME",
        dimension_numbers=("NCHW", "HWIO", "NCHW"),
        preferred_element_type=jnp.float32,
    ) + b.reshape(1, -1, 1, 1)
    return jnp.maximum(y, 0.0) if relu else y


def _ref_fold(x, p):
    w1, b1, w2, b2 = p
    return _ref_conv3x3(_ref_conv3x3(x, w1, b1, True), w2, b2, False)


def _ref_model(x, params):
    p1, p2, p3 = params
    x1 = _ref_fold(x, p1) + x
    x2 = _ref_fold(x1, p2) + x
    return _ref_fold(x2, p3)


# ----------------------------------------------------------------------------
# Deterministic parameter init
# ----------------------------------------------------------------------------
def init_params(key, c_in, hidden):
    def fold_params(k):
        k1, k2, k3, k4 = jax.random.split(k, 4)
        w1 = 0.05 * jax.random.normal(k1, (3, 3, c_in, hidden), jnp.float32)
        b1 = 0.01 * jax.random.normal(k2, (hidden,), jnp.float32)
        w2 = 0.05 * jax.random.normal(k3, (3, 3, hidden, c_in), jnp.float32)
        b2 = 0.01 * jax.random.normal(k4, (c_in,), jnp.float32)
        return (w1, b1, w2, b2)
    return tuple(fold_params(k) for k in jax.random.split(key, 3))


if __name__ == "__main__":
    key = jax.random.PRNGKey(0)
    kx, kp = jax.random.split(key)

    N, C, H, W = 2, 4, 16, 16
    HID = 32

    x = jax.random.normal(kx, (N, C, H, W), jnp.float32)   # PyTorch NCHW input
    params = init_params(kp, C, HID)

    recon = jax.jit(single_domain_reconstruction)
    out = recon(x, params)
    jax.block_until_ready(out)

    ref = _ref_model(x, params)
    np.testing.assert_allclose(np.asarray(out), np.asarray(ref),
                               rtol=1e-2, atol=1e-2)
    assert out.shape == (N, C, H, W)

    print("KERNEL_OK")
</pallas_src>

<mosaic_0001>
module attributes {stable_mosaic.version = 11 : i64} {
  func.func @_recon_kernel(%arg0: i32, %arg1: memref<1x8x256xf32, #tpu.memory_space<vmem>>, %arg2: memref<3x32x72xbf16, #tpu.memory_space<vmem>>, %arg3: memref<3x32x1xf32, #tpu.memory_space<vmem>>, %arg4: memref<3x8x288xbf16, #tpu.memory_space<vmem>>, %arg5: memref<3x8x1xf32, #tpu.memory_space<vmem>>, %arg6: memref<1x8x256xf32, #tpu.memory_space<vmem>>, %arg7: memref<32x401xf32, #tpu.memory_space<vmem>>) attributes {dimension_semantics = [#tpu.dimension_semantics<parallel>], iteration_bounds = array<i64: 2>, scalar_prefetch = 0 : i64, scratch_operands = 1 : i64, tpu.core_type = #tpu.core_type<tc>, window_params = [{transform_indices = @transform_0, window_bounds = array<i64: 1, 8, 256>}, {pipeline_mode = #tpu.pipeline_mode<synchronous>, transform_indices = @transform_1, window_bounds = array<i64: 3, 32, 72>}, {pipeline_mode = #tpu.pipeline_mode<synchronous>, transform_indices = @transform_2, window_bounds = array<i64: 3, 32, 1>}, {pipeline_mode = #tpu.pipeline_mode<synchronous>, transform_indices = @transform_3, window_bounds = array<i64: 3, 8, 288>}, {pipeline_mode = #tpu.pipeline_mode<synchronous>, transform_indices = @transform_4, window_bounds = array<i64: 3, 8, 1>}, {transform_indices = @transform_5, window_bounds = array<i64: 1, 8, 256>}]} {
    %0 = tpu.iota {dimensions = array<i32: 1>} : vector<1x256xi32>
    %c16_i32 = arith.constant 16 : i32
    %c0_i32 = arith.constant 0 : i32
    %1 = arith.cmpi eq, %c16_i32, %c0_i32 : i32
    %c1_i32 = arith.constant 1 : i32
    %2 = arith.select %1, %c1_i32, %c16_i32 : i32
    %3 = vector.broadcast %2 : i32 to vector<1x256xi32>
    %4 = arith.remsi %0, %3 : vector<1x256xi32>
    %c0_i32_0 = arith.constant 0 : i32
    %5 = vector.broadcast %c0_i32_0 : i32 to vector<1x256xi32>
    %6 = arith.cmpi ne, %4, %5 : vector<1x256xi32>
    %c0_i32_1 = arith.constant 0 : i32
    %7 = vector.broadcast %c0_i32_1 : i32 to vector<1x256xi32>
    %8 = arith.cmpi slt, %4, %7 : vector<1x256xi32>
    %c0_i32_2 = arith.constant 0 : i32
    %9 = arith.cmpi slt, %2, %c0_i32_2 : i32
    %10 = vector.broadcast %9 : i1 to vector<1x256xi1>
    %11 = vector.broadcast %10 : vector<1x256xi1> to vector<1x256xi1>
    %12 = arith.xori %8, %11 : vector<1x256xi1>
    %13 = arith.andi %12, %6 : vector<1x256xi1>
    %14 = vector.broadcast %2 : i32 to vector<1x256xi32>
    %15 = arith.addi %4, %14 : vector<1x256xi32>
    %16 = arith.select %13, %15, %4 : vector<1x256xi1>, vector<1x256xi32>
    %c1_i32_3 = arith.constant 1 : i32
    %17 = vector.broadcast %c1_i32_3 : i32 to vector<1x256xi32>
    %18 = arith.cmpi sge, %16, %17 : vector<1x256xi32>
    %c14_i32 = arith.constant 14 : i32
    %19 = vector.broadcast %c14_i32 : i32 to vector<1x256xi32>
    %20 = arith.cmpi sle, %16, %19 : vector<1x256xi32>
    %cst = arith.constant 0.000000e+00 : f32
    %21 = vector.broadcast %cst : f32 to vector<32x401xf32>
    %c0 = arith.constant 0 : index
    %c0_4 = arith.constant 0 : index
    %22 = vector.load %arg7[%c0, %c0_4] : memref<32x401xf32, #tpu.memory_space<vmem>>, vector<32x401xf32>
    tpu.vector_store %arg7[%c0, %c0_4], %21 {strides = array<i32>} : memref<32x401xf32, #tpu.memory_space<vmem>>, vector<32x401xf32>,
    %c0_5 = arith.constant 0 : index
    %c0_6 = arith.constant 0 : index
    %c0_7 = arith.constant 0 : index
    %23 = vector.load %arg1[%c0_5, %c0_6, %c0_7] : memref<1x8x256xf32, #tpu.memory_space<vmem>>, vector<1x8x256xf32>
    %24 = vector.shape_cast %23 : vector<1x8x256xf32> to vector<8x256xf32>
    %c0_8 = arith.constant 0 : index
    %c0_9 = arith.constant 0 : index
    %c0_10 = arith.constant 0 : index
    %25 = vector.load %arg2[%c0_8, %c0_9, %c0_10] : memref<3x32x72xbf16, #tpu.memory_space<vmem>>, vector<1x32x72xbf16>
    %26 = vector.shape_cast %25 : vector<1x32x72xbf16> to vector<32x72xbf16>
    %c0_11 = arith.constant 0 : index
    %c0_12 = arith.constant 0 : index
    %c0_13 = arith.constant 0 : index
    %27 = vector.load %arg3[%c0_11, %c0_12, %c0_13] : memref<3x32x1xf32, #tpu.memory_space<vmem>>, vector<1x32x1xf32>
    %28 = vector.shape_cast %27 : vector<1x32x1xf32> to vector<32x1xf32>
    %c0_14 = arith.constant 0 : index
    %c128 = arith.constant 128 : index
    %29 = vector.load %arg7[%c0_14, %c128] : memref<32x401xf32, #tpu.memory_space<vmem>>, vector<8x256xf32>
    tpu.vector_store %arg7[%c0_14, %c128], %24 {strides = array<i32>} : memref<32x401xf32, #tpu.memory_space<vmem>>, vector<8x256xf32>,
    %c0_15 = arith.constant 0 : index
    %c111 = arith.constant 111 : index
    %30 = vector.load %arg7[%c0_15, %c111] : memref<32x401xf32, #tpu.memory_space<vmem>>, vector<8x256xf32>
    %cst_16 = arith.constant 0.000000e+00 : f32
    %31 = vector.shape_cast %18 : vector<1x256xi1> to vector<1x256xi1>
    %32 = vector.broadcast %31 : vector<1x256xi1> to vector<8x256xi1>
    %33 = vector.broadcast %cst_16 : f32 to vector<8x256xf32>
    %34 = arith.select %32, %30, %33 : vector<8x256xi1>, vector<8x256xf32>
    %c0_17 = arith.constant 0 : index
    %c112 = arith.constant 112 : index
    %35 = vector.load %arg7[%c0_17, %c112] : memref<32x401xf32, #tpu.memory_space<vmem>>, vector<8x256xf32>
    %c0_18 = arith.constant 0 : index
    %c113 = arith.constant 113 : index
    %36 = vector.load %arg7[%c0_18, %c113] : memref<32x401xf32, #tpu.memory_space<vmem>>, vector<8x256xf32>
    %cst_19 = arith.constant 0.000000e+00 : f32
    %37 = vector.shape_cast %20 : vector<1x256xi1> to vector<1x256xi1>
    %38 = vector.broadcast %37 : vector<1x256xi1> to vector<8x256xi1>
    %39 = vector.broadcast %cst_19 : f32 to vector<8x256xf32>
    %40 = arith.select %38, %36, %39 : vector<8x256xi1>, vector<8x256xf32>
    %c0_20 = arith.constant 0 : index
    %c127 = arith.constant 127 : index
    %41 = vector.load %arg7[%c0_20, %c127] : memref<32x401xf32, #tpu.memory_space<vmem>>, vector<8x256xf32>
    %cst_21 = arith.constant 0.000000e+00 : f32
    %42 = vector.shape_cast %18 : vector<1x256xi1> to vector<1x256xi1>
    %43 = vector.broadcast %42 : vector<1x256xi1> to vector<8x256xi1>
    %44 = vector.broadcast %cst_21 : f32 to vector<8x256xf32>
    %45 = arith.select %43, %41, %44 : vector<8x256xi1>, vector<8x256xf32>
    %c0_22 = arith.constant 0 : index
    %c128_23 = arith.constant 128 : index
    %46 = vector.load %arg7[%c0_22, %c128_23] : memref<32x401xf32, #tpu.memory_space<vmem>>, vector<8x256xf32>
    %c0_24 = arith.constant 0 : index
    %c129 = arith.constant 129 : index
    %47 = vector.load %arg7[%c0_24, %c129] : memref<32x401xf32, #tpu.memory_space<vmem>>, vector<8x256xf32>
    %cst_25 = arith.constant 0.000000e+00 : f32
    %48 = vector.shape_cast %20 : vector<1x256xi1> to vector<1x256xi1>
    %49 = vector.broadcast %48 : vector<1x256xi1> to vector<8x256xi1>
    %50 = vector.broadcast %cst_25 : f32 to vector<8x256xf32>
    %51 = arith.select %49, %47, %50 : vector<8x256xi1>, vector<8x256xf32>
    %c0_26 = arith.constant 0 : index
    %c143 = arith.constant 143 : index
    %52 = vector.load %arg7[%c0_26, %c143] : memref<32x401xf32, #tpu.memory_space<vmem>>, vector<8x256xf32>
    %cst_27 = arith.constant 0.000000e+00 : f32
    %53 = vector.shape_cast %18 : vector<1x256xi1> to vector<1x256xi1>
    %54 = vector.broadcast %53 : vector<1x256xi1> to vector<8x256xi1>
    %55 = vector.broadcast %cst_27 : f32 to vector<8x256xf32>
    %56 = arith.select %54, %52, %55 : vector<8x256xi1>, vector<8x256xf32>
    %c0_28 = arith.constant 0 : index
    %c144 = arith.constant 144 : index
    %57 = vector.load %arg7[%c0_28, %c144] : memref<32x401xf32, #tpu.memory_space<vmem>>, vector<8x256xf32>
    %c0_29 = arith.constant 0 : index
    %c145 = arith.constant 145 : index
    %58 = vector.load %arg7[%c0_29, %c145] : memref<32x401xf32, #tpu.memory_space<vmem>>, vector<8x256xf32>
    %cst_30 = arith.constant 0.000000e+00 : f32
    %59 = vector.shape_cast %20 : vector<1x256xi1> to vector<1x256xi1>
    %60 = vector.broadcast %59 : vector<1x256xi1> to vector<8x256xi1>
    %61 = vector.broadcast %cst_30 : f32 to vector<8x256xf32>
    %62 = arith.select %60, %58, %61 : vector<8x256xi1>, vector<8x256xf32>
    %63 = tpu.concatenate %34, %35, %40, %45, %46, %51, %56, %57, %62 in 0 : vector<8x256xf32>, vector<8x256xf32>, vector<8x256xf32>, vector<8x256xf32>, vector<8x256xf32>, vector<8x256xf32>, vector<8x256xf32>, vector<8x256xf32>, vector<8x256xf32> -> vector<72x256xf32>
    %64 = arith.truncf %63 : vector<72x256xf32> to vector<72x256xbf16>
    %cst_31 = arith.constant dense<0.000000e+00> : vector<32x256xf32>
    %65 = tpu.matmul %26, %64, %cst_31 {dimension_numbers = #tpu.dot_dimension_numbers<[1], [0], [0], [1], [0, 0, 1, 1], [], []>} : vector<32x72xbf16>, vector<72x256xbf16>, vector<32x256xf32> -> vector<32x256xf32>
    %66 = vector.broadcast %28 : vector<32x1xf32> to vector<32x256xf32>
    %67 = arith.addf %65, %66 : vector<32x256xf32>
    %cst_32 = arith.constant 0.000000e+00 : f32
    %68 = vector.broadcast %cst_32 : f32 to vector<32x256xf32>
    %69 = arith.maximumf %67, %68 : vector<32x256xf32>
    %c0_33 = arith.constant 0 : index
    %c0_34 = arith.constant 0 : index
    %c0_35 = arith.constant 0 : index
    %70 = vector.load %arg4[%c0_33, %c0_34, %c0_35] : memref<3x8x288xbf16, #tpu.memory_space<vmem>>, vector<1x8x288xbf16>
    %71 = vector.shape_cast %70 : vector<1x8x288xbf16> to vector<8x288xbf16>
    %c0_36 = arith.constant 0 : index
    %c0_37 = arith.constant 0 : index
    %c0_38 = arith.constant 0 : index
    %72 = vector.load %arg5[%c0_36, %c0_37, %c0_38] : memref<3x8x1xf32, #tpu.memory_space<vmem>>, vector<1x8x1xf32>
    %73 = vector.shape_cast %72 : vector<1x8x1xf32> to vector<8x1xf32>
    %c0_39 = arith.constant 0 : index
    %c128_40 = arith.constant 128 : index
    %74 = vector.load %arg7[%c0_39, %c128_40] : memref<32x401xf32, #tpu.memory_space<vmem>>, vector<32x256xf32>
    tpu.vector_store %arg7[%c0_39, %c128_40], %69 {strides = array<i32>} : memref<32x401xf32, #tpu.memory_space<vmem>>, vector<32x256xf32>,
    %c0_41 = arith.constant 0 : index
    %c111_42 = arith.constant 111 : index
    %75 = vector.load %arg7[%c0_41, %c111_42] : memref<32x401xf32, #tpu.memory_space<vmem>>, vector<32x256xf32>
    %cst_43 = arith.constant 0.000000e+00 : f32
    %76 = vector.shape_cast %18 : vector<1x256xi1> to vector<1x256xi1>
    %77 = vector.broadcast %76 : vector<1x256xi1> to vector<32x256xi1>
    %78 = vector.broadcast %cst_43 : f32 to vector<32x256xf32>
    %79 = arith.select %77, %75, %78 : vector<32x256xi1>, vector<32x256xf32>
    %c0_44 = arith.constant 0 : index
    %c112_45 = arith.constant 112 : index
    %80 = vector.load %arg7[%c0_44, %c112_45] : memref<32x401xf32, #tpu.memory_space<vmem>>, vector<32x256xf32>
    %c0_46 = arith.constant 0 : index
    %c113_47 = arith.constant 113 : index
    %81 = vector.load %arg7[%c0_46, %c113_47] : memref<32x401xf32, #tpu.memory_space<vmem>>, vector<32x256xf32>
    %cst_48 = arith.constant 0.000000e+00 : f32
    %82 = vector.shape_cast %20 : vector<1x256xi1> to vector<1x256xi1>
    %83 = vector.broadcast %82 : vector<1x256xi1> to vector<32x256xi1>
    %84 = vector.broadcast %cst_48 : f32 to vector<32x256xf32>
    %85 = arith.select %83, %81, %84 : vector<32x256xi1>, vector<32x256xf32>
    %c0_49 = arith.constant 0 : index
    %c127_50 = arith.constant 127 : index
    %86 = vector.load %arg7[%c0_49, %c127_50] : memref<32x401xf32, #tpu.memory_space<vmem>>, vector<32x256xf32>
    %cst_51 = arith.constant 0.000000e+00 : f32
    %87 = vector.shape_cast %18 : vector<1x256xi1> to vector<1x256xi1>
    %88 = vector.broadcast %87 : vector<1x256xi1> to vector<32x256xi1>
    %89 = vector.broadcast %cst_51 : f32 to vector<32x256xf32>
    %90 = arith.select %88, %86, %89 : vector<32x256xi1>, vector<32x256xf32>
    %c0_52 = arith.constant 0 : index
    %c128_53 = arith.constant 128 : index
    %91 = vector.load %arg7[%c0_52, %c128_53] : memref<32x401xf32, #tpu.memory_space<vmem>>, vector<32x256xf32>
    %c0_54 = arith.constant 0 : index
    %c129_55 = arith.constant 129 : index
    %92 = vector.load %arg7[%c0_54, %c129_55] : memref<32x401xf32, #tpu.memory_space<vmem>>, vector<32x256xf32>
    %cst_56 = arith.constant 0.000000e+00 : f32
    %93 = vector.shape_cast %20 : vector<1x256xi1> to vector<1x256xi1>
    %94 = vector.broadcast %93 : vector<1x256xi1> to vector<32x256xi1>
    %95 = vector.broadcast %cst_56 : f32 to vector<32x256xf32>
    %96 = arith.select %94, %92, %95 : vector<32x256xi1>, vector<32x256xf32>
    %c0_57 = arith.constant 0 : index
    %c143_58 = arith.constant 143 : index
    %97 = vector.load %arg7[%c0_57, %c143_58] : memref<32x401xf32, #tpu.memory_space<vmem>>, vector<32x256xf32>
    %cst_59 = arith.constant 0.000000e+00 : f32
    %98 = vector.shape_cast %18 : vector<1x256xi1> to vector<1x256xi1>
    %99 = vector.broadcast %98 : vector<1x256xi1> to vector<32x256xi1>
    %100 = vector.broadcast %cst_59 : f32 to vector<32x256xf32>
    %101 = arith.select %99, %97, %100 : vector<32x256xi1>, vector<32x256xf32>
    %c0_60 = arith.constant 0 : index
    %c144_61 = arith.constant 144 : index
    %102 = vector.load %arg7[%c0_60, %c144_61] : memref<32x401xf32, #tpu.memory_space<vmem>>, vector<32x256xf32>
    %c0_62 = arith.constant 0 : index
    %c145_63 = arith.constant 145 : index
    %103 = vector.load %arg7[%c0_62, %c145_63] : memref<32x401xf32, #tpu.memory_space<vmem>>, vector<32x256xf32>
    %cst_64 = arith.constant 0.000000e+00 : f32
    %104 = vector.shape_cast %20 : vector<1x256xi1> to vector<1x256xi1>
    %105 = vector.broadcast %104 : vector<1x256xi1> to vector<32x256xi1>
    %106 = vector.broadcast %cst_64 : f32 to vector<32x256xf32>
    %107 = arith.select %105, %103, %106 : vector<32x256xi1>, vector<32x256xf32>
    %108 = tpu.concatenate %79, %80, %85, %90, %91, %96, %101, %102, %107 in 0 : vector<32x256xf32>, vector<32x256xf32>, vector<32x256xf32>, vector<32x256xf32>, vector<32x256xf32>, vector<32x256xf32>, vector<32x256xf32>, vector<32x256xf32>, vector<32x256xf32> -> vector<288x256xf32>
    %109 = arith.truncf %108 : vector<288x256xf32> to vector<288x256xbf16>
    %cst_65 = arith.constant dense<0.000000e+00> : vector<8x256xf32>
    %110 = tpu.matmul %71, %109, %cst_65 {dimension_numbers = #tpu.dot_dimension_numbers<[1], [0], [0], [1], [0, 0, 1, 1], [], []>} : vector<8x288xbf16>, vector<288x256xbf16>, vector<8x256xf32> -> vector<8x256xf32>
    %111 = vector.broadcast %73 : vector<8x1xf32> to vector<8x256xf32>
    %112 = arith.addf %110, %111 : vector<8x256xf32>
    %113 = arith.addf %112, %24 : vector<8x256xf32>
    %c1 = arith.constant 1 : index
    %c0_66 = arith.constant 0 : index
    %c0_67 = arith.constant 0 : index
    %114 = vector.load %arg2[%c1, %c0_66, %c0_67] : memref<3x32x72xbf16, #tpu.memory_space<vmem>>, vector<1x32x72xbf16>
    %115 = vector.shape_cast %114 : vector<1x32x72xbf16> to vector<32x72xbf16>
    %c1_68 = arith.constant 1 : index
    %c0_69 = arith.constant 0 : index
    %c0_70 = arith.constant 0 : index
    %116 = vector.load %arg3[%c1_68, %c0_69, %c0_70] : memref<3x32x1xf32, #tpu.memory_space<vmem>>, vector<1x32x1xf32>
    %117 = vector.shape_cast %116 : vector<1x32x1xf32> to vector<32x1xf32>
    %c0_71 = arith.constant 0 : index
    %c128_72 = arith.constant 128 : index
    %118 = vector.load %arg7[%c0_71, %c128_72] : memref<32x401xf32, #tpu.memory_space<vmem>>, vector<8x256xf32>
    tpu.vector_store %arg7[%c0_71, %c128_72], %113 {strides = array<i32>} : memref<32x401xf32, #tpu.memory_space<vmem>>, vector<8x256xf32>,
    %c0_73 = arith.constant 0 : index
    %c111_74 = arith.constant 111 : index
    %119 = vector.load %arg7[%c0_73, %c111_74] : memref<32x401xf32, #tpu.memory_space<vmem>>, vector<8x256xf32>
    %cst_75 = arith.constant 0.000000e+00 : f32
    %120 = vector.shape_cast %18 : vector<1x256xi1> to vector<1x256xi1>
    %121 = vector.broadcast %120 : vector<1x256xi1> to vector<8x256xi1>
    %122 = vector.broadcast %cst_75 : f32 to vector<8x256xf32>
    %123 = arith.select %121, %119, %122 : vector<8x256xi1>, vector<8x256xf32>
    %c0_76 = arith.constant 0 : index
    %c112_77 = arith.constant 112 : index
    %124 = vector.load %arg7[%c0_76, %c112_77] : memref<32x401xf32, #tpu.memory_space<vmem>>, vector<8x256xf32>
    %c0_78 = arith.constant 0 : index
    %c113_79 = arith.constant 113 : index
    %125 = vector.load %arg7[%c0_78, %c113_79] : memref<32x401xf32, #tpu.memory_space<vmem>>, vector<8x256xf32>
    %cst_80 = arith.constant 0.000000e+00 : f32
    %126 = vector.shape_cast %20 : vector<1x256xi1> to vector<1x256xi1>
    %127 = vector.broadcast %126 : vector<1x256xi1> to vector<8x256xi1>
    %128 = vector.broadcast %cst_80 : f32 to vector<8x256xf32>
    %129 = arith.select %127, %125, %128 : vector<8x256xi1>, vector<8x256xf32>
    %c0_81 = arith.constant 0 : index
    %c127_82 = arith.constant 127 : index
    %130 = vector.load %arg7[%c0_81, %c127_82] : memref<32x401xf32, #tpu.memory_space<vmem>>, vector<8x256xf32>
    %cst_83 = arith.constant 0.000000e+00 : f32
    %131 = vector.shape_cast %18 : vector<1x256xi1> to vector<1x256xi1>
    %132 = vector.broadcast %131 : vector<1x256xi1> to vector<8x256xi1>
    %133 = vector.broadcast %cst_83 : f32 to vector<8x256xf32>
    %134 = arith.select %132, %130, %133 : vector<8x256xi1>, vector<8x256xf32>
    %c0_84 = arith.constant 0 : index
    %c128_85 = arith.constant 128 : index
    %135 = vector.load %arg7[%c0_84, %c128_85] : memref<32x401xf32, #tpu.memory_space<vmem>>, vector<8x256xf32>
    %c0_86 = arith.constant 0 : index
    %c129_87 = arith.constant 129 : index
    %136 = vector.load %arg7[%c0_86, %c129_87] : memref<32x401xf32, #tpu.memory_space<vmem>>, vector<8x256xf32>
    %cst_88 = arith.constant 0.000000e+00 : f32
    %137 = vector.shape_cast %20 : vector<1x256xi1> to vector<1x256xi1>
    %138 = vector.broadcast %137 : vector<1x256xi1> to vector<8x256xi1>
    %139 = vector.broadcast %cst_88 : f32 to vector<8x256xf32>
    %140 = arith.select %138, %136, %139 : vector<8x256xi1>, vector<8x256xf32>
    %c0_89 = arith.constant 0 : index
    %c143_90 = arith.constant 143 : index
    %141 = vector.load %arg7[%c0_89, %c143_90] : memref<32x401xf32, #tpu.memory_space<vmem>>, vector<8x256xf32>
    %cst_91 = arith.constant 0.000000e+00 : f32
    %142 = vector.shape_cast %18 : vector<1x256xi1> to vector<1x256xi1>
    %143 = vector.broadcast %142 : vector<1x256xi1> to vector<8x256xi1>
    %144 = vector.broadcast %cst_91 : f32 to vector<8x256xf32>
    %145 = arith.select %143, %141, %144 : vector<8x256xi1>, vector<8x256xf32>
    %c0_92 = arith.constant 0 : index
    %c144_93 = arith.constant 144 : index
    %146 = vector.load %arg7[%c0_92, %c144_93] : memref<32x401xf32, #tpu.memory_space<vmem>>, vector<8x256xf32>
    %c0_94 = arith.constant 0 : index
    %c145_95 = arith.constant 145 : index
    %147 = vector.load %arg7[%c0_94, %c145_95] : memref<32x401xf32, #tpu.memory_space<vmem>>, vector<8x256xf32>
    %cst_96 = arith.constant 0.000000e+00 : f32
    %148 = vector.shape_cast %20 : vector<1x256xi1> to vector<1x256xi1>
    %149 = vector.broadcast %148 : vector<1x256xi1> to vector<8x256xi1>
    %150 = vector.broadcast %cst_96 : f32 to vector<8x256xf32>
    %151 = arith.select %149, %147, %150 : vector<8x256xi1>, vector<8x256xf32>
    %152 = tpu.concatenate %123, %124, %129, %134, %135, %140, %145, %146, %151 in 0 : vector<8x256xf32>, vector<8x256xf32>, vector<8x256xf32>, vector<8x256xf32>, vector<8x256xf32>, vector<8x256xf32>, vector<8x256xf32>, vector<8x256xf32>, vector<8x256xf32> -> vector<72x256xf32>
    %153 = arith.truncf %152 : vector<72x256xf32> to vector<72x256xbf16>
    %cst_97 = arith.constant dense<0.000000e+00> : vector<32x256xf32>
    %154 = tpu.matmul %115, %153, %cst_97 {dimension_numbers = #tpu.dot_dimension_numbers<[1], [0], [0], [1], [0, 0, 1, 1], [], []>} : vector<32x72xbf16>, vector<72x256xbf16>, vector<32x256xf32> -> vector<32x256xf32>
    %155 = vector.broadcast %117 : vector<32x1xf32> to vector<32x256xf32>
    %156 = arith.addf %154, %155 : vector<32x256xf32>
    %cst_98 = arith.constant 0.000000e+00 : f32
    %157 = vector.broadcast %cst_98 : f32 to vector<32x256xf32>
    %158 = arith.maximumf %156, %157 : vector<32x256xf32>
    %c1_99 = arith.constant 1 : index
    %c0_100 = arith.constant 0 : index
    %c0_101 = arith.constant 0 : index
    %159 = vector.load %arg4[%c1_99, %c0_100, %c0_101] : memref<3x8x288xbf16, #tpu.memory_space<vmem>>, vector<1x8x288xbf16>
    %160 = vector.shape_cast %159 : vector<1x8x288xbf16> to vector<8x288xbf16>
    %c1_102 = arith.constant 1 : index
    %c0_103 = arith.constant 0 : index
    %c0_104 = arith.constant 0 : index
    %161 = vector.load %arg5[%c1_102, %c0_103, %c0_104] : memref<3x8x1xf32, #tpu.memory_space<vmem>>, vector<1x8x1xf32>
    %162 = vector.shape_cast %161 : vector<1x8x1xf32> to vector<8x1xf32>
    %c0_105 = arith.constant 0 : index
    %c128_106 = arith.constant 128 : index
    %163 = vector.load %arg7[%c0_105, %c128_106] : memref<32x401xf32, #tpu.memory_space<vmem>>, vector<32x256xf32>
    tpu.vector_store %arg7[%c0_105, %c128_106], %158 {strides = array<i32>} : memref<32x401xf32, #tpu.memory_space<vmem>>, vector<32x256xf32>,
    %c0_107 = arith.constant 0 : index
    %c111_108 = arith.constant 111 : index
    %164 = vector.load %arg7[%c0_107, %c111_108] : memref<32x401xf32, #tpu.memory_space<vmem>>, vector<32x256xf32>
    %cst_109 = arith.constant 0.000000e+00 : f32
    %165 = vector.shape_cast %18 : vector<1x256xi1> to vector<1x256xi1>
    %166 = vector.broadcast %165 : vector<1x256xi1> to vector<32x256xi1>
    %167 = vector.broadcast %cst_109 : f32 to vector<32x256xf32>
    %168 = arith.select %166, %164, %167 : vector<32x256xi1>, vector<32x256xf32>
    %c0_110 = arith.constant 0 : index
    %c112_111 = arith.constant 112 : index
    %169 = vector.load %arg7[%c0_110, %c112_111] : memref<32x401xf32, #tpu.memory_space<vmem>>, vector<32x256xf32>
    %c0_112 = arith.constant 0 : index
    %c113_113 = arith.constant 113 : index
    %170 = vector.load %arg7[%c0_112, %c113_113] : memref<32x401xf32, #tpu.memory_space<vmem>>, vector<32x256xf32>
    %cst_114 = arith.constant 0.000000e+00 : f32
    %171 = vector.shape_cast %20 : vector<1x256xi1> to vector<1x256xi1>
    %172 = vector.broadcast %171 : vector<1x256xi1> to vector<32x256xi1>
    %173 = vector.broadcast %cst_114 : f32 to vector<32x256xf32>
    %174 = arith.select %172, %170, %173 : vector<32x256xi1>, vector<32x256xf32>
    %c0_115 = arith.constant 0 : index
    %c127_116 = arith.constant 127 : index
    %175 = vector.load %arg7[%c0_115, %c127_116] : memref<32x401xf32, #tpu.memory_space<vmem>>, vector<32x256xf32>
    %cst_117 = arith.constant 0.000000e+00 : f32
    %176 = vector.shape_cast %18 : vector<1x256xi1> to vector<1x256xi1>
    %177 = vector.broadcast %176 : vector<1x256xi1> to vector<32x256xi1>
    %178 = vector.broadcast %cst_117 : f32 to vector<32x256xf32>
    %179 = arith.select %177, %175, %178 : vector<32x256xi1>, vector<32x256xf32>
    %c0_118 = arith.constant 0 : index
    %c128_119 = arith.constant 128 : index
    %180 = vector.load %arg7[%c0_118, %c128_119] : memref<32x401xf32, #tpu.memory_space<vmem>>, vector<32x256xf32>
    %c0_120 = arith.constant 0 : index
    %c129_121 = arith.constant 129 : index
    %181 = vector.load %arg7[%c0_120, %c129_121] : memref<32x401xf32, #tpu.memory_space<vmem>>, vector<32x256xf32>
    %cst_122 = arith.constant 0.000000e+00 : f32
    %182 = vector.shape_cast %20 : vector<1x256xi1> to vector<1x256xi1>
    %183 = vector.broadcast %182 : vector<1x256xi1> to vector<32x256xi1>
    %184 = vector.broadcast %cst_122 : f32 to vector<32x256xf32>
    %185 = arith.select %183, %181, %184 : vector<32x256xi1>, vector<32x256xf32>
    %c0_123 = arith.constant 0 : index
    %c143_124 = arith.constant 143 : index
    %186 = vector.load %arg7[%c0_123, %c143_124] : memref<32x401xf32, #tpu.memory_space<vmem>>, vector<32x256xf32>
    %cst_125 = arith.constant 0.000000e+00 : f32
    %187 = vector.shape_cast %18 : vector<1x256xi1> to vector<1x256xi1>
    %188 = vector.broadcast %187 : vector<1x256xi1> to vector<32x256xi1>
    %189 = vector.broadcast %cst_125 : f32 to vector<32x256xf32>
    %190 = arith.select %188, %186, %189 : vector<32x256xi1>, vector<32x256xf32>
    %c0_126 = arith.constant 0 : index
    %c144_127 = arith.constant 144 : index
    %191 = vector.load %arg7[%c0_126, %c144_127] : memref<32x401xf32, #tpu.memory_space<vmem>>, vector<32x256xf32>
    %c0_128 = arith.constant 0 : index
    %c145_129 = arith.constant 145 : index
    %192 = vector.load %arg7[%c0_128, %c145_129] : memref<32x401xf32, #tpu.memory_space<vmem>>, vector<32x256xf32>
    %cst_130 = arith.constant 0.000000e+00 : f32
    %193 = vector.shape_cast %20 : vector<1x256xi1> to vector<1x256xi1>
    %194 = vector.broadcast %193 : vector<1x256xi1> to vector<32x256xi1>
    %195 = vector.broadcast %cst_130 : f32 to vector<32x256xf32>
    %196 = arith.select %194, %192, %195 : vector<32x256xi1>, vector<32x256xf32>
    %197 = tpu.concatenate %168, %169, %174, %179, %180, %185, %190, %191, %196 in 0 : vector<32x256xf32>, vector<32x256xf32>, vector<32x256xf32>, vector<32x256xf32>, vector<32x256xf32>, vector<32x256xf32>, vector<32x256xf32>, vector<32x256xf32>, vector<32x256xf32> -> vector<288x256xf32>
    %198 = arith.truncf %197 : vector<288x256xf32> to vector<288x256xbf16>
    %cst_131 = arith.constant dense<0.000000e+00> : vector<8x256xf32>
    %199 = tpu.matmul %160, %198, %cst_131 {dimension_numbers = #tpu.dot_dimension_numbers<[1], [0], [0], [1], [0, 0, 1, 1], [], []>} : vector<8x288xbf16>, vector<288x256xbf16>, vector<8x256xf32> -> vector<8x256xf32>
    %200 = vector.broadcast %162 : vector<8x1xf32> to vector<8x256xf32>
    %201 = arith.addf %199, %200 : vector<8x256xf32>
    %202 = arith.addf %201, %24 : vector<8x256xf32>
    %c2 = arith.constant 2 : index
    %c0_132 = arith.constant 0 : index
    %c0_133 = arith.constant 0 : index
    %203 = vector.load %arg2[%c2, %c0_132, %c0_133] : memref<3x32x72xbf16, #tpu.memory_space<vmem>>, vector<1x32x72xbf16>
    %204 = vector.shape_cast %203 : vector<1x32x72xbf16> to vector<32x72xbf16>
    %c2_134 = arith.constant 2 : index
    %c0_135 = arith.constant 0 : index
    %c0_136 = arith.constant 0 : index
    %205 = vector.load %arg3[%c2_134, %c0_135, %c0_136] : memref<3x32x1xf32, #tpu.memory_space<vmem>>, vector<1x32x1xf32>
    %206 = vector.shape_cast %205 : vector<1x32x1xf32> to vector<32x1xf32>
    %c0_137 = arith.constant 0 : index
    %c128_138 = arith.constant 128 : index
    %207 = vector.load %arg7[%c0_137, %c128_138] : memref<32x401xf32, #tpu.memory_space<vmem>>, vector<8x256xf32>
    tpu.vector_store %arg7[%c0_137, %c128_138], %202 {strides = array<i32>} : memref<32x401xf32, #tpu.memory_space<vmem>>, vector<8x256xf32>,
    %c0_139 = arith.constant 0 : index
    %c111_140 = arith.constant 111 : index
    %208 = vector.load %arg7[%c0_139, %c111_140] : memref<32x401xf32, #tpu.memory_space<vmem>>, vector<8x256xf32>
    %cst_141 = arith.constant 0.000000e+00 : f32
    %209 = vector.shape_cast %18 : vector<1x256xi1> to vector<1x256xi1>
    %210 = vector.broadcast %209 : vector<1x256xi1> to vector<8x256xi1>
    %211 = vector.broadcast %cst_141 : f32 to vector<8x256xf32>
    %212 = arith.select %210, %208, %211 : vector<8x256xi1>, vector<8x256xf32>
    %c0_142 = arith.constant 0 : index
    %c112_143 = arith.constant 112 : index
    %213 = vector.load %arg7[%c0_142, %c112_143] : memref<32x401xf32, #tpu.memory_space<vmem>>, vector<8x256xf32>
    %c0_144 = arith.constant 0 : index
    %c113_145 = arith.constant 113 : index
    %214 = vector.load %arg7[%c0_144, %c113_145] : memref<32x401xf32, #tpu.memory_space<vmem>>, vector<8x256xf32>
    %cst_146 = arith.constant 0.000000e+00 : f32
    %215 = vector.shape_cast %20 : vector<1x256xi1> to vector<1x256xi1>
    %216 = vector.broadcast %215 : vector<1x256xi1> to vector<8x256xi1>
    %217 = vector.broadcast %cst_146 : f32 to vector<8x256xf32>
    %218 = arith.select %216, %214, %217 : vector<8x256xi1>, vector<8x256xf32>
    %c0_147 = arith.constant 0 : index
    %c127_148 = arith.constant 127 : index
    %219 = vector.load %arg7[%c0_147, %c127_148] : memref<32x401xf32, #tpu.memory_space<vmem>>, vector<8x256xf32>
    %cst_149 = arith.constant 0.000000e+00 : f32
    %220 = vector.shape_cast %18 : vector<1x256xi1> to vector<1x256xi1>
    %221 = vector.broadcast %220 : vector<1x256xi1> to vector<8x256xi1>
    %222 = vector.broadcast %cst_149 : f32 to vector<8x256xf32>
    %223 = arith.select %221, %219, %222 : vector<8x256xi1>, vector<8x256xf32>
    %c0_150 = arith.constant 0 : index
    %c128_151 = arith.constant 128 : index
    %224 = vector.load %arg7[%c0_150, %c128_151] : memref<32x401xf32, #tpu.memory_space<vmem>>, vector<8x256xf32>
    %c0_152 = arith.constant 0 : index
    %c129_153 = arith.constant 129 : index
    %225 = vector.load %arg7[%c0_152, %c129_153] : memref<32x401xf32, #tpu.memory_space<vmem>>, vector<8x256xf32>
    %cst_154 = arith.constant 0.000000e+00 : f32
    %226 = vector.shape_cast %20 : vector<1x256xi1> to vector<1x256xi1>
    %227 = vector.broadcast %226 : vector<1x256xi1> to vector<8x256xi1>
    %228 = vector.broadcast %cst_154 : f32 to vector<8x256xf32>
    %229 = arith.select %227, %225, %228 : vector<8x256xi1>, vector<8x256xf32>
    %c0_155 = arith.constant 0 : index
    %c143_156 = arith.constant 143 : index
    %230 = vector.load %arg7[%c0_155, %c143_156] : memref<32x401xf32, #tpu.memory_space<vmem>>, vector<8x256xf32>
    %cst_157 = arith.constant 0.000000e+00 : f32
    %231 = vector.shape_cast %18 : vector<1x256xi1> to vector<1x256xi1>
    %232 = vector.broadcast %231 : vector<1x256xi1> to vector<8x256xi1>
    %233 = vector.broadcast %cst_157 : f32 to vector<8x256xf32>
    %234 = arith.select %232, %230, %233 : vector<8x256xi1>, vector<8x256xf32>
    %c0_158 = arith.constant 0 : index
    %c144_159 = arith.constant 144 : index
    %235 = vector.load %arg7[%c0_158, %c144_159] : memref<32x401xf32, #tpu.memory_space<vmem>>, vector<8x256xf32>
    %c0_160 = arith.constant 0 : index
    %c145_161 = arith.constant 145 : index
    %236 = vector.load %arg7[%c0_160, %c145_161] : memref<32x401xf32, #tpu.memory_space<vmem>>, vector<8x256xf32>
    %cst_162 = arith.constant 0.000000e+00 : f32
    %237 = vector.shape_cast %20 : vector<1x256xi1> to vector<1x256xi1>
    %238 = vector.broadcast %237 : vector<1x256xi1> to vector<8x256xi1>
    %239 = vector.broadcast %cst_162 : f32 to vector<8x256xf32>
    %240 = arith.select %238, %236, %239 : vector<8x256xi1>, vector<8x256xf32>
    %241 = tpu.concatenate %212, %213, %218, %223, %224, %229, %234, %235, %240 in 0 : vector<8x256xf32>, vector<8x256xf32>, vector<8x256xf32>, vector<8x256xf32>, vector<8x256xf32>, vector<8x256xf32>, vector<8x256xf32>, vector<8x256xf32>, vector<8x256xf32> -> vector<72x256xf32>
    %242 = arith.truncf %241 : vector<72x256xf32> to vector<72x256xbf16>
    %cst_163 = arith.constant dense<0.000000e+00> : vector<32x256xf32>
    %243 = tpu.matmul %204, %242, %cst_163 {dimension_numbers = #tpu.dot_dimension_numbers<[1], [0], [0], [1], [0, 0, 1, 1], [], []>} : vector<32x72xbf16>, vector<72x256xbf16>, vector<32x256xf32> -> vector<32x256xf32>
    %244 = vector.broadcast %206 : vector<32x1xf32> to vector<32x256xf32>
    %245 = arith.addf %243, %244 : vector<32x256xf32>
    %cst_164 = arith.constant 0.000000e+00 : f32
    %246 = vector.broadcast %cst_164 : f32 to vector<32x256xf32>
    %247 = arith.maximumf %245, %246 : vector<32x256xf32>
    %c2_165 = arith.constant 2 : index
    %c0_166 = arith.constant 0 : index
    %c0_167 = arith.constant 0 : index
    %248 = vector.load %arg4[%c2_165, %c0_166, %c0_167] : memref<3x8x288xbf16, #tpu.memory_space<vmem>>, vector<1x8x288xbf16>
    %249 = vector.shape_cast %248 : vector<1x8x288xbf16> to vector<8x288xbf16>
    %c2_168 = arith.constant 2 : index
    %c0_169 = arith.constant 0 : index
    %c0_170 = arith.constant 0 : index
    %250 = vector.load %arg5[%c2_168, %c0_169, %c0_170] : memref<3x8x1xf32, #tpu.memory_space<vmem>>, vector<1x8x1xf32>
    %251 = vector.shape_cast %250 : vector<1x8x1xf32> to vector<8x1xf32>
    %c0_171 = arith.constant 0 : index
    %c128_172 = arith.constant 128 : index
    %252 = vector.load %arg7[%c0_171, %c128_172] : memref<32x401xf32, #tpu.memory_space<vmem>>, vector<32x256xf32>
    tpu.vector_store %arg7[%c0_171, %c128_172], %247 {strides = array<i32>} : memref<32x401xf32, #tpu.memory_space<vmem>>, vector<32x256xf32>,
    %c0_173 = arith.constant 0 : index
    %c111_174 = arith.constant 111 : index
    %253 = vector.load %arg7[%c0_173, %c111_174] : memref<32x401xf32, #tpu.memory_space<vmem>>, vector<32x256xf32>
    %cst_175 = arith.constant 0.000000e+00 : f32
    %254 = vector.shape_cast %18 : vector<1x256xi1> to vector<1x256xi1>
    %255 = vector.broadcast %254 : vector<1x256xi1> to vector<32x256xi1>
    %256 = vector.broadcast %cst_175 : f32 to vector<32x256xf32>
    %257 = arith.select %255, %253, %256 : vector<32x256xi1>, vector<32x256xf32>
    %c0_176 = arith.constant 0 : index
    %c112_177 = arith.constant 112 : index
    %258 = vector.load %arg7[%c0_176, %c112_177] : memref<32x401xf32, #tpu.memory_space<vmem>>, vector<32x256xf32>
    %c0_178 = arith.constant 0 : index
    %c113_179 = arith.constant 113 : index
    %259 = vector.load %arg7[%c0_178, %c113_179] : memref<32x401xf32, #tpu.memory_space<vmem>>, vector<32x256xf32>
    %cst_180 = arith.constant 0.000000e+00 : f32
    %260 = vector.shape_cast %20 : vector<1x256xi1> to vector<1x256xi1>
    %261 = vector.broadcast %260 : vector<1x256xi1> to vector<32x256xi1>
    %262 = vector.broadcast %cst_180 : f32 to vector<32x256xf32>
    %263 = arith.select %261, %259, %262 : vector<32x256xi1>, vector<32x256xf32>
    %c0_181 = arith.constant 0 : index
    %c127_182 = arith.constant 127 : index
    %264 = vector.load %arg7[%c0_181, %c127_182] : memref<32x401xf32, #tpu.memory_space<vmem>>, vector<32x256xf32>
    %cst_183 = arith.constant 0.000000e+00 : f32
    %265 = vector.shape_cast %18 : vector<1x256xi1> to vector<1x256xi1>
    %266 = vector.broadcast %265 : vector<1x256xi1> to vector<32x256xi1>
    %267 = vector.broadcast %cst_183 : f32 to vector<32x256xf32>
    %268 = arith.select %266, %264, %267 : vector<32x256xi1>, vector<32x256xf32>
    %c0_184 = arith.constant 0 : index
    %c128_185 = arith.constant 128 : index
    %269 = vector.load %arg7[%c0_184, %c128_185] : memref<32x401xf32, #tpu.memory_space<vmem>>, vector<32x256xf32>
    %c0_186 = arith.constant 0 : index
    %c129_187 = arith.constant 129 : index
    %270 = vector.load %arg7[%c0_186, %c129_187] : memref<32x401xf32, #tpu.memory_space<vmem>>, vector<32x256xf32>
    %cst_188 = arith.constant 0.000000e+00 : f32
    %271 = vector.shape_cast %20 : vector<1x256xi1> to vector<1x256xi1>
    %272 = vector.broadcast %271 : vector<1x256xi1> to vector<32x256xi1>
    %273 = vector.broadcast %cst_188 : f32 to vector<32x256xf32>
    %274 = arith.select %272, %270, %273 : vector<32x256xi1>, vector<32x256xf32>
    %c0_189 = arith.constant 0 : index
    %c143_190 = arith.constant 143 : index
    %275 = vector.load %arg7[%c0_189, %c143_190] : memref<32x401xf32, #tpu.memory_space<vmem>>, vector<32x256xf32>
    %cst_191 = arith.constant 0.000000e+00 : f32
    %276 = vector.shape_cast %18 : vector<1x256xi1> to vector<1x256xi1>
    %277 = vector.broadcast %276 : vector<1x256xi1> to vector<32x256xi1>
    %278 = vector.broadcast %cst_191 : f32 to vector<32x256xf32>
    %279 = arith.select %277, %275, %278 : vector<32x256xi1>, vector<32x256xf32>
    %c0_192 = arith.constant 0 : index
    %c144_193 = arith.constant 144 : index
    %280 = vector.load %arg7[%c0_192, %c144_193] : memref<32x401xf32, #tpu.memory_space<vmem>>, vector<32x256xf32>
    %c0_194 = arith.constant 0 : index
    %c145_195 = arith.constant 145 : index
    %281 = vector.load %arg7[%c0_194, %c145_195] : memref<32x401xf32, #tpu.memory_space<vmem>>, vector<32x256xf32>
    %cst_196 = arith.constant 0.000000e+00 : f32
    %282 = vector.shape_cast %20 : vector<1x256xi1> to vector<1x256xi1>
    %283 = vector.broadcast %282 : vector<1x256xi1> to vector<32x256xi1>
    %284 = vector.broadcast %cst_196 : f32 to vector<32x256xf32>
    %285 = arith.select %283, %281, %284 : vector<32x256xi1>, vector<32x256xf32>
    %286 = tpu.concatenate %257, %258, %263, %268, %269, %274, %279, %280, %285 in 0 : vector<32x256xf32>, vector<32x256xf32>, vector<32x256xf32>, vector<32x256xf32>, vector<32x256xf32>, vector<32x256xf32>, vector<32x256xf32>, vector<32x256xf32>, vector<32x256xf32> -> vector<288x256xf32>
    %287 = arith.truncf %286 : vector<288x256xf32> to vector<288x256xbf16>
    %cst_197 = arith.constant dense<0.000000e+00> : vector<8x256xf32>
    %288 = tpu.matmul %249, %287, %cst_197 {dimension_numbers = #tpu.dot_dimension_numbers<[1], [0], [0], [1], [0, 0, 1, 1], [], []>} : vector<8x288xbf16>, vector<288x256xbf16>, vector<8x256xf32> -> vector<8x256xf32>
    %289 = vector.broadcast %251 : vector<8x1xf32> to vector<8x256xf32>
    %290 = arith.addf %288, %289 : vector<8x256xf32>
    %c0_198 = arith.constant 0 : index
    %c0_199 = arith.constant 0 : index
    %c0_200 = arith.constant 0 : index
    %291 = vector.load %arg6[%c0_198, %c0_199, %c0_200] : memref<1x8x256xf32, #tpu.memory_space<vmem>>, vector<1x8x256xf32>
    %292 = vector.shape_cast %291 : vector<1x8x256xf32> to vector<8x256xf32>
    %293 = vector.shape_cast %290 : vector<8x256xf32> to vector<1x8x256xf32>
    tpu.vector_store %arg6[%c0_198, %c0_199, %c0_200], %293 {strides = array<i32>} : memref<1x8x256xf32, #tpu.memory_space<vmem>>, vector<1x8x256xf32>,
    return
  }
  func.func @transform_0(%arg0: i32) -> (i32, i32, i32) {
    %c0_i32 = arith.constant 0 : i32
    %c0_i32_0 = arith.constant 0 : i32
    %c0_i32_1 = arith.constant 0 : i32
    return %arg0, %c0_i32, %c0_i32_0 : i32, i32, i32
  }
  func.func @transform_1(%arg0: i32) -> (i32, i32, i32) {
    %c0_i32 = arith.constant 0 : i32
    %c0_i32_0 = arith.constant 0 : i32
    %c0_i32_1 = arith.constant 0 : i32
    %c0_i32_2 = arith.constant 0 : i32
    return %c0_i32, %c0_i32_0, %c0_i32_1 : i32, i32, i32
  }
  func.func @transform_2(%arg0: i32) -> (i32, i32, i32) {
    %c0_i32 = arith.constant 0 : i32
    %c0_i32_0 = arith.constant 0 : i32
    %c0_i32_1 = arith.constant 0 : i32
    %c0_i32_2 = arith.constant 0 : i32
    return %c0_i32, %c0_i32_0, %c0_i32_1 : i32, i32, i32
  }
  func.func @transform_3(%arg0: i32) -> (i32, i32, i32) {
    %c0_i32 = arith.constant 0 : i32
    %c0_i32_0 = arith.constant 0 : i32
    %c0_i32_1 = arith.constant 0 : i32
    %c0_i32_2 = arith.constant 0 : i32
    return %c0_i32, %c0_i32_0, %c0_i32_1 : i32, i32, i32
  }
  func.func @transform_4(%arg0: i32) -> (i32, i32, i32) {
    %c0_i32 = arith.constant 0 : i32
    %c0_i32_0 = arith.constant 0 : i32
    %c0_i32_1 = arith.constant 0 : i32
    %c0_i32_2 = arith.constant 0 : i32
    return %c0_i32, %c0_i32_0, %c0_i32_1 : i32, i32, i32
  }
  func.func @transform_5(%arg0: i32) -> (i32, i32, i32) {
    %c0_i32 = arith.constant 0 : i32
    %c0_i32_0 = arith.constant 0 : i32
    %c0_i32_1 = arith.constant 0 : i32
    return %arg0, %c0_i32, %c0_i32_0 : i32, i32, i32
  }
}

</mosaic_0001>

<bundles_post_ra>
// kernel: single_domain_reconstruction.1
= control target key start
LH: loop header
LB: loop body
LE: loop exit
PB: predicated region body
PF: predicated region fallthrough
CT: control target
= control target key end

     0   :  { %s3904_s18 = smov 0   ;;  %s5683_s0 = inlined_call_operand.vmem [shape: f32[2,8,256], index: 0, kind: input, shape index: {}]   ;;  %s5684_s1 = inlined_call_operand.vmem [shape: bf16[3,32,72], index: 1, kind: input, shape index: {}]   ;;  %s5685_s2 = inlined_call_operand.vmem [shape: f32[3,32,1], index: 2, kind: input, shape index: {}]   ;;  %s5686_s3 = inlined_call_operand.vmem [shape: bf16[3,8,288], index: 3, kind: input, shape index: {}]   ;;  %s5687_s4 = inlined_call_operand.vmem [shape: f32[3,8,1], index: 4, kind: input, shape index: {}]   ;;  %s5688_s5 = inlined_call_operand.vmem [shape: f32[2,8,256], index: 5, kind: output, shape index: {}]  }
   0x1 LB: > { %s2616_s19 = sadd.s32 4294967295, %s3861_s18   ;;  %p2620_p0 = scmp.ge.s32.totalorder %s3861_s18, 1  ;;  %s3861_s18 = sphi %s3904_s18, %s15_s18  }
   0x2   : > { %p187_p1 = scmp.lt.s32.totalorder %s3861_s18, 3 }
   0x4   : > { %p188_p2 = pnand %p2620_p0, %p187_p1 }
   0x6   : > { %191 = sbr.rel (%p188_p2) target bundleno = 2017 (0x7e1), region = 40 }
   0xb   : > { %vm5707_vm0 = vcmask 138240   ;;  %v3863_v0 = vmov 0.0   ;;  %p215_p3 = scmp.lt.s32.totalorder %s2616_s19, 1  ;;  %s3864_s24 = smov 113   ;;  %v226_v8 = vlaneseq  ;;  %vm5690_vm1 = vcmask 908288   ;;  %v282_v41 = vld [vmem:[%s5685_s2 + $0x10] sm:$0xff] }
   0xc   : > { %261 = vst.msk [vmem:[#allocation2 + $0x18] sm:$0xff] %vm5707_vm0, %v3863_v0  ;;  %s3865_s25 = smov 111   ;;  %s3866_s26 = smov 112   ;;  %vm5710_vm4 = vcmask 924672   ;;  %vm5709_vm5 = vcmask 916480   ;;  %vm5689_vm6 = vcmask 1043456  }
   0xd   : > { %257 = vst [vmem:[#allocation2] sm:$0xff] %v3863_v0  ;;  %s6045_s19 = smov (!%p215_p3, %s2616_s19), 1  ;;  %s3867_s27 = smov 127   ;;  %v227_v10 = vand.u32 127, %v226_v8  ;;  %v280_v42 = vld [vmem:[%s5685_s2] sm:$0xff]  ;;  %vm3872_vm9 = vmmov 1  }
   0xe   : > { %265 = vst.msk [vmem:[#allocation2 + $0x38] sm:$0xff] %vm5707_vm0, %v3863_v0  ;;  %s2979_s20 = sshll.u32 %s6045_s19, 4  ;;  %s3868_s28 = smov 15   ;;  %v5746_v45 = vmov 0  ;;  %vm5691_vm11 = vcmask 1039360   ;;  %v5749_v49 = vmov 0 }
   0xf   : > { %269 = vst.msk [vmem:[#allocation2 + $0x58] sm:$0xff] %vm5707_vm0, %v3863_v0  ;;  %s3927_s23 = scalar_lea.vmem %s5683_s0, %s2979_s20  ;;  %s3869_s29 = smov 1   ;;  %v228_v13 = vadd.s32 128, %v227_v10  ;;  %v233_v15 = vand.u32 15, %v227_v10  ;;  %v3873_v50 = vmov 0   ;;  %v5752_v55 = vmov 0 }
  0x10   : > { %273 = vst.msk [vmem:[#allocation2 + $0x78] sm:$0xff] %vm5707_vm0, %v3863_v0  ;;  %v3938_v2 = vld [vmem:[%s3927_s23] sm:$0xff]  ;;  %v3941_v3 = vld [vmem:[%s3927_s23 + $0x8] sm:$0xff]  ;;  %s3870_s30 = smov 17   ;;  %s3871_s6 = smov 16   ;;  %3053 = vset.pattern.permute.xlu0 %v3873_v50  ;;  %3051 = vset.pattern.permute.xlu1 %v3873_v50  ;;  %v5755_v56 = vmov 0 }
  0x11   : > { %v3011_v4 = vpack.i.bf16 %v3941_v3, %v3938_v2  ;;  %v3031_v5 = vpack.i.bf16 %v3938_v2, %v3863_v0  ;;  %v3036_v6 = vpack.i.bf16 0.0, %v3941_v3  ;;  %v240_v16 = vand.u32 15, %v228_v13  ;;  %3052 = vset.pattern.permute.xlu2 %v3873_v50  ;;  %s224_s15 = scalar_lea.vmem %s5688_s5, %s2979_s20 }
  0x12   : > { %vm3969_vm2 = vcmp.le.s32.totalorder %v233_v15, 14  ;;  %vm3983_vm7 = vcmp.ge.s32.totalorder %v233_v15, 1  ;;  %vm5692_vm15 = vcmask 121856  }
  0x13   : > { %v3929_v1 = vld [vmem:[#allocation2 + $0x18] sm:$0xff]  ;;  %vm3973_vm3 = vcmp.le.s32.totalorder %v240_v16, 14  ;;  %vm3989_vm8 = vcmp.ge.s32.totalorder %v240_v16, 1  ;;  %vm4007_vm10 = vmpackc.low %vm3872_vm9, %vm3983_vm7 }
  0x14   : > { %357 = vrot.lane.b32.xlu1 %v3929_v1, %s3864_s24  ;;  %370 = vrot.lane.b32.xlu0 %v3929_v1, %s3865_s25  ;;  %v5747_v45 = vsel %vm4007_vm10, 4294967295, %v5746_v45  ;;  %vm4015_vm12 = vmpackc.low %vm3872_vm9, %vm3989_vm8  ;;  %v283_v16 = vld [vmem:[%s5685_s2 + $0x18] sm:$0xff] }
  0x15   : > { %394 = vrot.lane.b32.xlu2 %v3929_v1, %s3866_s26  ;;  %5748 = vst [vmem:[#allocation3_spill] sm:$0xff] %v5747_v45  ;;  %v5750_v49 = vsel %vm4015_vm12, 4294967295, %v5749_v49  ;;  %vm4028_vm13 = vmpackc.low %vm3969_vm2, %vm3872_vm9 }
  0x16   : > { %5751 = vst [vmem:[#allocation4_spill] sm:$0xff] %v5750_v49  ;;  %v5753_v55 = vsel %vm4028_vm13, 4294967295, %v5752_v55  ;;  %vm4035_vm14 = vmpackc.low %vm3973_vm3, %vm3872_vm9 }
  0x17   : > { %5754 = vst [vmem:[#allocation5_spill] sm:$0xff] %v5753_v55  ;;  %v5756_v56 = vsel %vm4035_vm14, 4294967295, %v5755_v56  ;;  %vm4055_vm9 = vmpackc.low %vm3983_vm7, %vm3969_vm2 }
  0x18   : > { %5757 = vst [vmem:[#allocation6_spill] sm:$0xff] %v5756_v56 }
  0x1c   : > { %3012 = vrot.lane.b32.xlu1 %v3011_v4, %s3864_s24  ;;  %3007 = vrot.lane.b32.xlu0 %v3011_v4, %s3865_s25 }
  0x1d   : > { %3017 = vrot.lane.b32.xlu2 %v3011_v4, %s3866_s26 }
  0x24   : > { %344 = vrot.lane.b32.xlu1 %v3929_v1, %s3867_s27  ;;  %3022 = vrot.lane.b32.xlu0 %v3011_v4, %s3867_s27 }
  0x25   : > { %3027 = vrot.lane.b32.xlu2 %v3031_v5, %s3868_s28 }
  0x2c   : > { %3032 = vrot.lane.b32.xlu1 %v3031_v5, %s3869_s29  ;;  %316 = vrot.lane.b32.xlu0 %v3941_v3, %s3868_s28 }
  0x2d   : > { %3037 = vrot.lane.b32.xlu2 %v3036_v6, %s3869_s29 }
  0x34   : > { %3042 = vrot.lane.b32.xlu0 %v3031_v5, %s3870_s30  ;;  %300 = vrot.lane.b32.xlu1 %v3941_v3, %s3870_s30 }
  0x35   : > { %3047 = vrot.lane.b32.xlu2 %v3031_v5, %s3871_s6  ;;  %v5758_v5 = vmov 0 }
  0x36   : > { %v5759_v5 = vsel %vm4055_vm9, 4294967295, %v5758_v5 }
  0x37   : > { %5760 = vst [vmem:[#allocation7_spill] sm:$0xff] %v5759_v5 }
  0x3c   : > { %383 = vrot.lane.b32.xlu0 %v3941_v3, %s3871_s6  ;;  %423 = vperm.xlu1 %3051, %v282_v41  }
  0x3d   : > { %428 = vperm.xlu2 %3052, %v283_v16  }
  0x44   : > { %413 = vperm.xlu0 %3053, %v280_v42  }
  0x6f   : > { %v395_v7 = vpop.permute.xlu2 %394 }
  0x77   : > { %v3018_v9 = vpop.permute.xlu2 %3017 }
  0x78   : > { %v3019_v23 = vunpack.i.l.bf16 %v3018_v9  ;;  %v3020_v28 = vunpack.i.h.bf16 %v3018_v9 }
  0x7a   : > { %v397_v35 = vsel %vm5709_vm5, %v3019_v23, %v3020_v28  ;;  %v398_v48 = vsel %vm5709_vm5, %v3020_v28, %v395_v7 }
  0x7f   : > { %v3967_v14 = vpop.permute.xlu2 %3027 }
  0x80   : > { %v3030_v59 = vunpack.i.h.bf16 %v3967_v14  ;;  %v3029_v60 = vunpack.i.l.bf16 %v3967_v14 }
  0x82   : > { %v319_v9 = vsel %vm5692_vm15, %v3029_v60, %v3030_v59 }
  0x86   : > { %v358_v11 = vpop.permute.xlu1 %357  ;;  %v371_v12 = vpop.permute.xlu0 %370 }
  0x87   : > { %v3996_v40 = vpop.permute.xlu2 %3037 }
  0x88   : > { %v3039_v61 = vunpack.i.l.bf16 %v3996_v40 }
  0x8e   : > { %v3013_v17 = vpop.permute.xlu1 %3012  ;;  %v3008_v18 = vpop.permute.xlu0 %3007 }
  0x8f   : > { %v3010_v19 = vunpack.i.h.bf16 %v3008_v18  ;;  %v3009_v20 = vunpack.i.l.bf16 %v3008_v18  ;;  %v3015_v24 = vunpack.i.h.bf16 %v3013_v17  ;;  %v3014_v25 = vunpack.i.l.bf16 %v3013_v17  ;;  %v3048_v6 = vpop.permute.xlu2 %3047 }
  0x90   : > { %v3050_v14 = vunpack.i.h.bf16 %v3048_v6  ;;  %v3049_v15 = vunpack.i.l.bf16 %v3048_v6 }
  0x91   : > { %v373_v26 = vsel %vm5690_vm1, %v3009_v20, %v3010_v19  ;;  %v374_v27 = vsel %vm5690_vm1, %v3010_v19, %v371_v12  ;;  %v360_v34 = vsel %vm5710_vm4, %v3014_v25, %v3015_v24  ;;  %v361_v39 = vsel %vm5710_vm4, %v3015_v24, %v358_v11  ;;  %vm4067_vm1 = vmpackc.low %vm3989_vm8, %vm3973_vm3  ;;  %v2981_v25 = vld [vmem:[%s5684_s1] sm:$0xff] }
  0x92   : > { %v377_v29 = vsel %vm3969_vm2, %v373_v26, 0.0  ;;  %v378_v30 = vsel %vm3973_vm3, %v374_v27, 0.0  ;;  %v2634_v51 = vpack.c.bf16 %v397_v35, %v360_v34  ;;  %v2648_v52 = vpack.c.bf16 %v398_v48, %v361_v39  ;;  %v4102_v35 = vld [vmem:[#allocation2 + $0x58] sm:$0xff] }
  0x93   : > { %v409_v31 = vpack.c.bf16 %v377_v29, %v377_v29  ;;  %v410_v32 = vpack.c.bf16 %v378_v30, %v378_v30  ;;  %v5761_v11 = vmov 0 }
  0x94   : > { %v5762_v11 = vsel %vm4067_vm1, 4294967295, %v5761_v11 }
  0x95   : > { %v450_v37 = vsel %vm5689_vm6, %v409_v31, 0  ;;  %v453_v38 = vsel %vm5689_vm6, %v410_v32, 0  ;;  %vm5708_vm6 = vcmask 7168   ;;  %5763 = vst [vmem:[#allocation8_spill] sm:$0xff] %v5762_v11  ;;  %v2982_v31 = vld [vmem:[%s5684_s1 + $0x8] sm:$0xff]  ;;  %v4096_v32 = vld [vmem:[#allocation2 + $0x38] sm:$0xff] }
  0x96   : > { %v345_v43 = vpop.permute.xlu1 %344  ;;  %v3023_v44 = vpop.permute.xlu0 %3022  ;;  %458 = vmatpush.bf16.msra.mxu0 %v450_v37  ;;  %477 = vmatpush.bf16.msra.mxu1 %v453_v38  ;;  %v4100_v34 = vpack.i.bf16 %v4096_v32, %v3929_v1  ;;  %v4104_v37 = vld [vmem:[#allocation2 + $0x78] sm:$0xff] }
  0x97   : > { %v3025_v46 = vunpack.i.h.bf16 %v3023_v44  ;;  %v3024_v47 = vunpack.i.l.bf16 %v3023_v44  ;;  %v4110_v38 = vpack.i.bf16 %v4104_v37, %v4102_v35 }
  0x98   : > { %3060 = vrot.lane.b32.xlu2 %v4100_v34, %s3866_s26 }
  0x99   : > { %v347_v53 = vsel %vm5691_vm11, %v3024_v47, %v3025_v46  ;;  %v348_v54 = vsel %vm5691_vm11, %v3025_v46, %v345_v43  ;;  %vm5713_vm11 = vcmask 130048   ;;  %3065 = vrot.lane.b32.xlu0 %v4110_v38, %s3864_s24 }
  0x9a   : > { %2635 = vmatpush.bf16.msk.msra.mxu0 %vm4007_vm10, %v2634_v51  ;;  %2649 = vmatpush.bf16.msk.msra.mxu1 %vm4015_vm12, %v2648_v52  ;;  %v2637_v57 = vpack.c.bf16 %v347_v53, %v3938_v2  ;;  %v2651_v58 = vpack.c.bf16 %v348_v54, %v3941_v3  ;;  %v281_v3 = vld [vmem:[%s5685_s2 + $0x8] sm:$0xff]  ;;  %v386_v20 = vsel %vm5713_vm11, %v3049_v15, %v3050_v14 }
  0x9b   : > { %418 = vperm.xlu1 %3051, %v281_v3  }
  0x9e   : > { %v3033_v62 = vpop.permute.xlu1 %3032  ;;  %v317_v63 = vpop.permute.xlu0 %316  ;;  %2638 = vmatpush.bf16.msk.msra.mxu0 %vm4028_vm13, %v2637_v57  ;;  %2652 = vmatpush.bf16.msk.msra.mxu1 %vm4035_vm14, %v2651_v58 }
  0x9f   : > { %v3035_v4 = vunpack.i.h.bf16 %v3033_v62  ;;  %v3034_v2 = vunpack.i.l.bf16 %v3033_v62  ;;  %v320_v8 = vsel %vm5692_vm15, %v3030_v59, %v317_v63  ;;  %vm5706_vm15 = vcmask 588800  }
  0xa0   : > { %3070 = vrot.lane.b32.xlu2 %v4100_v34, %s3864_s24 }
  0xa1   : > { %v333_v7 = vsel %vm5708_vm6, %v3035_v4, %v3039_v61  ;;  %v332_v10 = vsel %vm5708_vm6, %v3034_v2, %v3035_v4 }
  0xa2   : > { %v2654_v12 = vpack.c.bf16 %v333_v7, %v320_v8  ;;  %v2640_v13 = vpack.c.bf16 %v332_v10, %v319_v9  ;;  %v429_v7 = vpop.permute.xlu2 %428 }
  0xa3   : > { %3055 = vrot.lane.b32.xlu1 %v4110_v38, %s3866_s26 }
  0xa4   : > { %2641 = vmatpush.bf16.msk.msra.mxu0 %vm4055_vm9, %v2640_v13  ;;  %2655 = vmatpush.bf16.msk.msra.mxu1 %vm4067_vm1, %v2654_v12 }
  0xa6   : > { %v3043_v17 = vpop.permute.xlu0 %3042  ;;  %v301_v26 = vpop.permute.xlu1 %300 }
  0xa7   : > { %v3045_v18 = vunpack.i.h.bf16 %v3043_v17  ;;  %v3044_v19 = vunpack.i.l.bf16 %v3043_v17 }
  0xa9   : > { %v302_v23 = vsel %vm5707_vm0, %v3044_v19, %v3045_v18  ;;  %v303_v28 = vsel %vm5707_vm0, %v3045_v18, %v301_v26  ;;  %vm4331_vm0 = vmpackc.low %vm3989_vm8, %vm3989_vm8 }
  0xaa   : > { %v2643_v24 = vpack.c.bf16 %v386_v20, %v302_v23  ;;  %vm4383_vm8 = vmpackc.low %vm3969_vm2, %vm3969_vm2 }
  0xac   : > { %2644 = vmatpush.bf16.msk.msra.mxu0 %vm4007_vm10, %v2643_v24 }
  0xae   : > { %v384_v27 = vpop.permute.xlu0 %383  ;;  %v424_v39 = vpop.permute.xlu1 %423 }
  0xaf   : > { %v387_v29 = vsel %vm5713_vm11, %v3050_v14, %v384_v27  ;;  %2645 = vmatmul.msk.bf16.vlgmr.msra.gmra.mxu0 %vm5706_vm15, %v2981_v25 }
  0xb0   : > { %v2657_v30 = vpack.c.bf16 %v387_v29, %v303_v28 }
  0xb2   : > { %2658 = vmatpush.bf16.msk.msra.mxu1 %vm4015_vm12, %v2657_v30 }
  0xb5   : > { %2659 = vmatmul.msk.bf16.vlgmr.msra.gmra.mxu1 %vm5706_vm15, %v2981_v25 }
  0xb6   : > { %v414_v41 = vpop.permute.xlu0 %413 }
  0xbf   : > { %2646 = vmatmul.msk.bf16.gmra.mxu0 %vm5706_vm15, %v2982_v31 }
  0xc5   : > { %2660 = vmatmul.msk.bf16.gmra.mxu1 %vm5706_vm15, %v2982_v31  ;;  %vm4322_vm15 = vmpackc.low %vm3983_vm7, %vm3983_vm7  ;;  %vm5771_vm7 = vcmask 121856  }
 0x10d   : > { %v419_v48 = vpop.permute.xlu1 %418 }
 0x12c   : > { %v464_v42 = vpop.f32.mrf.mxu0 }
 0x12d   : > { %v465_v43 = vadd.f32 %v464_v42, %v414_v41 }
 0x12f   : > { %v4118_v44 = vmax.f32 %v465_v43, 0.0 }
 0x131   : > { %v3074_v46 = vpack.i.bf16 0.0, %v4118_v44  ;;  %v3104_v58 = vpack.i.bf16 %v4118_v44, %v3863_v0 }
 0x132   : > { %v483_v47 = vpop.f32.mrf.mxu1 }
 0x133   : > { %v484_v50 = vadd.f32 %v483_v47, %v414_v41  ;;  %3075 = vrot.lane.b32.xlu1 %v3074_v46, %s3869_s29  ;;  %v4228_v46 = vpop.permute.xlu1 %3055 }
 0x134   : > { %v466_v51 = vpop.f32.mrf.mxu0 }
 0x135   : > { %v4122_v52 = vmax.f32 %v484_v50, 0.0  ;;  %v467_v53 = vadd.f32 %v466_v51, %v419_v48 }
 0x137   : > { %5764 = vst [vmem:[#allocation9_spill] sm:$0xff] %v4122_v52  ;;  %v4124_v54 = vmax.f32 %v467_v53, 0.0  ;;  %v4128_v57 = vpack.i.bf16 %v4122_v52, %v4118_v44 }
 0x139   : > { %3090 = vrot.lane.b32.xlu2 %v4128_v57, %s3864_s24  ;;  %3080 = vrot.lane.b32.xlu0 %v4128_v57, %s3866_s26  ;;  %v3114_v14 = vpack.i.bf16 %v4124_v54, %v3863_v0 }
 0x13a   : > { %v485_v60 = vpop.f32.mrf.mxu1 }
 0x13b   : > { %v486_v61 = vadd.f32 %v485_v60, %v419_v48  ;;  %3105 = vrot.lane.b32.xlu1 %v3104_v58, %s3870_s30  ;;  %v3269_v48 = vpack.i.bf16 %v4124_v54, %v3929_v1 }
 0x13c   : > { %v469_v62 = vpop.f32.mrf.mxu0 }
 0x13d   : > { %v4139_v63 = vmax.f32 %v486_v61, 0.0  ;;  %v470_v8 = vadd.f32 %v469_v62, %v424_v39 }
 0x13f   : > { %v3279_v4 = vpack.i.bf16 %v4096_v32, %v4139_v63  ;;  %v3109_v3 = vpack.i.bf16 %v4139_v63, %v4124_v54  ;;  %v4152_v13 = vmax.f32 %v470_v8, 0.0  ;;  %v3139_v25 = vpack.i.bf16 %v4139_v63, %v4122_v52 }
 0x141   : > { %3100 = vrot.lane.b32.xlu2 %v3104_v58, %s3871_s6  ;;  %3085 = vrot.lane.b32.xlu0 %v3104_v58, %s3868_s28  ;;  %v3144_v24 = vpack.i.bf16 0.0, %v4152_v13  ;;  %v3174_v27 = vpack.i.bf16 %v4152_v13, %v3863_v0 }
 0x142   : > { %v488_v6 = vpop.f32.mrf.mxu1 }
 0x143   : > { %3110 = vrot.lane.b32.xlu1 %v3109_v3, %s3866_s26  ;;  %v489_v15 = vadd.f32 %v488_v6, %v424_v39  ;;  %v4202_v39 = vpop.permute.xlu2 %3060 }
 0x144   : > { %v471_v9 = vpop.f32.mrf.mxu0 }
 0x145   : > { %v472_v10 = vadd.f32 %v471_v9, %v429_v7  ;;  %v4165_v20 = vmax.f32 %v489_v15, 0.0 }
 0x147   : > { %v4150_v12 = vmax.f32 %v472_v10, 0.0  ;;  %v3149_v26 = vpack.i.bf16 %v4165_v20, %v4152_v13  ;;  %v3154_v28 = vpack.i.bf16 %v4165_v20, %v4124_v54 }
 0x149   : > { %642 = vrot.lane.b32.xlu2 %v4139_v63, %s3869_s29  ;;  %3095 = vrot.lane.b32.xlu0 %v4128_v57, %s3867_s27  ;;  %v3184_v30 = vpack.i.bf16 0.0, %v4150_v12  ;;  %v3199_v31 = vpack.i.bf16 %v4150_v12, %v3863_v0  ;;  %v3259_v47 = vpack.i.bf16 %v4150_v12, %v4102_v35  ;;  %v503_v35 = vld [vmem:[%s5687_s4] sm:$0xff] }
 0x14a   : > { %v490_v16 = vpop.f32.mrf.mxu1 }
 0x14b   : > { %v491_v18 = vadd.f32 %v490_v16, %v429_v7  ;;  %3115 = vrot.lane.b32.xlu1 %v3114_v14, %s3868_s28 }
 0x14d   : > { %v4163_v19 = vmax.f32 %v491_v18, 0.0 }
 0x14f   : > { %v3194_v29 = vpack.i.bf16 %v4163_v19, %v4150_v12  ;;  %v3219_v41 = vpack.i.bf16 %v4122_v52, %v4163_v19  ;;  %v3249_v0 = vpack.i.bf16 %v4163_v19, %v4165_v20  ;;  %v3264_v42 = vpack.i.bf16 %v4104_v37, %v4163_v19  ;;  %v4236_v37 = vpop.permute.xlu0 %3065 }
 0x151   : > { %3135 = vrot.lane.b32.xlu2 %v3114_v14, %s3870_s30  ;;  %3120 = vrot.lane.b32.xlu0 %v3109_v3, %s3864_s24 }
 0x153   : > { %3125 = vrot.lane.b32.xlu1 %v3109_v3, %s3867_s27 }
 0x159   : > { %3145 = vrot.lane.b32.xlu2 %v3144_v24, %s3869_s29  ;;  %3130 = vrot.lane.b32.xlu0 %v3114_v14, %s3871_s6 }
 0x15b   : > { %3140 = vrot.lane.b32.xlu1 %v3139_v25, %s3868_s28 }
 0x161   : > { %3150 = vrot.lane.b32.xlu2 %v3149_v26, %s3866_s26  ;;  %3175 = vrot.lane.b32.xlu0 %v3174_v27, %s3871_s6 }
 0x163   : > { %3165 = vrot.lane.b32.xlu1 %v3149_v26, %s3864_s24 }
 0x169   : > { %3155 = vrot.lane.b32.xlu2 %v3154_v28, %s3869_s29  ;;  %3180 = vrot.lane.b32.xlu0 %v3174_v27, %s3870_s30  ;;  %v3063_v28 = vunpack.i.h.bf16 %v4202_v39 }
 0x16b   : > { %3170 = vrot.lane.b32.xlu1 %v3149_v26, %s3867_s27 }
 0x171   : > { %3160 = vrot.lane.b32.xlu2 %v3174_v27, %s3868_s28  ;;  %3195 = vrot.lane.b32.xlu0 %v3194_v29, %s3866_s26  ;;  %v3040_v27 = vunpack.i.h.bf16 %v3996_v40 }
 0x173   : > { %3185 = vrot.lane.b32.xlu1 %v3184_v30, %s3869_s29  ;;  %v3062_v30 = vunpack.i.l.bf16 %v4202_v39 }
 0x179   : > { %3205 = vrot.lane.b32.xlu2 %v3194_v29, %s3864_s24  ;;  %3200 = vrot.lane.b32.xlu0 %v3199_v31, %s3868_s28 }
 0x17b   : > { %3190 = vrot.lane.b32.xlu1 %v4110_v38, %s3867_s27  ;;  %v4214_v38 = vpop.permute.xlu2 %3070 }
 0x181   : > { %3210 = vrot.lane.b32.xlu2 %v3194_v29, %s3867_s27  ;;  %3230 = vrot.lane.b32.xlu0 %v4100_v34, %s3867_s27  ;;  %v3072_v29 = vunpack.i.l.bf16 %v4214_v38 }
 0x183   : > { %3215 = vrot.lane.b32.xlu1 %v3199_v31, %s3871_s6 }
 0x189   : > { %3220 = vrot.lane.b32.xlu2 %v3219_v41, %s3869_s29  ;;  %3250 = vrot.lane.b32.xlu0 %v3249_v0, %s3868_s28 }
 0x18b   : > { %3235 = vrot.lane.b32.xlu1 %v3199_v31, %s3870_s30 }
 0x191   : > { %3225 = vrot.lane.b32.xlu2 %v3139_v25, %s3871_s6  ;;  %3255 = vrot.lane.b32.xlu0 %v3249_v0, %s3871_s6 }
 0x193   : > { %v3091_v34 = vpop.permute.xlu2 %3090  ;;  %3240 = vrot.lane.b32.xlu1 %v3149_v26, %s3865_s25 }
 0x194   : > { %v3093_v18 = vunpack.i.h.bf16 %v3091_v34  ;;  %v3092_v24 = vunpack.i.l.bf16 %v3091_v34  ;;  %v3058_v34 = vunpack.i.h.bf16 %v4228_v46 }
 0x196   : > { %v4297_v39 = vsel %vm5710_vm4, %v3092_v24, %v3093_v18  ;;  %v4303_v31 = vsel %vm5710_vm4, %v3093_v18, %v3072_v29 }
 0x199   : > { %3245 = vrot.lane.b32.xlu2 %v4128_v57, %s3865_s25  ;;  %3265 = vrot.lane.b32.xlu0 %v3264_v42, %s3865_s25 }
 0x19b   : > { %v4225_v43 = vpop.permute.xlu2 %3100  ;;  %3275 = vrot.lane.b32.xlu1 %v3249_v0, %s3870_s30 }
 0x1a1   : > { %3260 = vrot.lane.b32.xlu2 %v3259_v47, %s3865_s25  ;;  %3270 = vrot.lane.b32.xlu0 %v3269_v48, %s3865_s25  ;;  %v3057_v47 = vunpack.i.l.bf16 %v4228_v46 }
 0x1a3   : > { %v4238_v50 = vpop.permute.xlu2 %642  ;;  %3280 = vrot.lane.b32.xlu1 %v3279_v4, %s3865_s25 }
 0x1a5   : > { %v4244_v51 = vpop.permute.xlu1 %3075 }
 0x1a6   : > { %v3078_v17 = vunpack.i.h.bf16 %v4244_v51  ;;  %v3077_v11 = vunpack.i.l.bf16 %v4244_v51 }
 0x1a9   : > { %3285 = vrot.lane.b32.xlu2 %v3139_v25, %s3870_s30  ;;  %950 = vperm.xlu0 %3053, %v503_v35  }
 0x1ab   : > { %v4250_v1 = vpop.permute.xlu2 %3135  ;;  %v3081_v53 = vpop.permute.xlu0 %3080 }
 0x1ac   : > { %v3083_v48 = vunpack.i.h.bf16 %v3081_v53  ;;  %v3082_v35 = vunpack.i.l.bf16 %v3081_v53 }
 0x1ad   : > { %v4252_v57 = vpop.permute.xlu1 %3105 }
 0x1ae   : > { %v896_v5 = vsel %vm5709_vm5, %v3082_v35, %v3083_v48  ;;  %v897_v23 = vsel %vm5709_vm5, %v3083_v48, %v3062_v30 }
 0x1b3   : > { %v4254_v58 = vpop.permute.xlu2 %3145  ;;  %v4256_v60 = vpop.permute.xlu0 %3085 }
 0x1b4   : > { %v3147_v59 = vunpack.i.l.bf16 %v4254_v58  ;;  %v3148_v24 = vunpack.i.h.bf16 %v4254_v58 }
 0x1b5   : > { %v3111_v32 = vpop.permute.xlu1 %3110 }
 0x1b6   : > { %v3113_v41 = vunpack.i.h.bf16 %v3111_v32  ;;  %v3112_v0 = vunpack.i.l.bf16 %v3111_v32 }
 0x1b8   : > { %v898_v40 = vsel %vm5709_vm5, %v3112_v0, %v3113_v41  ;;  %v899_v2 = vsel %vm5709_vm5, %v3113_v41, %v3063_v28  ;;  %v660_v0 = vsel %vm5708_vm6, %v3040_v27, %v3147_v59  ;;  %v5765_v27 = vmov 0 }
 0x1b9   : > { %v940_v41 = vpack.c.bf16 %v898_v40, %v896_v5  ;;  %v941_v51 = vpack.c.bf16 %v899_v2, %v897_v23  ;;  %v5766_v27 = vsel %vm4322_vm15, 4294967295, %v5765_v27 }
 0x1bb   : > { %v3151_v61 = vpop.permute.xlu2 %3150  ;;  %v4258_v62 = vpop.permute.xlu0 %3095 }
 0x1bc   : > { %v3153_v46 = vunpack.i.h.bf16 %v3151_v61  ;;  %v3152_v53 = vunpack.i.l.bf16 %v3151_v61 }
 0x1bd   : > { %v4260_v4 = vpop.permute.xlu1 %3115 }
 0x1be   : > { %v900_v35 = vsel %vm5709_vm5, %v3152_v53, %v3153_v46  ;;  %v901_v30 = vsel %vm5709_vm5, %v3153_v46, %v3057_v47 }
 0x1c3   : > { %v4262_v3 = vpop.permute.xlu2 %3155  ;;  %v4264_v6 = vpop.permute.xlu0 %3120 }
 0x1c4   : > { %v3158_v18 = vunpack.i.h.bf16 %v4262_v3  ;;  %v3157_v5 = vunpack.i.l.bf16 %v4262_v3 }
 0x1c5   : > { %v4266_v7 = vpop.permute.xlu1 %3125 }
 0x1c6   : > { %v661_v40 = vsel %vm5708_vm6, %v3147_v59, %v3158_v18 }
 0x1cb   : > { %v4268_v8 = vpop.permute.xlu2 %3160  ;;  %v4270_v9 = vpop.permute.xlu0 %3130 }
 0x1cd   : > { %v4272_v10 = vpop.permute.xlu1 %3140 }
 0x1d3   : > { %v4274_v14 = vpop.permute.xlu2 %3205  ;;  %v4276_v15 = vpop.permute.xlu0 %3175 }
 0x1d4   : > { %v3208_v3 = vunpack.i.h.bf16 %v4274_v14  ;;  %v3207_v46 = vunpack.i.l.bf16 %v4274_v14  ;;  %v659_v14 = vsel %vm5708_vm6, %v3157_v5, %v4238_v50 }
 0x1d5   : > { %v4278_v16 = vpop.permute.xlu1 %3165 }
 0x1d6   : > { %v3168_v33 = vunpack.i.h.bf16 %v4278_v16 }
 0x1db   : > { %v4280_v25 = vpop.permute.xlu2 %3210  ;;  %v4282_v26 = vpop.permute.xlu0 %3180 }
 0x1dd   : > { %v4289_v42 = vpop.permute.xlu1 %3170 }
 0x1e3   : > { %v3221_v29 = vpop.permute.xlu2 %3220  ;;  %v3196_v61 = vpop.permute.xlu0 %3195 }
 0x1e4   : > { %v3198_v55 = vunpack.i.h.bf16 %v3196_v61  ;;  %v3197_v28 = vunpack.i.l.bf16 %v3196_v61  ;;  %v3223_v49 = vunpack.i.h.bf16 %v3221_v29  ;;  %v3222_v58 = vunpack.i.l.bf16 %v3221_v29 }
 0x1e5   : > { %v3186_v45 = vpop.permute.xlu1 %3185 }
 0x1e6   : > { %v3188_v48 = vunpack.i.h.bf16 %v3186_v45  ;;  %v3187_v32 = vunpack.i.l.bf16 %v3186_v45  ;;  %v902_v56 = vsel %vm5709_vm5, %v3197_v28, %v3198_v55  ;;  %v903_v52 = vsel %vm5709_vm5, %v3198_v55, %v3058_v34 }
 0x1e7   : > { %v942_v2 = vpack.c.bf16 %v902_v56, %v900_v35  ;;  %v943_v23 = vpack.c.bf16 %v903_v52, %v901_v30  ;;  %v3167_v55 = vunpack.i.l.bf16 %v4278_v16  ;;  %v3123_v56 = vunpack.i.h.bf16 %v4264_v6 }
 0x1e8   : > { %v662_v34 = vsel %vm5708_vm6, %v3148_v24, %v3187_v32  ;;  %v663_v47 = vsel %vm5708_vm6, %v3187_v32, %v3222_v58  ;;  %v3122_v52 = vunpack.i.l.bf16 %v4264_v6  ;;  %v656_v53 = vsel %vm5708_vm6, %v3188_v48, %v3077_v11 }
 0x1e9   : > { %980 = vmatpush.bf16.msra.mxu3 %v942_v2  ;;  %1019 = vmatpush.bf16.msrb.mxu1 %v943_v23  ;;  %v2662_v36 = vpack.c.bf16 %v662_v34, %v660_v0  ;;  %v2699_v59 = vpack.c.bf16 %v663_v47, %v661_v40  ;;  %v657_v16 = vsel %vm5708_vm6, %v3077_v11, %v3223_v49  ;;  %v3163_v24 = vunpack.i.h.bf16 %v4268_v8 }
 0x1ea   : > { %v3162_v32 = vunpack.i.l.bf16 %v4268_v8  ;;  %v658_v6 = vsel %vm5708_vm6, %v3078_v17, %v3157_v5  ;;  %v764_v61 = vsel %vm5710_vm4, %v3167_v55, %v3168_v33  ;;  %v5769_v0 = vunpack.i.l.bf16 %v4236_v37  ;;  %vm5777_vm6 = vmmov %vm5771_vm7 }
 0x1eb   : > { %v4347_v18 = vpop.permute.xlu0 %3200  ;;  %2663 = vmatpush.bf16.msk.msra.mxu2 %vm4322_vm15, %v2662_v36  ;;  %2700 = vmatpush.bf16.msk.msrb.mxu0 %vm4331_vm0, %v2699_v59  ;;  %v4356_v29 = vpop.permute.xlu2 %3225  ;;  %v3118_v58 = vunpack.i.h.bf16 %v4260_v4  ;;  %v3117_v35 = vunpack.i.l.bf16 %v4260_v4  ;;  %v2665_v50 = vpack.c.bf16 %v658_v6, %v656_v53  ;;  %v2702_v30 = vpack.c.bf16 %v659_v14, %v657_v16 }
 0x1ec   : > { %v3203_v49 = vunpack.i.h.bf16 %v4347_v18  ;;  %v3202_v11 = vunpack.i.l.bf16 %v4347_v18  ;;  %v765_v28 = vsel %vm5710_vm4, %v3168_v33, %v5769_v0  ;;  %v766_v48 = vsel %vm5710_vm4, %v3207_v46, %v3208_v3 }
 0x1ed   : > { %v3191_v17 = vpop.permute.xlu1 %3190  ;;  %981 = vmatpush.bf16.msra.mxu3 %v940_v41  ;;  %1020 = vmatpush.bf16.msrb.mxu1 %v941_v51  ;;  %v5770_v5 = vunpack.i.h.bf16 %v4236_v37  ;;  %v762_v40 = vsel %vm5710_vm4, %v3122_v52, %v3123_v56  ;;  %v3173_v33 = vunpack.i.h.bf16 %v4289_v42  ;;  %v3172_v55 = vunpack.i.l.bf16 %v4289_v42 }
 0x1ee   : > { %v614_v23 = vsel %vm5771_vm7, %v3202_v11, %v3203_v49  ;;  %v2680_v41 = vpack.c.bf16 %v766_v48, %v764_v61  ;;  %v3193_v34 = vunpack.i.h.bf16 %v3191_v17  ;;  %v3192_v47 = vunpack.i.l.bf16 %v3191_v17 }
 0x1ef   : > { %v767_v2 = vsel %vm5710_vm4, %v3208_v3, %v5770_v5  ;;  %2666 = vmatpush.bf16.msk.msra.mxu2 %vm4322_vm15, %v2665_v50  ;;  %2703 = vmatpush.bf16.msk.msrb.mxu0 %vm4331_vm0, %v2702_v30  ;;  %v612_v42 = vsel %vm5771_vm7, %v3162_v32, %v3163_v24  ;;  %v5774_v52 = vunpack.i.h.bf16 %v4214_v38  ;;  %v3128_v59 = vunpack.i.h.bf16 %v4266_v7  ;;  %vm5778_vm7 = vmmov %vm5777_vm6 }
 0x1f0   : > { %v2717_v37 = vpack.c.bf16 %v767_v2, %v765_v28  ;;  %v2668_v3 = vpack.c.bf16 %v614_v23, %v612_v42  ;;  %v5775_v46 = vunpack.i.h.bf16 %v4256_v60  ;;  %v5776_v53 = vunpack.i.l.bf16 %v4256_v60 }
 0x1f1   : > { %v763_v36 = vsel %vm5710_vm4, %v3123_v56, %v5774_v52  ;;  %2681 = vmatpush.bf16.msk.msra.mxu3 %vm4322_vm15, %v2680_v41  ;;  %v610_v38 = vsel %vm5778_vm7, %v3117_v35, %v3118_v58  ;;  %v3127_v56 = vunpack.i.l.bf16 %v4266_v7  ;;  %v3213_v32 = vunpack.i.h.bf16 %v4280_v25 }
 0x1f2   : > { %2718 = vmatpush.bf16.msk.msrb.mxu1 %vm4331_vm0, %v2717_v37  ;;  %v608_v16 = vsel %vm5777_vm6, %v5776_v53, %v5775_v46  ;;  %v3212_v6 = vunpack.i.l.bf16 %v4280_v25  ;;  %v2683_v14 = vpack.c.bf16 %v762_v40, %v4297_v39  ;;  %v3178_v11 = vunpack.i.h.bf16 %v4276_v15 }
 0x1f3   : > { %v3177_v61 = vunpack.i.l.bf16 %v4276_v15  ;;  %v3231_v0 = vpop.permute.xlu0 %3230  ;;  %2669 = vmatpush.bf16.msk.msra.mxu2 %vm4383_vm8, %v2668_v3  ;;  %v2720_v28 = vpack.c.bf16 %v763_v36, %v4303_v31  ;;  %vm5779_vm6 = vcmask 1039360   ;;  %v3098_v39 = vunpack.i.h.bf16 %v4258_v62  ;;  %v4435_v23 = vpop.permute.xlu2 %3245 }
 0x1f4   : > { %v716_v35 = vsel %vm5779_vm6, %v3172_v55, %v3173_v33  ;;  %v3233_v17 = vunpack.i.h.bf16 %v3231_v0  ;;  %v3232_v7 = vunpack.i.l.bf16 %v3231_v0  ;;  %vm5780_vm7 = vmmov %vm5779_vm6  ;;  %v3097_v30 = vunpack.i.l.bf16 %v4258_v62 }
 0x1f5   : > { %v717_v50 = vsel %vm5780_vm7, %v3173_v33, %v3192_v47  ;;  %vm5781_vm5 = vmmov %vm5779_vm6  ;;  %v3133_v48 = vunpack.i.h.bf16 %v4270_v9  ;;  %v4421_v5 = vpop.permute.xlu1 %3215  ;;  %2684 = vmatpush.bf16.msk.msra.mxu3 %vm4322_vm15, %v2683_v14  ;;  %v2671_v31 = vpack.c.bf16 %v610_v38, %v608_v16  ;;  %v3132_v62 = vunpack.i.l.bf16 %v4270_v9 }
 0x1f6   : > { %v719_v25 = vsel %vm5781_vm5, %v3213_v32, %v3193_v34  ;;  %2721 = vmatpush.bf16.msk.msrb.mxu1 %vm4331_vm0, %v2720_v28  ;;  %vm4430_vm6 = vmpackc.low %vm3973_vm3, %vm3973_vm3  ;;  %v3218_v40 = vunpack.i.h.bf16 %v4421_v5  ;;  %v3217_v33 = vunpack.i.l.bf16 %v4421_v5  ;;  %v718_v55 = vsel %vm5781_vm5, %v3212_v6, %v3213_v32 }
 0x1f7   : > { %2672 = vmatpush.bf16.msk.msra.mxu2 %vm4383_vm8, %v2671_v31  ;;  %v2686_v41 = vpack.c.bf16 %v718_v55, %v716_v35  ;;  %v2723_v37 = vpack.c.bf16 %v719_v25, %v717_v50  ;;  %vm5784_vm7 = vmmov %vm5781_vm5  ;;  %v860_v47 = vsel %vm5713_vm11, %v3177_v61, %v3178_v11  ;;  %v5788_v53 = vunpack.i.h.bf16 %v4225_v43 }
 0x1f8   : > { %v714_v34 = vsel %vm5784_vm7, %v3127_v56, %v3128_v59  ;;  %v862_v42 = vsel %vm5713_vm11, %v3217_v33, %v3218_v40  ;;  %vm5785_vm4 = vmmov %vm5781_vm5  ;;  %v5789_v16 = vunpack.i.l.bf16 %v4225_v43  ;;  %v858_v56 = vsel %vm5713_vm11, %v3132_v62, %v3133_v48 }
 0x1f9   : > { %v713_v52 = vsel %vm5785_vm4, %v3098_v39, %v3232_v7  ;;  %vm5786_vm1 = vmmov %vm5785_vm4  ;;  %2687 = vmatpush.bf16.msk.msra.mxu3 %vm4383_vm8, %v2686_v41  ;;  %v918_v3 = vpack.c.bf16 %v862_v42, %v860_v47  ;;  %v3142_v32 = vunpack.i.l.bf16 %v4272_v10  ;;  %v3183_v0 = vunpack.i.h.bf16 %v4282_v26  ;;  %v501_v7 = vld [vmem:[%s5686_s3] sm:$0xff] }
 0x1fa   : > { %v715_v36 = vsel %vm5786_vm1, %v3128_v59, %v3233_v17  ;;  %2724 = vmatpush.bf16.msk.msrb.mxu1 %vm4430_vm6, %v2723_v37  ;;  %vm5787_vm5 = vmmov %vm5786_vm1  ;;  %v856_v38 = vsel %vm5713_vm11, %v5789_v16, %v5788_v53  ;;  %v3143_v59 = vunpack.i.h.bf16 %v4272_v10  ;;  %v3182_v28 = vunpack.i.l.bf16 %v4282_v26 }
 0x1fb   : > { %v712_v46 = vsel %vm5787_vm5, %v3097_v30, %v3098_v39  ;;  %v3251_v6 = vpop.permute.xlu0 %3250  ;;  %971 = vmatpush.bf16.msra.mxu2 %v918_v3  ;;  %v2726_v61 = vpack.c.bf16 %v715_v36, %v713_v52  ;;  %v3108_v50 = vunpack.i.h.bf16 %v4252_v57  ;;  %v3107_v25 = vunpack.i.l.bf16 %v4252_v57  ;;  %v3261_v47 = vpop.permute.xlu2 %3260 }
 0x1fc   : > { %v2689_v14 = vpack.c.bf16 %v714_v34, %v712_v46  ;;  %v3253_v35 = vunpack.i.h.bf16 %v3251_v6  ;;  %v3252_v17 = vunpack.i.l.bf16 %v3251_v6  ;;  %v916_v10 = vpack.c.bf16 %v858_v56, %v856_v38 }
 0x1fd   : > { %v4473_v39 = vpop.permute.xlu1 %3235  ;;  %vm5790_vm1 = vcmask 121856   ;;  %v3138_v55 = vunpack.i.h.bf16 %v4250_v1  ;;  %v3137_v41 = vunpack.i.l.bf16 %v4250_v1  ;;  %v956_v34 = vunpack.c.h.b16 %v501_v7 }
 0x1fe   : > { %2690 = vmatpush.bf16.msk.msra.mxu3 %vm4383_vm8, %v2689_v14  ;;  %2727 = vmatpush.bf16.msk.msrb.mxu1 %vm4430_vm6, %v2726_v61  ;;  %v3238_v30 = vunpack.i.h.bf16 %v4473_v39  ;;  %v3237_v31 = vunpack.i.l.bf16 %v4473_v39  ;;  %v613_v62 = vsel %vm5790_vm1, %v3163_v24, %v3252_v17  ;;  %vm5791_vm4 = vmmov %vm5790_vm1  ;;  %vm5792_vm7 = vcmask 138240   ;;  %v502_v39 = vld [vmem:[%s5686_s3 + $0x8] sm:$0xf] }
 0x1ff   : > { %v615_v33 = vsel %vm5791_vm4, %v3203_v49, %v3253_v35  ;;  %972 = vmatpush.bf16.msra.mxu2 %v916_v10  ;;  %v564_v42 = vsel %vm5792_vm7, %v3182_v28, %v3183_v0  ;;  %vm5793_vm5 = vmmov %vm5792_vm7  ;;  %v5794_v24 = vunpack.i.h.bf16 %v4256_v60  ;;  %v5796_v52 = vpack.c.bf16 %v4150_v12, %v4152_v13 }
 0x200   : > { %v2705_v37 = vpack.c.bf16 %v615_v33, %v613_v62  ;;  %v566_v8 = vsel %vm5793_vm5, %v3237_v31, %v3238_v30  ;;  %vm5795_vm4 = vmmov %vm5790_vm1  ;;  %v5797_v3 = vpack.c.bf16 %v4163_v19, %v4165_v20  ;;  %v955_v46 = vunpack.c.l.b16 %v501_v7 }
 0x201   : > { %v609_v18 = vsel %vm5790_vm1, %v5794_v24, %v3142_v32  ;;  %v611_v49 = vsel %vm5795_vm4, %v3118_v58, %v3143_v59  ;;  %v2674_v36 = vpack.c.bf16 %v566_v8, %v564_v42  ;;  %vm5798_vm7 = vmmov %vm5793_vm5  ;;  %v562_v12 = vsel %vm5793_vm5, %v3137_v41, %v3138_v55  ;;  %v5800_v32 = vld [vmem:[#allocation9_spill] sm:$0xff] }
 0x202   : > { %986 = vmatpush.bf16.msra.mxu3 %v5796_v52  ;;  %2706 = vmatpush.bf16.msk.msrb.mxu0 %vm4430_vm6, %v2705_v37  ;;  %v560_v60 = vsel %vm5798_vm7, %v3107_v25, %v3108_v50  ;;  %v2708_v58 = vpack.c.bf16 %v611_v49, %v609_v18  ;;  %v959_v13 = vpack.c.b16 %v956_v34, %v956_v34  ;;  %v3228_v53 = vunpack.i.h.bf16 %v4356_v29 }
 0x203   : > { %1025 = vmatpush.bf16.msrb.mxu1 %v5797_v3  ;;  %v3256_v4 = vpop.permute.xlu0 %3255  ;;  %2675 = vmatpush.bf16.msk.msra.mxu2 %vm4322_vm15, %v2674_v36  ;;  %v3227_v19 = vunpack.i.l.bf16 %v4356_v29  ;;  %v5799_v56 = vpack.c.bf16 %v4124_v54, %v4118_v44  ;;  %v2677_v59 = vpack.c.bf16 %v562_v12, %v560_v60  ;;  %v5801_v6 = vpack.c.bf16 %v4139_v63, %v5800_v32  ;;  %v3286_v5 = vpop.permute.xlu2 %3285 }
 0x204   : > { %v3258_v20 = vunpack.i.h.bf16 %v3256_v4  ;;  %v3257_v16 = vunpack.i.l.bf16 %v3256_v4  ;;  %v958_v61 = vpack.c.b16 %v955_v46, %v955_v46  ;;  %v5802_v54 = vunpack.i.h.bf16 %v4225_v43 }
 0x205   : > { %v3241_v38 = vpop.permute.xlu1 %3240  ;;  %v859_v63 = vsel %vm5713_vm11, %v3133_v48, %v3228_v53  ;;  %v3263_v7 = vunpack.i.h.bf16 %v3261_v47  ;;  %v3288_v31 = vunpack.i.h.bf16 %v3286_v5  ;;  %v3287_v43 = vunpack.i.l.bf16 %v3286_v5 }
 0x206   : > { %987 = vmatpush.bf16.msra.mxu3 %v5799_v56  ;;  %2709 = vmatpush.bf16.msk.msrb.mxu0 %vm4430_vm6, %v2708_v58  ;;  %v861_v14 = vsel %vm5713_vm11, %v3178_v11, %v3257_v16  ;;  %v863_v29 = vsel %vm5713_vm11, %v3218_v40, %v3258_v20  ;;  %v857_v28 = vsel %vm5713_vm11, %v5802_v54, %v3227_v19  ;;  %v3243_v15 = vunpack.i.h.bf16 %v3241_v38  ;;  %v4580_v19 = vld [vmem:[#allocation2 + $0x18] sm:$0xff] }
 0x207   : > { %1026 = vmatpush.bf16.msrb.mxu1 %v5801_v6  ;;  %2678 = vmatpush.bf16.msk.msra.mxu2 %vm4322_vm15, %v2677_v59  ;;  %v919_v44 = vpack.c.bf16 %v863_v29, %v861_v14  ;;  %v3242_v11 = vunpack.i.l.bf16 %v3241_v38  ;;  %v3262_v40 = vunpack.i.l.bf16 %v3261_v47  ;;  %v917_v17 = vpack.c.bf16 %v859_v63, %v857_v28 }
 0x208   : > { %vm5803_vm1 = vcmask 908288   ;;  %vm5807_vm11 = vcmask 138240   ;;  %v3247_v52 = vunpack.i.l.bf16 %v4435_v23  ;;  %v957_v46 = vunpack.c.l.b16 %v502_v39  ;;  %1153 = vrot.lane.b32.xlu0 %v4580_v19, %s3866_s26  ;;  %1131 = vrot.lane.b32.xlu2 %v4580_v19, %s3865_s25 }
 0x209   : > { %988 = vmatmul.bf16.vlgmr.msra.gmra.mxu3 %v959_v13  ;;  %v812_v9 = vsel %vm5803_vm1, %v3242_v11, %v3243_v15  ;;  %vm5804_vm4 = vmmov %vm5803_vm1  ;;  %1119 = vrot.lane.b32.xlu1 %v4580_v19, %s3864_s24 }
 0x20a   : > { %1010 = vmatpush.bf16.msrb.mxu0 %v919_v44  ;;  %1027 = vmatmul.bf16.vlgmr.msrb.gmra.mxu1 %v959_v13  ;;  %v813_v48 = vsel %vm5804_vm4, %v3243_v15, %v3262_v40  ;;  %vm5805_vm7 = vmmov %vm5803_vm1  ;;  %v960_v53 = vpack.c.b16 %v957_v46, %v957_v46  ;;  %v3849_v40 = vld [vmem:[%s3927_s23] sm:$0xff] }
 0x20b   : > { %975 = vmatmul.bf16.vlgmr.msra.gmra.mxu2 %v958_v61  ;;  %v3266_v35 = vpop.permute.xlu0 %3265  ;;  %vm5806_vm5 = vmmov %vm5803_vm1 }
 0x20c   : > { %v3268_v25 = vunpack.i.h.bf16 %v3266_v35  ;;  %v3267_v10 = vunpack.i.l.bf16 %v3266_v35  ;;  %vm5808_vm15 = vmmov %vm5807_vm11 }
 0x20d   : > { %v3276_v62 = vpop.permute.xlu1 %3275  ;;  %vm5809_vm1 = vmmov %vm5807_vm11 }
 0x20e   : > { %1011 = vmatpush.bf16.msrb.mxu0 %v917_v17  ;;  %v3278_v33 = vunpack.i.h.bf16 %v3276_v62  ;;  %v3277_v41 = vunpack.i.l.bf16 %v3276_v62  ;;  %v814_v37 = vsel %vm5805_vm7, %v3263_v7, %v3267_v10  ;;  %v815_v34 = vsel %vm5806_vm5, %v3267_v10, %v3268_v25  ;;  %vm5810_vm4 = vmmov %vm5809_vm1  ;;  %v3850_v17 = vld [vmem:[%s3927_s23 + $0x8] sm:$0xff] }
 0x20f   : > { %v2692_v42 = vpack.c.bf16 %v814_v37, %v812_v9  ;;  %v2729_v8 = vpack.c.bf16 %v815_v34, %v813_v48  ;;  %v561_v49 = vsel %vm5809_vm1, %v3108_v50, %v3287_v43  ;;  %v563_v26 = vsel %vm5810_vm4, %v3138_v55, %v3288_v31  ;;  %vm5813_vm7 = vmmov %vm5806_vm5  ;;  %v4601_v43 = vld [vmem:[#allocation2] sm:$0xff]  ;;  %v2741_v48 = vld [vmem:[%s5685_s2 + $0x30] sm:$0xff] }
 0x210   : > { %v565_v47 = vsel %vm5807_vm11, %v3183_v0, %v3277_v41  ;;  %v567_v24 = vsel %vm5808_vm15, %v3238_v30, %v3278_v33  ;;  %v3248_v30 = vunpack.i.h.bf16 %v4435_v23  ;;  %v2714_v3 = vpack.c.bf16 %v563_v26, %v561_v49  ;;  %vm5811_vm11 = vmmov %vm5806_vm5  ;;  %1107 = vrot.lane.b32.xlu2 %v4580_v19, %s3867_s27  ;;  %v2740_v33 = vld [vmem:[%s5685_s2 + $0x28] sm:$0xff]  ;;  %v2742_v41 = vld [vmem:[%s5685_s2 + $0x38] sm:$0xff] }
 0x211   : > { %2693 = vmatpush.bf16.msk.msrb.mxu2 %vm4383_vm8, %v2692_v42  ;;  %2730 = vmatpush.bf16.msk.msrb.mxu3 %vm4430_vm6, %v2729_v8  ;;  %v2711_v18 = vpack.c.bf16 %v567_v24, %v565_v47  ;;  %vm5812_vm15 = vmmov %vm5806_vm5  ;;  %vm5716_vm1 = vcmask 261120   ;;  %v2739_v37 = vld [vmem:[%s5685_s2 + $0x20] sm:$0xff] }
 0x212   : > { %v808_v55 = vsel %vm5811_vm11, %v3247_v52, %v3248_v30  ;;  %vm5814_vm4 = vmmov %vm5806_vm5 }
 0x213   : > { %v3271_v0 = vpop.permute.xlu0 %3270  ;;  %2712 = vmatpush.bf16.msk.msrb.mxu0 %vm4331_vm0, %v2711_v18  ;;  %vm5815_vm11 = vmmov %vm5814_vm4 }
 0x214   : > { %v3272_v36 = vunpack.i.l.bf16 %v3271_v0  ;;  %v3273_v50 = vunpack.i.h.bf16 %v3271_v0 }
 0x215   : > { %v3281_v57 = vpop.permute.xlu1 %3280 }
 0x216   : > { %v3283_v60 = vunpack.i.h.bf16 %v3281_v57  ;;  %v3282_v1 = vunpack.i.l.bf16 %v3281_v57  ;;  %v809_v58 = vsel %vm5813_vm7, %v3248_v30, %v3272_v36 }
 0x217   : > { %2715 = vmatpush.bf16.msk.msrb.mxu0 %vm4331_vm0, %v2714_v3 }
 0x218   : > { %v810_v4 = vsel %vm5812_vm15, %v3273_v50, %v3282_v1  ;;  %v811_v12 = vsel %vm5806_vm5, %v3282_v1, %v3283_v60  ;;  %vm5816_vm15 = vcmask 924672   ;;  %vm5818_vm5 = vcmask 1043456  }
 0x219   : > { %v2695_v13 = vpack.c.bf16 %v810_v4, %v808_v55  ;;  %v2732_v23 = vpack.c.bf16 %v811_v12, %v809_v58  ;;  %vm5817_vm7 = vmmov %vm5816_vm15 }
 0x21a   : > { %1014 = vmatmul.bf16.vlgmr.msrb.gmra.mxu0 %v958_v61 }
 0x21b   : > { %2696 = vmatpush.bf16.msk.msrb.mxu2 %vm4383_vm8, %v2695_v13  ;;  %2733 = vmatpush.bf16.msk.msrb.mxu3 %vm4430_vm6, %v2732_v23  ;;  %v951_v14 = vpop.permute.xlu0 %950 }
 0x21e   : > { %2697 = vmatmul.msk.bf16.vlgmr.msrb.gmra.mxu2 %vm5716_vm1, %v960_v53  ;;  %2734 = vmatmul.msk.bf16.vlgmr.msrb.gmra.mxu3 %vm5716_vm1, %v960_v53 }
 0x262   : > { %v1132_v34 = vpop.permute.xlu2 %1131 }
 0x26a   : > { %v1108_v42 = vpop.permute.xlu2 %1107 }
 0x27a   : > { %v1154_v47 = vpop.permute.xlu0 %1153 }
 0x27b   : > { %v1120_v8 = vpop.permute.xlu1 %1119 }
 0x287   : > { %v1028_v20 = vpop.f32.mrf.mxu1 }
 0x28c   : > { %v989_v16 = vpop.f32.mrf.mxu3 }
 0x28e   : > { %v976_v38 = vpop.f32.mrf.mxu2 }
 0x28f   : > { %v1030_v56 = vpop.f32.mrf.mxu1  ;;  %v977_v29 = vadd.f32 %v976_v38, %v951_v14 }
 0x291   : > { %v990_v28 = vadd.f32 %v989_v16, %v977_v29 }
 0x294   : > { %v991_v59 = vpop.f32.mrf.mxu3 }
 0x296   : > { %v978_v32 = vpop.f32.mrf.mxu2 }
 0x297   : > { %v1015_v6 = vpop.f32.mrf.mxu0 }
 0x298   : > { %v1016_v61 = vadd.f32 %v1015_v6, %v951_v14 }
 0x29a   : > { %v1029_v54 = vadd.f32 %v1028_v20, %v1016_v61 }
 0x29f   : > { %v1017_v44 = vpop.f32.mrf.mxu0 }
 0x2a1   : > { %v1002_v63 = vpop.f32.mrf.mxu2  ;;  %v1041_v15 = vpop.f32.mrf.mxu3 }
 0x2a2   : > { %v1003_v11 = vadd.f32 %v1002_v63, %v990_v28  ;;  %v1042_v5 = vadd.f32 %v1041_v15, %v1029_v54 }
 0x2a4   : > { %v4591_v35 = vadd.f32 %v3849_v40, %v1003_v11  ;;  %v4594_v7 = vadd.f32 %v3850_v17, %v1042_v5 }
 0x2a6   : > { %v3299_v25 = vpack.i.bf16 %v4594_v7, %v4591_v35  ;;  %v3314_v62 = vpack.i.bf16 %v4591_v35, %v4601_v43  ;;  %v3329_v9 = vpack.i.bf16 %v4601_v43, %v4594_v7 }
 0x2a8   : > { %3300 = vrot.lane.b32.xlu2 %v3299_v25, %s3866_s26  ;;  %3295 = vrot.lane.b32.xlu0 %v3299_v25, %s3864_s24 }
 0x2a9   : > { %v1004_v10 = vpop.f32.mrf.mxu2  ;;  %v1043_v31 = vpop.f32.mrf.mxu3  ;;  %3290 = vrot.lane.b32.xlu1 %v3299_v25, %s3865_s25 }
 0x2b0   : > { %3315 = vrot.lane.b32.xlu2 %v3314_v62, %s3869_s29  ;;  %3310 = vrot.lane.b32.xlu0 %v3314_v62, %s3868_s28 }
 0x2b1   : > { %3305 = vrot.lane.b32.xlu1 %v3299_v25, %s3867_s27 }
 0x2b8   : > { %3330 = vrot.lane.b32.xlu2 %v3329_v9, %s3870_s30  ;;  %3320 = vrot.lane.b32.xlu0 %v3329_v9, %s3869_s29 }
 0x2b9   : > { %1081 = vrot.lane.b32.xlu1 %v4594_v7, %s3868_s28 }
 0x2c0   : > { %1181 = vperm.xlu2 %3052, %v2741_v48   ;;  %3335 = vrot.lane.b32.xlu0 %v3314_v62, %s3871_s6 }
 0x2c1   : > { %3325 = vrot.lane.b32.xlu1 %v3314_v62, %s3870_s30 }
 0x2c8   : > { %1176 = vperm.xlu2 %3052, %v2740_v33   ;;  %1186 = vperm.xlu0 %3053, %v2742_v41   ;;  %v5833_v41 = vld [vmem:[#allocation8_spill] sm:$0xff] }
 0x2c9   : > { %1143 = vrot.lane.b32.xlu1 %v4594_v7, %s3871_s6 }
 0x2d1   : > { %1171 = vperm.xlu1 %3051, %v2739_v37  }
 0x302   : > { %v3301_v18 = vpop.permute.xlu2 %3300 }
 0x303   : > { %v3303_v50 = vunpack.i.h.bf16 %v3301_v18  ;;  %v3302_v60 = vunpack.i.l.bf16 %v3301_v18 }
 0x30a   : > { %v3316_v56 = vpop.permute.xlu2 %3315 }
 0x30b   : > { %v3318_v28 = vunpack.i.h.bf16 %v3316_v56  ;;  %v3317_v63 = vunpack.i.l.bf16 %v3316_v56 }
 0x31a   : > { %v3296_v24 = vpop.permute.xlu0 %3295 }
 0x31b   : > { %v3291_v49 = vpop.permute.xlu1 %3290  ;;  %v3298_v39 = vunpack.i.h.bf16 %v3296_v24  ;;  %v3297_v30 = vunpack.i.l.bf16 %v3296_v24 }
 0x31c   : > { %v3293_v26 = vunpack.i.h.bf16 %v3291_v49  ;;  %v3292_v0 = vunpack.i.l.bf16 %v3291_v49 }
 0x31d   : > { %v1122_v55 = vsel %vm5816_vm15, %v3298_v39, %v1120_v8  ;;  %v1121_v4 = vsel %vm5817_vm7, %v3297_v30, %v3298_v39  ;;  %vm5822_vm15 = vcmask 1039360   ;;  %v4679_v30 = vpop.permute.xlu2 %3330 }
 0x31e   : > { %v1134_v52 = vsel %vm5814_vm4, %v3293_v26, %v1132_v34  ;;  %v1133_v36 = vsel %vm5815_vm11, %v3292_v0, %v3293_v26  ;;  %vm5819_vm4 = vmmov %vm5818_vm5  ;;  %vm5820_vm11 = vcmask 916480   ;;  %v4665_v34 = vld [vmem:[#allocation2 + $0x58] sm:$0xff] }
 0x31f   : > { %v1137_v57 = vsel %vm3969_vm2, %v1133_v36, 0.0  ;;  %v1138_v3 = vsel %vm3973_vm3, %v1134_v52, 0.0  ;;  %v1155_v53 = vsel %vm5820_vm11, %v3302_v60, %v3303_v50  ;;  %vm5821_vm1 = vmmov %vm5820_vm11  ;;  %v2983_v36 = vld [vmem:[%s5684_s1 + $0x10] sm:$0xff] }
 0x320   : > { %v1167_v1 = vpack.c.bf16 %v1137_v57, %v1137_v57  ;;  %v1168_v46 = vpack.c.bf16 %v1138_v3, %v1138_v3  ;;  %v1156_v20 = vsel %vm5821_vm1, %v3303_v50, %v1154_v47  ;;  %v2752_v32 = vpack.c.bf16 %v1155_v53, %v1121_v4  ;;  %vm5823_vm7 = vmmov %vm5822_vm15 }
 0x321   : > { %v2766_v59 = vpack.c.bf16 %v1156_v20, %v1122_v55  ;;  %vm5826_vm1 = vcmask 121856   ;;  %v3332_v57 = vunpack.i.l.bf16 %v4679_v30  ;;  %v4698_v55 = vld [vmem:[#allocation2 + $0x38] sm:$0xff] }
 0x322   : > { %v3311_v58 = vpop.permute.xlu0 %3310  ;;  %v1206_v12 = vsel %vm5818_vm5, %v1167_v1, 0  ;;  %v1209_v13 = vsel %vm5819_vm4, %v1168_v46, 0  ;;  %vm5829_vm5 = vcmask 7168   ;;  %vm5831_vm11 = vmmov %vm5826_vm1  ;;  %v2984_v46 = vld [vmem:[%s5684_s1 + $0x18] sm:$0xff]  ;;  %v4702_v4 = vpack.i.bf16 %v4698_v55, %v4580_v19 }
 0x323   : > { %v3306_v23 = vpop.permute.xlu1 %3305  ;;  %1214 = vmatpush.bf16.msra.mxu2 %v1206_v12  ;;  %1233 = vmatpush.bf16.msra.mxu3 %v1209_v13  ;;  %v3313_v6 = vunpack.i.h.bf16 %v3311_v58  ;;  %v3312_v14 = vunpack.i.l.bf16 %v3311_v58  ;;  %v1095_v62 = vsel %vm5829_vm5, %v3317_v63, %v3318_v28  ;;  %vm5830_vm4 = vmmov %vm5829_vm5 }
 0x324   : > { %v3308_v16 = vunpack.i.h.bf16 %v3306_v23  ;;  %v3307_v38 = vunpack.i.l.bf16 %v3306_v23 }
 0x325   : > { %v1083_v5 = vsel %vm5826_vm1, %v3312_v14, %v3313_v6  ;;  %vm5836_vm1 = vcmask 138240   ;;  %v1182_v58 = vpop.permute.xlu2 %1181 }
 0x326   : > { %v1110_v29 = vsel %vm5822_vm15, %v3308_v16, %v1108_v42  ;;  %v1109_v61 = vsel %vm5823_vm7, %v3307_v38, %v3308_v16  ;;  %v2758_v9 = vpack.c.bf16 %v1095_v62, %v1083_v5  ;;  %vm5834_vm15 = vnez %v5833_v41  ;;  %v4667_v42 = vld [vmem:[#allocation2 + $0x78] sm:$0xff]  ;;  %vm5837_vm5 = vmmov %vm5836_vm1 }
 0x327   : > { %2753 = vmatpush.bf16.msk.msra.mxu2 %vm4007_vm10, %v2752_v32  ;;  %2767 = vmatpush.bf16.msk.msra.mxu3 %vm4015_vm12, %v2766_v59  ;;  %v2769_v15 = vpack.c.bf16 %v1110_v29, %v4594_v7  ;;  %v2755_v11 = vpack.c.bf16 %v1109_v61, %v4591_v35  ;;  %v4671_v18 = vpack.i.bf16 %v4667_v42, %v4665_v34  ;;  %vm5835_vm7 = vcmask 130048  }
 0x329   : > { %3340 = vrot.lane.b32.xlu2 %v4671_v18, %s3866_s26  ;;  %3350 = vrot.lane.b32.xlu0 %v4671_v18, %s3864_s24 }
 0x32a   : > { %v4651_v40 = vpop.permute.xlu0 %3320 }
 0x32b   : > { %v3322_v17 = vunpack.i.l.bf16 %v4651_v40  ;;  %v1082_v25 = vpop.permute.xlu1 %1081  ;;  %2756 = vmatpush.bf16.msk.msra.mxu2 %vm4028_vm13, %v2755_v11  ;;  %2770 = vmatpush.bf16.msk.msra.mxu3 %vm4035_vm14, %v2769_v15 }
 0x32c   : > { %v1084_v35 = vsel %vm5831_vm11, %v3313_v6, %v1082_v25  ;;  %vm5839_vm11 = vcmask 588800  }
 0x32d   : > { %v1096_v7 = vsel %vm5830_vm4, %v3318_v28, %v3322_v17  ;;  %vm5838_vm4 = vmmov %vm5835_vm7  ;;  %v1177_v56 = vpop.permute.xlu2 %1176 }
 0x32e   : > { %v2772_v48 = vpack.c.bf16 %v1096_v7, %v1084_v35 }
 0x32f   : > { %2759 = vmatpush.bf16.msk.msra.mxu2 %vm4055_vm9, %v2758_v9 }
 0x330   : > { %2773 = vmatpush.bf16.msk.msra.mxu3 %vm5834_vm15, %v2772_v48 }
 0x331   : > { %3345 = vrot.lane.b32.xlu2 %v4702_v4, %s3866_s26  ;;  %3355 = vrot.lane.b32.xlu0 %v4702_v4, %s3864_s24 }
 0x332   : > { %v3336_v37 = vpop.permute.xlu0 %3335 }
 0x333   : > { %v3338_v8 = vunpack.i.h.bf16 %v3336_v37  ;;  %v3337_v47 = vunpack.i.l.bf16 %v3336_v37  ;;  %v3326_v24 = vpop.permute.xlu1 %3325 }
 0x334   : > { %v3328_v49 = vunpack.i.h.bf16 %v3326_v24  ;;  %v3327_v26 = vunpack.i.l.bf16 %v3326_v24 }
 0x335   : > { %v1145_v0 = vsel %vm5835_vm7, %v3337_v47, %v3338_v8  ;;  %vm5840_vm7 = vmmov %vm5839_vm11 }
 0x336   : > { %v1071_v39 = vsel %vm5836_vm1, %v3327_v26, %v3328_v49  ;;  %v1072_v50 = vsel %vm5837_vm5, %v3328_v49, %v3332_v57  ;;  %vm5841_vm1 = vmmov %vm5840_vm7 }
 0x337   : > { %v2761_v52 = vpack.c.bf16 %v1145_v0, %v1071_v39  ;;  %vm5842_vm15 = vmmov %vm5841_vm1 }
 0x339   : > { %2762 = vmatpush.bf16.msk.msra.mxu2 %vm4007_vm10, %v2761_v52 }
 0x33a   : > { %v1187_v62 = vpop.permute.xlu0 %1186 }
 0x33b   : > { %v1144_v3 = vpop.permute.xlu1 %1143 }
 0x33c   : > { %v1146_v60 = vsel %vm5838_vm4, %v3338_v8, %v1144_v3  ;;  %2763 = vmatmul.msk.bf16.vlgmr.msra.gmra.mxu2 %vm5839_vm11, %v2983_v36 }
 0x33d   : > { %v2775_v1 = vpack.c.bf16 %v1146_v60, %v1072_v50 }
 0x33f   : > { %2776 = vmatpush.bf16.msk.msra.mxu3 %vm4015_vm12, %v2775_v1 }
 0x342   : > { %2777 = vmatmul.msk.bf16.vlgmr.msra.gmra.mxu3 %vm5840_vm7, %v2983_v36 }
 0x343   : > { %v1172_v12 = vpop.permute.xlu1 %1171 }
 0x34c   : > { %2764 = vmatmul.msk.bf16.gmra.mxu2 %vm5841_vm1, %v2984_v46  ;;  %vm5847_vm1 = vcmask 924672  }
 0x352   : > { %2778 = vmatmul.msk.bf16.gmra.mxu3 %vm5842_vm15, %v2984_v46  ;;  %vm5843_vm15 = vcmask 916480  }
 0x353   : > { %vm5844_vm4 = vmmov %vm5843_vm15 }
 0x354   : > { %vm5845_vm11 = vmmov %vm5844_vm4 }
 0x355   : > { %vm5846_vm7 = vmmov %vm5844_vm4 }
 0x3bf   : > { %v1220_v13 = vpop.f32.mrf.mxu2 }
 0x3c0   : > { %v1221_v23 = vadd.f32 %v1220_v13, %v1172_v12  ;;  %v4795_v13 = vpop.permute.xlu2 %3340 }
 0x3c2   : > { %v4708_v53 = vmax.f32 %v1221_v23, 0.0  ;;  %v4807_v23 = vpop.permute.xlu0 %3350 }
 0x3c4   : > { %v3364_v20 = vpack.i.bf16 %v4601_v43, %v4708_v53  ;;  %v3374_v5 = vpack.i.bf16 %v4708_v53, %v4601_v43 }
 0x3c5   : > { %v1239_v16 = vpop.f32.mrf.mxu3 }
 0x3c6   : > { %v1240_v38 = vadd.f32 %v1239_v16, %v1172_v12  ;;  %3365 = vrot.lane.b32.xlu2 %v3364_v20, %s3869_s29  ;;  %3360 = vrot.lane.b32.xlu0 %v3364_v20, %s3870_s30 }
 0x3c7   : > { %v1222_v59 = vpop.f32.mrf.mxu2 }
 0x3c8   : > { %v4714_v32 = vmax.f32 %v1240_v38, 0.0  ;;  %v1223_v6 = vadd.f32 %v1222_v59, %v1177_v56 }
 0x3ca   : > { %v4716_v14 = vmax.f32 %v1223_v6, 0.0  ;;  %v4720_v29 = vpack.i.bf16 %v4714_v32, %v4708_v53 }
 0x3cc   : > { %3370 = vrot.lane.b32.xlu1 %v4720_v29, %s3866_s26  ;;  %v3399_v37 = vpack.i.bf16 %v4716_v14, %v4601_v43 }
 0x3cd   : > { %v1241_v28 = vpop.f32.mrf.mxu3 }
 0x3ce   : > { %v1242_v63 = vadd.f32 %v1241_v28, %v1177_v56  ;;  %3380 = vrot.lane.b32.xlu0 %v4720_v29, %s3864_s24  ;;  %v3356_v56 = vpop.permute.xlu0 %3355 }
 0x3cf   : > { %v1225_v15 = vpop.f32.mrf.mxu2 }
 0x3d0   : > { %v4728_v11 = vmax.f32 %v1242_v63, 0.0  ;;  %v1226_v9 = vadd.f32 %v1225_v15, %v1182_v58  ;;  %v3333_v15 = vunpack.i.h.bf16 %v4679_v30 }
 0x3d2   : > { %v3394_v17 = vpack.i.bf16 %v4728_v11, %v4716_v14  ;;  %v4742_v8 = vmax.f32 %v1226_v9, 0.0  ;;  %v3409_v24 = vpack.i.bf16 %v4728_v11, %v4714_v32  ;;  %v3564_v28 = vpack.i.bf16 %v4698_v55, %v4728_v11 }
 0x3d4   : > { %3375 = vrot.lane.b32.xlu1 %v3374_v5, %s3868_s28  ;;  %3395 = vrot.lane.b32.xlu2 %v3394_v17, %s3866_s26  ;;  %v3424_v50 = vpack.i.bf16 %v4601_v43, %v4742_v8  ;;  %v3439_v1 = vpack.i.bf16 %v4742_v8, %v4601_v43 }
 0x3d5   : > { %v1244_v25 = vpop.f32.mrf.mxu3 }
 0x3d6   : > { %1400 = vrot.lane.b32.xlu0 %v4728_v11, %s3869_s29  ;;  %v1245_v47 = vadd.f32 %v1244_v25, %v1182_v58 }
 0x3d7   : > { %v1227_v7 = vpop.f32.mrf.mxu2 }
 0x3d8   : > { %v1228_v35 = vadd.f32 %v1227_v7, %v1187_v62  ;;  %v4752_v39 = vmax.f32 %v1245_v47, 0.0 }
 0x3da   : > { %v4738_v48 = vmax.f32 %v1228_v35, 0.0  ;;  %v3429_v57 = vpack.i.bf16 %v4752_v39, %v4742_v8  ;;  %v3434_v3 = vpack.i.bf16 %v4752_v39, %v4716_v14  ;;  %v3357_v35 = vunpack.i.l.bf16 %v3356_v56 }
 0x3dc   : > { %3385 = vrot.lane.b32.xlu1 %v4720_v29, %s3867_s27  ;;  %3400 = vrot.lane.b32.xlu2 %v3399_v37, %s3868_s28  ;;  %v3459_v60 = vpack.i.bf16 %v4601_v43, %v4738_v48  ;;  %v3474_v46 = vpack.i.bf16 %v4738_v48, %v4601_v43  ;;  %v3549_v55 = vpack.i.bf16 %v4738_v48, %v4665_v34 }
 0x3dd   : > { %v1246_v49 = vpop.f32.mrf.mxu3 }
 0x3de   : > { %v1247_v0 = vadd.f32 %v1246_v49, %v1187_v62  ;;  %3410 = vrot.lane.b32.xlu0 %v3409_v24, %s3868_s28 }
 0x3e0   : > { %v4754_v52 = vmax.f32 %v1247_v0, 0.0  ;;  %v3554_v0 = vpack.i.bf16 %v4716_v14, %v4580_v19 }
 0x3e2   : > { %v3469_v58 = vpack.i.bf16 %v4714_v32, %v4754_v52  ;;  %v3509_v12 = vpack.i.bf16 %v4754_v52, %v4738_v48  ;;  %v3504_v43 = vpack.i.bf16 %v4754_v52, %v4752_v39  ;;  %v3559_v16 = vpack.i.bf16 %v4667_v42, %v4754_v52  ;;  %v2781_v42 = vld [vmem:[%s5687_s4 + $0x8] sm:$0xff] }
 0x3e4   : > { %3390 = vrot.lane.b32.xlu1 %v3374_v5, %s3871_s6  ;;  %3415 = vrot.lane.b32.xlu2 %v3394_v17, %s3867_s27 }
 0x3e6   : > { %3430 = vrot.lane.b32.xlu0 %v3429_v57, %s3866_s26 }
 0x3ec   : > { %3405 = vrot.lane.b32.xlu1 %v3394_v17, %s3864_s24  ;;  %3420 = vrot.lane.b32.xlu2 %v3399_v37, %s3871_s6 }
 0x3ee   : > { %3435 = vrot.lane.b32.xlu0 %v3434_v3, %s3869_s29 }
 0x3f4   : > { %3425 = vrot.lane.b32.xlu1 %v3424_v50, %s3869_s29  ;;  %3460 = vrot.lane.b32.xlu2 %v3459_v60, %s3869_s29 }
 0x3f6   : > { %3445 = vrot.lane.b32.xlu0 %v3429_v57, %s3864_s24 }
 0x3fc   : > { %3440 = vrot.lane.b32.xlu1 %v3439_v1, %s3868_s28  ;;  %3475 = vrot.lane.b32.xlu2 %v3474_v46, %s3868_s28 }
 0x3fe   : > { %3470 = vrot.lane.b32.xlu0 %v3469_v58, %s3869_s29 }
 0x404   : > { %3450 = vrot.lane.b32.xlu1 %v3429_v57, %s3867_s27  ;;  %3500 = vrot.lane.b32.xlu2 %v3434_v3, %s3870_s30 }
 0x406   : > { %3490 = vrot.lane.b32.xlu0 %v4671_v18, %s3867_s27  ;;  %v3346_v18 = vpop.permute.xlu2 %3345 }
 0x407   : > { %v3348_v38 = vunpack.i.h.bf16 %v3346_v18  ;;  %v3347_v62 = vunpack.i.l.bf16 %v3346_v18 }
 0x40c   : > { %3455 = vrot.lane.b32.xlu1 %v3439_v1, %s3871_s6  ;;  %3510 = vrot.lane.b32.xlu2 %v3509_v12, %s3867_s27 }
 0x40e   : > { %3505 = vrot.lane.b32.xlu0 %v3504_v43, %s3868_s28 }
 0x414   : > { %3465 = vrot.lane.b32.xlu1 %v3509_v12, %s3866_s26  ;;  %3515 = vrot.lane.b32.xlu2 %v3474_v46, %s3871_s6 }
 0x416   : > { %3520 = vrot.lane.b32.xlu0 %v3504_v43, %s3871_s6 }
 0x41c   : > { %3480 = vrot.lane.b32.xlu1 %v3509_v12, %s3864_s24  ;;  %3530 = vrot.lane.b32.xlu2 %v3459_v60, %s3870_s30 }
 0x41e   : > { %3525 = vrot.lane.b32.xlu0 %v4702_v4, %s3867_s27 }
 0x420   : > { %v4809_v20 = vpop.permute.xlu2 %3365 }
 0x424   : > { %3485 = vrot.lane.b32.xlu1 %v3424_v50, %s3870_s30  ;;  %1304 = vrot.lane.b32.xlu2 %v4728_v11, %s3870_s30 }
 0x426   : > { %3535 = vrot.lane.b32.xlu0 %v3429_v57, %s3865_s25 }
 0x42c   : > { %3495 = vrot.lane.b32.xlu1 %v3409_v24, %s3871_s6  ;;  %3560 = vrot.lane.b32.xlu2 %v3559_v16, %s3865_s25 }
 0x42e   : > { %v3396_v4 = vpop.permute.xlu2 %3395  ;;  %3540 = vrot.lane.b32.xlu0 %v4720_v29, %s3865_s25 }
 0x42f   : > { %v3398_v59 = vunpack.i.h.bf16 %v3396_v4  ;;  %v3397_v25 = vunpack.i.l.bf16 %v3396_v4 }
 0x431   : > { %v4819_v6 = vsel %vm5843_vm15, %v3398_v59, %v3348_v38  ;;  %v4851_v49 = vsel %vm5845_vm11, %v3397_v25, %v3398_v59  ;;  %vm5848_vm15 = vcmask 1039360   ;;  %vm5851_vm11 = vcmask 7168  }
 0x434   : > { %3545 = vrot.lane.b32.xlu1 %v3469_v58, %s3870_s30  ;;  %3565 = vrot.lane.b32.xlu2 %v3564_v28, %s3865_s25 }
 0x436   : > { %v4828_v63 = vpop.permute.xlu2 %3400  ;;  %1708 = vperm.xlu0 %3053, %v2781_v42  }
 0x438   : > { %v4830_v29 = vpop.permute.xlu0 %3360 }
 0x439   : > { %v5717_v5 = vunpack.i.l.bf16 %v4830_v29 }
 0x43b   : > { %v4839_v17 = vsel %vm5837_vm5, %v3333_v15, %v5717_v5  ;;  %vm5849_vm5 = vmmov %vm5848_vm15 }
 0x43c   : > { %3550 = vrot.lane.b32.xlu1 %v3549_v55, %s3865_s25 }
 0x43e   : > { %v3371_v9 = vpop.permute.xlu1 %3370  ;;  %v4842_v7 = vpop.permute.xlu2 %3415 }
 0x43f   : > { %v3373_v37 = vunpack.i.h.bf16 %v3371_v9  ;;  %v3372_v30 = vunpack.i.l.bf16 %v3371_v9  ;;  %v5720_v58 = vunpack.i.h.bf16 %v4842_v7  ;;  %v3417_v12 = vunpack.i.l.bf16 %v4842_v7 }
 0x440   : > { %v4844_v47 = vpop.permute.xlu0 %3380  ;;  %v3358_v9 = vunpack.i.h.bf16 %v3356_v56 }
 0x441   : > { %v5718_v24 = vunpack.i.h.bf16 %v4844_v47  ;;  %v4848_v34 = vsel %vm5844_vm4, %v3372_v30, %v3373_v37  ;;  %v4858_v3 = vsel %vm5846_vm7, %v3373_v37, %v3347_v62  ;;  %v4885_v4 = vsel %vm5848_vm15, %v3417_v12, %v5720_v58  ;;  %vm5850_vm4 = vmmov %vm5847_vm1 }
 0x442   : > { %v3323_v12 = vunpack.i.h.bf16 %v4651_v40  ;;  %vm5852_vm7 = vmmov %vm5851_vm11  ;;  %vm5854_vm15 = vnez %v5766_v27 }
 0x443   : > { %v4863_v50 = vsel %vm5847_vm1, %v5718_v24, %v3357_v35  ;;  %v3368_v24 = vunpack.i.h.bf16 %v4809_v20  ;;  %vm5853_vm1 = vmmov %vm5852_vm7 }
 0x444   : > { %3555 = vrot.lane.b32.xlu1 %v3554_v0, %s3865_s25  ;;  %v3367_v0 = vunpack.i.l.bf16 %v4809_v20  ;;  %v3403_v20 = vunpack.i.h.bf16 %v4828_v63  ;;  %vm5860_vm9 = vmmov %vm5853_vm1 }
 0x446   : > { %v4868_v1 = vpop.permute.xlu1 %3375  ;;  %v4870_v46 = vpop.permute.xlu2 %3420 }
 0x448   : > { %v4872_v19 = vpop.permute.xlu0 %1400 }
 0x44e   : > { %v4876_v43 = vpop.permute.xlu1 %3385  ;;  %v3461_v42 = vpop.permute.xlu2 %3460 }
 0x44f   : > { %v5719_v18 = vunpack.i.h.bf16 %v4876_v43  ;;  %v3387_v16 = vunpack.i.l.bf16 %v4876_v43  ;;  %v3462_v61 = vunpack.i.l.bf16 %v3461_v42 }
 0x450   : > { %v4880_v38 = vpop.permute.xlu0 %3410 }
 0x451   : > { %v4890_v59 = vsel %vm5849_vm5, %v3387_v16, %v5719_v18  ;;  %v3463_v18 = vunpack.i.h.bf16 %v3461_v42  ;;  %vm5855_vm5 = vmmov %vm5853_vm1 }
 0x456   : > { %v4894_v15 = vpop.permute.xlu1 %3390  ;;  %v4898_v25 = vpop.permute.xlu2 %3475 }
 0x457   : > { %v3478_v60 = vunpack.i.h.bf16 %v4898_v25  ;;  %v3477_v57 = vunpack.i.l.bf16 %v4898_v25 }
 0x458   : > { %v4896_v55 = vpop.permute.xlu0 %3430 }
 0x45e   : > { %v4900_v62 = vpop.permute.xlu1 %3405  ;;  %v4911_v16 = vpop.permute.xlu2 %3500 }
 0x45f   : > { %v5721_v35 = vunpack.i.h.bf16 %v4900_v62 }
 0x460   : > { %v3436_v37 = vpop.permute.xlu0 %3435 }
 0x461   : > { %v4906_v30 = vsel %vm5850_vm4, %v5721_v35, %v3358_v9  ;;  %v3437_v36 = vunpack.i.l.bf16 %v3436_v37  ;;  %vm5856_vm4 = vcmask 121856  }
 0x462   : > { %v1372_v33 = vsel %vm5856_vm4, %v3477_v57, %v3478_v60 }
 0x463   : > { %v1416_v40 = vsel %vm5853_vm1, %v3368_v24, %v3437_v36  ;;  %v3402_v24 = vunpack.i.l.bf16 %v4828_v63 }
 0x465   : > { %v1368_v57 = vsel %vm5856_vm4, %v3402_v24, %v3403_v20 }
 0x466   : > { %v3426_v5 = vpop.permute.xlu1 %3425  ;;  %v4930_v25 = vpop.permute.xlu2 %3510 }
 0x467   : > { %v3428_v26 = vunpack.i.h.bf16 %v3426_v5  ;;  %v3427_v56 = vunpack.i.l.bf16 %v3426_v5  ;;  %v1414_v5 = vsel %vm5855_vm5, %v3463_v18, %v3367_v0  ;;  %v3438_v18 = vunpack.i.h.bf16 %v3436_v37  ;;  %vm5859_vm5 = vmmov %vm5853_vm1 }
 0x468   : > { %v4913_v28 = vpop.permute.xlu0 %3445  ;;  %v2786_v41 = vpack.c.bf16 %v1416_v40, %v1414_v5 }
 0x469   : > { %v1418_v9 = vsel %vm5851_vm11, %v3323_v12, %v3427_v56  ;;  %v1420_v58 = vsel %vm5852_vm7, %v3428_v26, %v3462_v61  ;;  %v3378_v12 = vunpack.i.h.bf16 %v4868_v1  ;;  %v3377_v26 = vunpack.i.l.bf16 %v4868_v1  ;;  %vm5857_vm11 = vmmov %vm5856_vm4 }
 0x46a   : > { %v2783_v35 = vpack.c.bf16 %v1420_v58, %v1418_v9  ;;  %vm5858_vm7 = vmmov %vm5856_vm4  ;;  %v1419_v10 = vsel %vm5853_vm1, %v3427_v56, %v3438_v18 }
 0x46c   : > { %2784 = vmatpush.bf16.msk.msra.mxu0 %vm5854_vm15, %v2783_v35 }
 0x46e   : > { %v3441_v42 = vpop.permute.xlu1 %3440 }
 0x46f   : > { %v3443_v58 = vunpack.i.h.bf16 %v3441_v42  ;;  %v3442_v9 = vunpack.i.l.bf16 %v3441_v42  ;;  %v1366_v42 = vsel %vm5858_vm7, %v3377_v26, %v3378_v12 }
 0x470   : > { %v3471_v31 = vpop.permute.xlu0 %3470  ;;  %2787 = vmatpush.bf16.msk.msra.mxu0 %vm5854_vm15, %v2786_v41  ;;  %v2792_v37 = vpack.c.bf16 %v1368_v57, %v1366_v42 }
 0x471   : > { %v1370_v35 = vsel %vm5857_vm11, %v3442_v9, %v3443_v58  ;;  %v3473_v40 = vunpack.i.h.bf16 %v3471_v31  ;;  %v3472_v5 = vunpack.i.l.bf16 %v3471_v31  ;;  %vm5861_vm11 = vmmov %vm5853_vm1  ;;  %v3393_v9 = vunpack.i.h.bf16 %v4894_v15 }
 0x472   : > { %v2789_v1 = vpack.c.bf16 %v1372_v33, %v1370_v35  ;;  %v1417_v31 = vsel %vm5861_vm11, %v3437_v36, %v4872_v19  ;;  %v3423_v36 = vunpack.i.h.bf16 %v4870_v46  ;;  %v3422_v19 = vunpack.i.l.bf16 %v4870_v46  ;;  %vm5864_vm1 = vmmov %vm5856_vm4 }
 0x473   : > { %v1421_v63 = vsel %vm5859_vm5, %v3462_v61, %v3472_v5  ;;  %v1415_v41 = vsel %vm5860_vm9, %v3367_v0, %v3473_v40  ;;  %v3413_v35 = vunpack.i.h.bf16 %v4880_v38  ;;  %v3412_v40 = vunpack.i.l.bf16 %v4880_v38  ;;  %vm5865_vm5 = vmmov %vm5864_vm1 }
 0x474   : > { %v2820_v54 = vpack.c.bf16 %v1421_v63, %v1419_v10  ;;  %2790 = vmatpush.bf16.msk.msra.mxu0 %vm4383_vm8, %v2789_v1  ;;  %v2823_v33 = vpack.c.bf16 %v1417_v31, %v1415_v41  ;;  %v3516_v10 = vpop.permute.xlu2 %3515  ;;  %vm5862_vm9 = vcmask 130048   ;;  %vm5867_vm11 = vmmov %vm5864_vm1  ;;  %v3503_v46 = vunpack.i.h.bf16 %v4911_v16 }
 0x475   : > { %v3518_v61 = vunpack.i.h.bf16 %v3516_v10  ;;  %v3517_v0 = vunpack.i.l.bf16 %v3516_v10  ;;  %vm5863_vm7 = vmmov %vm5862_vm9  ;;  %v3433_v10 = vunpack.i.h.bf16 %v4896_v55  ;;  %v1369_v38 = vsel %vm5867_vm11, %v3403_v20, %v3413_v35 }
 0x476   : > { %v4942_v44 = vpop.permute.xlu1 %3450  ;;  %2821 = vmatpush.bf16.msk.msrb.mxu2 %vm4331_vm0, %v2820_v54  ;;  %v3392_v54 = vunpack.i.l.bf16 %v4894_v15  ;;  %vm5866_vm4 = vmmov %vm5863_vm7  ;;  %v1687_v15 = vpack.c.bf16 %v4728_v11, %v4714_v32 }
 0x477   : > { %v1620_v57 = vsel %vm5863_vm7, %v3517_v0, %v3518_v61  ;;  %vm5868_vm14 = vmmov %vm5864_vm1  ;;  %vm5870_vm7 = vcmask 916480  }
 0x478   : > { %v4948_v56 = vpop.permute.xlu0 %3490  ;;  %2793 = vmatpush.bf16.msk.msra.mxu0 %vm4383_vm8, %v2792_v37  ;;  %vm5874_vm11 = vmmov %vm5866_vm4 }
 0x47a   : > { %2824 = vmatpush.bf16.msk.msrb.mxu2 %vm4331_vm0, %v2823_v33  ;;  %v1614_v33 = vsel %vm5866_vm4, %v3392_v54, %v3393_v9 }
 0x47e   : > { %v3456_v26 = vpop.permute.xlu1 %3455 }
 0x47f   : > { %v3458_v24 = vunpack.i.h.bf16 %v3456_v26  ;;  %v3457_v18 = vunpack.i.l.bf16 %v3456_v26 }
 0x480   : > { %v3506_v5 = vpop.permute.xlu0 %3505 }
 0x481   : > { %v3508_v1 = vunpack.i.h.bf16 %v3506_v5  ;;  %v3507_v42 = vunpack.i.l.bf16 %v3506_v5  ;;  %v1618_v63 = vsel %vm5862_vm9, %v3457_v18, %v3458_v24  ;;  %v1367_v5 = vsel %vm5868_vm14, %v3378_v12, %v3412_v40  ;;  %vm5869_vm9 = vmmov %vm5866_vm4 }
 0x482   : > { %v1676_v41 = vpack.c.bf16 %v1620_v57, %v1618_v63  ;;  %v3432_v18 = vunpack.i.l.bf16 %v4896_v55  ;;  %v2829_v20 = vpack.c.bf16 %v1369_v38, %v1367_v5  ;;  %vm5871_vm14 = vmmov %vm5870_vm7  ;;  %v3352_v5 = vunpack.i.l.bf16 %v4807_v23 }
 0x483   : > { %v1373_v37 = vsel %vm5864_vm1, %v3478_v60, %v3508_v1  ;;  %v1371_v31 = vsel %vm5865_vm5, %v3443_v58, %v3507_v42  ;;  %v1616_v60 = vsel %vm5869_vm9, %v3422_v19, %v3423_v36  ;;  %v3342_v58 = vunpack.i.l.bf16 %v4795_v13  ;;  %vm5872_vm1 = vmmov %vm5870_vm7 }
 0x484   : > { %v2826_v26 = vpack.c.bf16 %v1373_v37, %v1371_v31  ;;  %1728 = vmatpush.bf16.msra.mxu0 %v1676_v41  ;;  %v1674_v54 = vpack.c.bf16 %v1616_v60, %v1614_v33  ;;  %v3343_v1 = vunpack.i.h.bf16 %v4795_v13  ;;  %v1658_v55 = vsel %vm5871_vm14, %v3432_v18, %v3433_v10  ;;  %vm5873_vm5 = vmmov %vm5872_vm1 }
 0x485   : > { %v1659_v12 = vsel %vm5870_vm7, %v3433_v10, %v3342_v58  ;;  %v3448_v33 = vunpack.i.h.bf16 %v4913_v28  ;;  %v3447_v10 = vunpack.i.l.bf16 %v4913_v28  ;;  %v3353_v60 = vunpack.i.h.bf16 %v4807_v23 }
 0x486   : > { %v3466_v0 = vpop.permute.xlu1 %3465  ;;  %2827 = vmatpush.bf16.msk.msrb.mxu2 %vm4430_vm6, %v2826_v26  ;;  %v3407_v58 = vunpack.i.l.bf16 %v4900_v62  ;;  %vm5875_vm9 = vcmask 924672   ;;  %v5877_v28 = vpack.c.bf16 %v4819_v6, %v4858_v3  ;;  %v5007_v6 = vpop.permute.xlu2 %3530  ;;  %v5883_v3 = vunpack.i.h.bf16 %v4842_v7 }
 0x487   : > { %v3468_v42 = vunpack.i.h.bf16 %v3466_v0  ;;  %v3467_v63 = vunpack.i.l.bf16 %v3466_v0  ;;  %vm5878_vm7 = vmmov %vm5875_vm9 }
 0x488   : > { %v3521_v35 = vpop.permute.xlu0 %3520  ;;  %1729 = vmatpush.bf16.msra.mxu0 %v1674_v54  ;;  %v1522_v23 = vsel %vm5878_vm7, %v3447_v10, %v3448_v33  ;;  %vm5879_vm14 = vmmov %vm5878_vm7 }
 0x489   : > { %v1661_v19 = vsel %vm5872_vm1, %v3468_v42, %v3343_v1  ;;  %v1660_v40 = vsel %vm5873_vm5, %v3467_v63, %v3468_v42  ;;  %v3523_v57 = vunpack.i.h.bf16 %v3521_v35  ;;  %v3522_v31 = vunpack.i.l.bf16 %v3521_v35  ;;  %vm5880_vm1 = vmmov %vm5878_vm7 }
 0x48a   : > { %v1700_v41 = vpack.c.bf16 %v1660_v40, %v1658_v55  ;;  %v1701_v37 = vpack.c.bf16 %v1661_v19, %v1659_v12  ;;  %2830 = vmatpush.bf16.msk.msrb.mxu2 %vm4430_vm6, %v2829_v20  ;;  %v1523_v1 = vsel %vm5875_vm9, %v3448_v33, %v3352_v5  ;;  %v5881_v40 = vunpack.i.h.bf16 %v4900_v62  ;;  %vm5882_vm5 = vmmov %vm5880_vm1 }
 0x48b   : > { %v1621_v13 = vsel %vm5866_vm4, %v3518_v61, %v3523_v57  ;;  %v1619_v26 = vsel %vm5874_vm11, %v3458_v24, %v3522_v31  ;;  %v3382_v61 = vunpack.i.l.bf16 %v4844_v47  ;;  %v5876_v24 = vpack.c.bf16 %v4851_v49, %v4848_v34  ;;  %vm5888_vm9 = vmmov %vm5880_vm1 }
 0x48c   : > { %1737 = vmatpush.bf16.msra.mxu1 %v1700_v41  ;;  %1776 = vmatpush.bf16.msrb.mxu3 %v1701_v37  ;;  %v1677_v38 = vpack.c.bf16 %v1621_v13, %v1619_v26  ;;  %v1520_v57 = vsel %vm5882_vm5, %v3407_v58, %v5881_v40  ;;  %v3453_v34 = vunpack.i.h.bf16 %v4942_v44  ;;  %v3452_v49 = vunpack.i.l.bf16 %v4942_v44 }
 0x48d   : > { %vm5884_vm4 = vcmask 1039360   ;;  %v3493_v37 = vunpack.i.h.bf16 %v4948_v56  ;;  %v3492_v31 = vunpack.i.l.bf16 %v4948_v56  ;;  %v5885_v13 = vunpack.i.h.bf16 %v4876_v43 }
 0x48e   : > { %v3481_v18 = vpop.permute.xlu1 %3480  ;;  %1767 = vmatpush.bf16.msrb.mxu2 %v1677_v38  ;;  %vm5886_vm11 = vmmov %vm5884_vm4  ;;  %v5887_v44 = vunpack.i.h.bf16 %v4844_v47  ;;  %v3513_v33 = vunpack.i.h.bf16 %v4930_v25  ;;  %v3512_v26 = vunpack.i.l.bf16 %v4930_v25  ;;  %v3363_v56 = vunpack.i.h.bf16 %v4830_v29 }
 0x48f   : > { %v3483_v0 = vunpack.i.h.bf16 %v3481_v18  ;;  %v3482_v54 = vunpack.i.l.bf16 %v3481_v18  ;;  %v3533_v38 = vunpack.i.h.bf16 %v5007_v6  ;;  %vm5889_vm7 = vmmov %vm5884_vm4  ;;  %v5892_v25 = vpack.c.bf16 %v4906_v30, %v4863_v50 }
 0x490   : > { %v3526_v42 = vpop.permute.xlu0 %3525  ;;  %1738 = vmatpush.bf16.msra.mxu1 %v5876_v24  ;;  %1777 = vmatpush.bf16.msrb.mxu3 %v5877_v28  ;;  %v1518_v7 = vsel %vm5888_vm9, %v3382_v61, %v5887_v44  ;;  %v1474_v18 = vsel %vm5889_vm7, %v3452_v49, %v3453_v34  ;;  %v2779_v61 = vld [vmem:[%s5686_s3 + $0xc] sm:$0xff]  ;;  %vm5898_vm7 = vcmask 130048  }
 0x491   : > { %v1525_v63 = vsel %vm5879_vm14, %v3483_v0, %v3353_v60  ;;  %v1524_v20 = vsel %vm5880_vm1, %v3482_v54, %v3483_v0  ;;  %v3528_v12 = vunpack.i.h.bf16 %v3526_v42  ;;  %v3527_v19 = vunpack.i.l.bf16 %v3526_v42  ;;  %vm5890_vm14 = vmmov %vm5884_vm4 }
 0x492   : > { %v2801_v35 = vpack.c.bf16 %v1524_v20, %v1522_v23  ;;  %v2838_v55 = vpack.c.bf16 %v1525_v63, %v1523_v1  ;;  %v2804_v43 = vpack.c.bf16 %v1520_v57, %v1518_v7  ;;  %v3532_v60 = vunpack.i.l.bf16 %v5007_v6  ;;  %vm5891_vm1 = vmmov %vm5884_vm4 }
 0x493   : > { %v1473_v41 = vsel %vm5884_vm4, %v5883_v3, %v3528_v12  ;;  %v1471_v62 = vsel %vm5886_vm11, %v5885_v13, %v3527_v19  ;;  %v1477_v47 = vsel %vm5890_vm14, %v3513_v33, %v3493_v37  ;;  %v1475_v54 = vsel %vm5891_vm1, %v3453_v34, %v3492_v31  ;;  %vm5893_vm5 = vmmov %vm5891_vm1 }
 0x494   : > { %2802 = vmatpush.bf16.msk.msra.mxu1 %vm5854_vm15, %v2801_v35  ;;  %2839 = vmatpush.bf16.msk.msrb.mxu3 %vm4331_vm0, %v2838_v55  ;;  %v2847_v10 = vpack.c.bf16 %v1473_v41, %v1471_v62  ;;  %v3502_v1 = vunpack.i.l.bf16 %v4911_v16  ;;  %v1476_v42 = vsel %vm5893_vm5, %v3512_v26, %v3513_v33  ;;  %vm5894_vm4 = vcmask 138240   ;;  %v1305_v35 = vpop.permute.xlu2 %1304  ;;  %vm5899_vm14 = vmmov %vm5898_vm7 }
 0x495   : > { %vm5895_vm11 = vmmov %vm5894_vm4  ;;  %v2807_v23 = vpack.c.bf16 %v1476_v42, %v1474_v18  ;;  %v2844_v50 = vpack.c.bf16 %v1477_v47, %v1475_v54  ;;  %v1713_v30 = vunpack.c.l.b16 %v2779_v61  ;;  %v5897_v34 = vpack.c.bf16 %v4885_v4, %v4890_v59 }
 0x496   : > { %v3486_v5 = vpop.permute.xlu1 %3485  ;;  %vm5896_vm9 = vmmov %vm5894_vm4  ;;  %v1714_v3 = vunpack.c.h.b16 %v2779_v61  ;;  %v5900_v4 = vpack.c.bf16 %v4738_v48, %v4742_v8  ;;  %v5901_v59 = vpack.c.bf16 %v4754_v52, %v4752_v39  ;;  %v5902_v48 = vpack.c.bf16 %v4716_v14, %v4708_v53 }
 0x497   : > { %v3488_v58 = vunpack.i.h.bf16 %v3486_v5  ;;  %v3487_v0 = vunpack.i.l.bf16 %v3486_v5  ;;  %v1320_v20 = vsel %vm5896_vm9, %v3533_v38, %v3502_v1  ;;  %v1716_v57 = vpack.c.b16 %v1713_v30, %v1713_v30  ;;  %vm5903_vm1 = vmmov %vm5894_vm4 }
 0x498   : > { %2805 = vmatpush.bf16.msk.msra.mxu1 %vm5854_vm15, %v2804_v43  ;;  %2842 = vmatpush.bf16.msk.msrb.mxu3 %vm4331_vm0, %v5892_v25  ;;  %v2798_v12 = vpack.c.bf16 %v1320_v20, %v4839_v17  ;;  %v1717_v37 = vpack.c.b16 %v1714_v3, %v1714_v3  ;;  %v3536_v13 = vpop.permute.xlu0 %3535  ;;  %vm5904_vm5 = vmmov %vm5903_vm1  ;;  %v5905_v62 = vunpack.i.l.bf16 %v4830_v29  ;;  %vm5908_vm9 = vcmask 908288  }
 0x499   : > { %v1322_v24 = vsel %vm5894_vm4, %v3363_v56, %v3487_v0  ;;  %v1324_v28 = vsel %vm5895_vm11, %v3488_v58, %v3532_v60  ;;  %v1323_v8 = vsel %vm5903_vm1, %v3487_v0, %v3503_v46  ;;  %vm5906_vm4 = vmmov %vm5903_vm1  ;;  %v3538_v14 = vunpack.i.h.bf16 %v3536_v13  ;;  %v2780_v0 = vld [vmem:[%s5686_s3 + $0x14] sm:$0xf] }
 0x49a   : > { %v2795_v63 = vpack.c.bf16 %v1324_v28, %v1322_v24  ;;  %vm5907_vm11 = vmmov %vm5903_vm1  ;;  %v3537_v44 = vunpack.i.l.bf16 %v3536_v13  ;;  %v1715_v28 = vunpack.c.l.b16 %v2780_v0  ;;  %v3852_v13 = vld [vmem:[%s3927_s23] sm:$0xff] }
 0x49b   : > { %v1321_v11 = vsel %vm5907_vm11, %v3502_v1, %v1305_v35 }
 0x49c   : > { %2796 = vmatpush.bf16.msk.msra.mxu0 %vm5854_vm15, %v2795_v63  ;;  %2808 = vmatpush.bf16.msk.msra.mxu1 %vm4383_vm8, %v2807_v23  ;;  %v3561_v31 = vpop.permute.xlu2 %3560  ;;  %v1718_v35 = vpack.c.b16 %v1715_v28, %v1715_v28 }
 0x49d   : > { %2845 = vmatpush.bf16.msk.msrb.mxu3 %vm4430_vm6, %v2844_v50  ;;  %v3563_v16 = vunpack.i.h.bf16 %v3561_v31  ;;  %v3562_v53 = vunpack.i.l.bf16 %v3561_v31 }
 0x49e   : > { %v3496_v55 = vpop.permute.xlu1 %3495 }
 0x49f   : > { %v3498_v19 = vunpack.i.h.bf16 %v3496_v55  ;;  %v3497_v40 = vunpack.i.l.bf16 %v3496_v55  ;;  %v1573_v29 = vsel %vm5908_vm9, %v3562_v53, %v3563_v16  ;;  %v5112_v55 = vld [vmem:[#allocation2 + $0x18] sm:$0xff] }
 0x4a0   : > { %2799 = vmatpush.bf16.msk.msra.mxu0 %vm5854_vm15, %v2798_v12  ;;  %2811 = vmatpush.bf16.msk.msra.mxu1 %vm4383_vm8, %v5897_v34  ;;  %v3541_v18 = vpop.permute.xlu0 %3540 }
 0x4a1   : > { %2848 = vmatpush.bf16.msk.msrb.mxu3 %vm4430_vm6, %v2847_v10  ;;  %v1615_v17 = vsel %vm5898_vm7, %v3393_v9, %v3497_v40  ;;  %v1617_v49 = vsel %vm5899_vm14, %v3423_v36, %v3498_v19  ;;  %vm5909_vm7 = vmmov %vm5908_vm9  ;;  %v3543_v25 = vunpack.i.h.bf16 %v3541_v18  ;;  %v3542_v61 = vunpack.i.l.bf16 %v3541_v18  ;;  %1910 = vrot.lane.b32.xlu0 %v5112_v55, %s3866_s26 }
 0x4a2   : > { %v1675_v6 = vpack.c.bf16 %v1617_v49, %v1615_v17  ;;  %v1570_v56 = vsel %vm5909_vm7, %v3537_v44, %v3538_v14  ;;  %vm5910_vm14 = vmmov %vm5909_vm7  ;;  %1888 = vrot.lane.b32.xlu2 %v5112_v55, %s3865_s25  ;;  %1876 = vrot.lane.b32.xlu1 %v5112_v55, %s3864_s24  ;;  %v2863_v44 = vld [vmem:[%s5685_s2 + $0x58] sm:$0xff] }
 0x4a3   : > { %1732 = vmatmul.bf16.vlgmr.msra.gmra.mxu0 %v1716_v57  ;;  %vm5911_vm1 = vmmov %vm5909_vm7  ;;  %vm5916_vm7 = vcmask 261120  }
 0x4a4   : > { %1743 = vmatpush.bf16.msra.mxu1 %v5900_v4  ;;  %1768 = vmatpush.bf16.msrb.mxu2 %v1675_v6  ;;  %v3566_v5 = vpop.permute.xlu2 %3565  ;;  %vm5914_vm11 = vmmov %vm5911_vm1 }
 0x4a5   : > { %1782 = vmatpush.bf16.msrb.mxu3 %v5901_v59  ;;  %v3568_v47 = vunpack.i.h.bf16 %v3566_v5  ;;  %v3567_v54 = vunpack.i.l.bf16 %v3566_v5  ;;  %vm5915_vm9 = vmmov %vm5911_vm1 }
 0x4a6   : > { %v3546_v41 = vpop.permute.xlu1 %3545 }
 0x4a7   : > { %v3548_v9 = vunpack.i.h.bf16 %v3546_v41  ;;  %v3547_v36 = vunpack.i.l.bf16 %v3546_v41 }
 0x4a8   : > { %1744 = vmatpush.bf16.msra.mxu1 %v5902_v48  ;;  %v1709_v49 = vpop.permute.xlu0 %1708 }
 0x4a9   : > { %v1325_v39 = vsel %vm5904_vm5, %v3532_v60, %v3547_v36  ;;  %1783 = vmatpush.bf16.msrb.mxu3 %v1687_v15  ;;  %v1319_v32 = vsel %vm5906_vm4, %v5905_v62, %v3548_v9  ;;  %vm5912_vm5 = vmmov %vm5911_vm1 }
 0x4aa   : > { %v2832_v52 = vpack.c.bf16 %v1325_v39, %v1323_v8  ;;  %v2835_v7 = vpack.c.bf16 %v1321_v11, %v1319_v32  ;;  %v1569_v23 = vsel %vm5912_vm5, %v3567_v54, %v3568_v47  ;;  %vm5913_vm4 = vmmov %vm5911_vm1  ;;  %1864 = vrot.lane.b32.xlu2 %v5112_v55, %s3867_s27  ;;  %v3853_v8 = vld [vmem:[%s3927_s23 + $0x8] sm:$0xff]  ;;  %v5133_v11 = vld [vmem:[#allocation2] sm:$0xff] }
 0x4ab   : > { %1745 = vmatmul.bf16.vlgmr.msra.gmra.mxu1 %v1717_v37  ;;  %v1566_v63 = vsel %vm5913_vm4, %v3542_v61, %v3543_v25  ;;  %vm5918_vm5 = vmmov %vm5911_vm1  ;;  %vm5919_vm4 = vcmask 924672  }
 0x4ac   : > { %2833 = vmatpush.bf16.msk.msrb.mxu2 %vm4331_vm0, %v2832_v52  ;;  %1784 = vmatmul.bf16.vlgmr.msrb.gmra.mxu3 %v1717_v37 }
 0x4ae   : > { %v3551_v33 = vpop.permute.xlu1 %3550 }
 0x4af   : > { %v3553_v26 = vunpack.i.h.bf16 %v3551_v33  ;;  %v3552_v10 = vunpack.i.l.bf16 %v3551_v33  ;;  %v2862_v33 = vld [vmem:[%s5685_s2 + $0x50] sm:$0xff] }
 0x4b0   : > { %2836 = vmatpush.bf16.msk.msrb.mxu2 %vm4331_vm0, %v2835_v7  ;;  %v2861_v7 = vld [vmem:[%s5685_s2 + $0x48] sm:$0xff] }
 0x4b1   : > { %v1571_v43 = vsel %vm5910_vm14, %v3538_v14, %v3552_v10  ;;  %v1572_v38 = vsel %vm5911_vm1, %v3553_v26, %v3562_v53  ;;  %vm5917_vm14 = vmmov %vm5916_vm7  ;;  %v2860_v14 = vld [vmem:[%s5685_s2 + $0x40] sm:$0xff] }
 0x4b2   : > { %v2813_v60 = vpack.c.bf16 %v1572_v38, %v1570_v56  ;;  %v2850_v58 = vpack.c.bf16 %v1573_v29, %v1571_v43 }
 0x4b3   : > { %1771 = vmatmul.bf16.vlgmr.msrb.gmra.mxu2 %v1716_v57 }
 0x4b4   : > { %2814 = vmatpush.bf16.msk.msrb.mxu0 %vm4383_vm8, %v2813_v60  ;;  %2851 = vmatpush.bf16.msk.msrb.mxu1 %vm4430_vm6, %v2850_v58 }
 0x4b6   : > { %v3556_v1 = vpop.permute.xlu1 %3555 }
 0x4b7   : > { %v3558_v42 = vunpack.i.h.bf16 %v3556_v1  ;;  %v3557_v24 = vunpack.i.l.bf16 %v3556_v1 }
 0x4b9   : > { %v1567_v20 = vsel %vm5914_vm11, %v3543_v25, %v3557_v24  ;;  %v1568_v50 = vsel %vm5915_vm9, %v3558_v42, %v3567_v54  ;;  %vm5920_vm11 = vmmov %vm5919_vm4  ;;  %vm5921_vm9 = vcmask 1043456  }
 0x4ba   : > { %v2816_v30 = vpack.c.bf16 %v1568_v50, %v1566_v63  ;;  %v2853_v12 = vpack.c.bf16 %v1569_v23, %v1567_v20 }
 0x4bc   : > { %2817 = vmatpush.bf16.msk.msrb.mxu0 %vm4383_vm8, %v2816_v30  ;;  %2854 = vmatpush.bf16.msk.msrb.mxu1 %vm4430_vm6, %v2853_v12 }
 0x4bf   : > { %2818 = vmatmul.msk.bf16.vlgmr.msrb.gmra.mxu0 %vm5916_vm7, %v1718_v35  ;;  %2855 = vmatmul.msk.bf16.vlgmr.msrb.gmra.mxu1 %vm5917_vm14, %v1718_v35  ;;  %vm5922_vm7 = vmmov %vm5921_vm9 }
 0x4fc   : > { %v1889_v26 = vpop.permute.xlu2 %1888 }
 0x504   : > { %v1865_v10 = vpop.permute.xlu2 %1864 }
 0x513   : > { %v1911_v56 = vpop.permute.xlu0 %1910 }
 0x514   : > { %v1877_v29 = vpop.permute.xlu1 %1876 }
 0x520   : > { %v1733_v19 = vpop.f32.mrf.mxu0 }
 0x521   : > { %v1734_v59 = vadd.f32 %v1733_v19, %v1709_v49 }
 0x528   : > { %v1746_v40 = vpop.f32.mrf.mxu1  ;;  %v1735_v57 = vpop.f32.mrf.mxu0 }
 0x529   : > { %v1747_v41 = vadd.f32 %v1746_v40, %v1734_v59 }
 0x52f   : > { %v1785_v34 = vpop.f32.mrf.mxu3 }
 0x530   : > { %v1748_v17 = vpop.f32.mrf.mxu1 }
 0x536   : > { %v1772_v6 = vpop.f32.mrf.mxu2 }
 0x537   : > { %v1773_v3 = vadd.f32 %v1772_v6, %v1709_v49  ;;  %v1787_v4 = vpop.f32.mrf.mxu3 }
 0x539   : > { %v1786_v15 = vadd.f32 %v1785_v34, %v1773_v3 }
 0x53c   : > { %v1759_v46 = vpop.f32.mrf.mxu0  ;;  %v1798_v9 = vpop.f32.mrf.mxu1 }
 0x53d   : > { %v1760_v36 = vadd.f32 %v1759_v46, %v1747_v41  ;;  %v1799_v37 = vadd.f32 %v1798_v9, %v1786_v15 }
 0x53e   : > { %v1774_v31 = vpop.f32.mrf.mxu2 }
 0x53f   : > { %v5123_v48 = vadd.f32 %v3852_v13, %v1760_v36  ;;  %v5126_v39 = vadd.f32 %v3853_v8, %v1799_v37 }
 0x541   : > { %v3579_v52 = vpack.i.bf16 %v5126_v39, %v5123_v48  ;;  %v3594_v16 = vpack.i.bf16 %v5123_v48, %v5133_v11  ;;  %v3604_v53 = vpack.i.bf16 %v5133_v11, %v5126_v39 }
 0x543   : > { %3580 = vrot.lane.b32.xlu2 %v3579_v52, %s3866_s26  ;;  %3575 = vrot.lane.b32.xlu0 %v3579_v52, %s3864_s24 }
 0x544   : > { %v1761_v62 = vpop.f32.mrf.mxu0  ;;  %v1800_v32 = vpop.f32.mrf.mxu1  ;;  %3570 = vrot.lane.b32.xlu1 %v3579_v52, %s3865_s25 }
 0x54b   : > { %3595 = vrot.lane.b32.xlu2 %v3594_v16, %s3869_s29  ;;  %3590 = vrot.lane.b32.xlu0 %v3594_v16, %s3868_s28 }
 0x54c   : > { %3585 = vrot.lane.b32.xlu1 %v3579_v52, %s3867_s27  ;;  %v5932_v52 = vld [vmem:[#allocation6_spill] sm:$0xff] }
 0x553   : > { %3605 = vrot.lane.b32.xlu2 %v3604_v53, %s3870_s30  ;;  %1850 = vrot.lane.b32.xlu0 %v5126_v39, %s3869_s29  ;;  %v5936_v53 = vld [vmem:[#allocation7_spill] sm:$0xff] }
 0x554   : > { %1838 = vrot.lane.b32.xlu1 %v5126_v39, %s3868_s28 }
 0x55b   : > { %1928 = vperm.xlu2 %3052, %v2860_v14   ;;  %3610 = vrot.lane.b32.xlu0 %v3594_v16, %s3871_s6 }
 0x55c   : > { %3600 = vrot.lane.b32.xlu1 %v3594_v16, %s3870_s30 }
 0x563   : > { %1943 = vperm.xlu2 %3052, %v2863_v44   ;;  %1933 = vperm.xlu0 %3053, %v2861_v7  }
 0x564   : > { %1900 = vrot.lane.b32.xlu1 %v5126_v39, %s3871_s6 }
 0x56c   : > { %1938 = vperm.xlu1 %3051, %v2862_v33  }
 0x59d   : > { %v3581_v38 = vpop.permute.xlu2 %3580 }
 0x59e   : > { %v3583_v1 = vunpack.i.h.bf16 %v3581_v38  ;;  %v3582_v42 = vunpack.i.l.bf16 %v3581_v38 }
 0x5a5   : > { %v3596_v40 = vpop.permute.xlu2 %3595 }
 0x5a6   : > { %v3598_v41 = vunpack.i.h.bf16 %v3596_v40  ;;  %v3597_v15 = vunpack.i.l.bf16 %v3596_v40 }
 0x5b5   : > { %v3576_v43 = vpop.permute.xlu0 %3575 }
 0x5b6   : > { %v3571_v5 = vpop.permute.xlu1 %3570  ;;  %v3578_v58 = vunpack.i.h.bf16 %v3576_v43  ;;  %v3577_v0 = vunpack.i.l.bf16 %v3576_v43  ;;  %v5197_v43 = vpop.permute.xlu2 %3605 }
 0x5b7   : > { %v3573_v18 = vunpack.i.h.bf16 %v3571_v5  ;;  %v3572_v60 = vunpack.i.l.bf16 %v3571_v5  ;;  %v2985_v5 = vld [vmem:[%s5684_s1 + $0x20] sm:$0xff] }
 0x5b8   : > { %v1879_v23 = vsel %vm5919_vm4, %v3578_v58, %v1877_v29  ;;  %v1878_v63 = vsel %vm5920_vm11, %v3577_v0, %v3578_v58  ;;  %vm5930_vm4 = vcmask 7168   ;;  %vm5933_vm11 = vnez %v5932_v52 }
 0x5b9   : > { %v1891_v47 = vsel %vm5911_vm1, %v3573_v18, %v1889_v26  ;;  %v1890_v54 = vsel %vm5918_vm5, %v3572_v60, %v3573_v18  ;;  %vm5929_vm5 = vcmask 121856   ;;  %v3607_v18 = vunpack.i.l.bf16 %v5197_v43 }
 0x5ba   : > { %v1894_v25 = vsel %vm3969_vm2, %v1890_v54, 0.0  ;;  %v1895_v61 = vsel %vm3973_vm3, %v1891_v47, 0.0  ;;  %vm5923_vm2 = vcmask 916480   ;;  %vm5925_vm3 = vcmask 1039360   ;;  %v2986_v54 = vld [vmem:[%s5684_s1 + $0x28] sm:$0xff] }
 0x5bb   : > { %v1924_v24 = vpack.c.bf16 %v1894_v25, %v1894_v25  ;;  %v1925_v28 = vpack.c.bf16 %v1895_v61, %v1895_v61  ;;  %v1912_v21 = vsel %vm5923_vm2, %v3582_v42, %v3583_v1  ;;  %vm5924_vm14 = vmmov %vm5923_vm2  ;;  %vm5937_vm2 = vnez %v5936_v53  ;;  %v5216_v25 = vld [vmem:[#allocation2 + $0x58] sm:$0xff] }
 0x5bc   : > { %v1913_v22 = vsel %vm5924_vm14, %v3583_v1, %v1911_v56  ;;  %v2873_v34 = vpack.c.bf16 %v1912_v21, %v1878_v63  ;;  %vm5926_vm1 = vmmov %vm5925_vm3  ;;  %v5218_v61 = vld [vmem:[#allocation2 + $0x78] sm:$0xff] }
 0x5bd   : > { %v3591_v20 = vpop.permute.xlu0 %3590  ;;  %v1963_v50 = vsel %vm5921_vm9, %v1924_v24, 0  ;;  %v1966_v30 = vsel %vm5922_vm7, %v1925_v28, 0  ;;  %v2887_v57 = vpack.c.bf16 %v1913_v22, %v1879_v23  ;;  %vm5934_vm9 = vmmov %vm5930_vm4  ;;  %v5222_v1 = vpack.i.bf16 %v5218_v61, %v5216_v25 }
 0x5be   : > { %v3586_v12 = vpop.permute.xlu1 %3585  ;;  %1971 = vmatpush.bf16.msra.mxu0 %v1963_v50  ;;  %1990 = vmatpush.bf16.msra.mxu1 %v1966_v30  ;;  %v3593_v17 = vunpack.i.h.bf16 %v3591_v20  ;;  %v3592_v49 = vunpack.i.l.bf16 %v3591_v20  ;;  %v1852_v62 = vsel %vm5934_vm9, %v3597_v15, %v3598_v41  ;;  %vm5935_vm7 = vmmov %vm5929_vm5  ;;  %v1929_v42 = vpop.permute.xlu2 %1928 }
 0x5bf   : > { %v3588_v35 = vunpack.i.h.bf16 %v3586_v12  ;;  %v3587_v19 = vunpack.i.l.bf16 %v3586_v12  ;;  %3615 = vrot.lane.b32.xlu0 %v5222_v1, %s3866_s26 }
 0x5c0   : > { %v1840_v36 = vsel %vm5929_vm5, %v3592_v49, %v3593_v17 }
 0x5c1   : > { %v1867_v6 = vsel %vm5925_vm3, %v3588_v35, %v1865_v10  ;;  %v1866_v3 = vsel %vm5926_vm1, %v3587_v19, %v3588_v35  ;;  %v2879_v16 = vpack.c.bf16 %v1852_v62, %v1840_v36  ;;  %vm5941_vm3 = vcmask 138240  }
 0x5c2   : > { %2874 = vmatpush.bf16.msk.msra.mxu0 %vm4007_vm10, %v2873_v34  ;;  %2888 = vmatpush.bf16.msk.msra.mxu1 %vm4015_vm12, %v2887_v57  ;;  %v2890_v46 = vpack.c.bf16 %v1867_v6, %v5126_v39  ;;  %v2876_v9 = vpack.c.bf16 %v1866_v3, %v5123_v48  ;;  %v5938_v48 = vld [vmem:[#allocation8_spill] sm:$0xff]  ;;  %vm5942_vm1 = vmmov %vm5941_vm3 }
 0x5c3   : > { %vm5939_vm14 = vnez %v5938_v48 }
 0x5c5   : > { %v1851_v37 = vpop.permute.xlu0 %1850 }
 0x5c6   : > { %v1853_v31 = vsel %vm5930_vm4, %v3598_v41, %v1851_v37  ;;  %v1839_v13 = vpop.permute.xlu1 %1838  ;;  %2877 = vmatpush.bf16.msk.msra.mxu0 %vm4028_vm13, %v2876_v9  ;;  %2891 = vmatpush.bf16.msk.msra.mxu1 %vm5933_vm11, %v2890_v46  ;;  %vm5940_vm13 = vcmask 130048   ;;  %vm5944_vm4 = vcmask 588800   ;;  %v1944_v36 = vpop.permute.xlu2 %1943 }
 0x5c7   : > { %v1841_v32 = vsel %vm5935_vm7, %v3593_v17, %v1839_v13  ;;  %vm5943_vm5 = vmmov %vm5940_vm13 }
 0x5c8   : > { %v2893_v39 = vpack.c.bf16 %v1853_v31, %v1841_v32  ;;  %vm5945_vm11 = vmmov %vm5944_vm4 }
 0x5c9   : > { %vm5947_vm9 = vmmov %vm5944_vm4 }
 0x5ca   : > { %2880 = vmatpush.bf16.msk.msra.mxu0 %vm5937_vm2, %v2879_v16  ;;  %2894 = vmatpush.bf16.msk.msra.mxu1 %vm5939_vm14, %v2893_v39  ;;  %vm5955_vm2 = vcmask 924672  }
 0x5cb   : > { %vm5956_vm14 = vmmov %vm5955_vm2 }
 0x5cd   : > { %v3611_v14 = vpop.permute.xlu0 %3610 }
 0x5ce   : > { %v3613_v44 = vunpack.i.h.bf16 %v3611_v14  ;;  %v3612_v7 = vunpack.i.l.bf16 %v3611_v14  ;;  %v3601_v33 = vpop.permute.xlu1 %3600 }
 0x5cf   : > { %v3603_v26 = vunpack.i.h.bf16 %v3601_v33  ;;  %v3602_v10 = vunpack.i.l.bf16 %v3601_v33 }
 0x5d0   : > { %v1902_v29 = vsel %vm5940_vm13, %v3612_v7, %v3613_v44 }
 0x5d1   : > { %v1828_v56 = vsel %vm5941_vm3, %v3602_v10, %v3603_v26  ;;  %v1829_v58 = vsel %vm5942_vm1, %v3603_v26, %v3607_v18 }
 0x5d2   : > { %v2882_v38 = vpack.c.bf16 %v1902_v29, %v1828_v56  ;;  %v2196_v56 = vld [vmem:[#allocation2 + $0x38] sm:$0xff] }
 0x5d4   : > { %2883 = vmatpush.bf16.msk.msra.mxu0 %vm4007_vm10, %v2882_v38  ;;  %vm5946_vm10 = vmmov %vm5944_vm4  ;;  %v3759_v38 = vpack.i.bf16 %v2196_v56, %v5112_v55 }
 0x5d5   : > { %v1934_v50 = vpop.permute.xlu0 %1933 }
 0x5d6   : > { %v1901_v60 = vpop.permute.xlu1 %1900 }
 0x5d7   : > { %v1903_v0 = vsel %vm5943_vm5, %v3613_v44, %v1901_v60  ;;  %2884 = vmatmul.msk.bf16.vlgmr.msra.gmra.mxu0 %vm5944_vm4, %v2985_v5  ;;  %vm5961_vm5 = vcmask 1039360  }
 0x5d8   : > { %v2896_v47 = vpack.c.bf16 %v1903_v0, %v1829_v58  ;;  %vm5962_vm4 = vmmov %vm5961_vm5 }
 0x5da   : > { %2897 = vmatpush.bf16.msk.msra.mxu1 %vm4015_vm12, %v2896_v47  ;;  %vm5952_vm12 = vmmov %vm5935_vm7 }
 0x5db   : > { %vm5953_vm7 = vmmov %vm5942_vm1 }
 0x5dc   : > { %vm5957_vm13 = vmmov %vm5952_vm12 }
 0x5dd   : > { %2898 = vmatmul.msk.bf16.vlgmr.msra.gmra.mxu1 %vm5945_vm11, %v2985_v5  ;;  %vm5958_vm3 = vmmov %vm5952_vm12 }
 0x5de   : > { %v1939_v17 = vpop.permute.xlu1 %1938  ;;  %vm5959_vm1 = vmmov %vm5958_vm3 }
 0x5df   : > { %vm5963_vm11 = vmmov %vm5953_vm7 }
 0x5e7   : > { %2885 = vmatmul.msk.bf16.gmra.mxu0 %vm5946_vm10, %v2986_v54  ;;  %vm5965_vm10 = vmmov %vm5953_vm7 }
 0x5ed   : > { %2899 = vmatmul.msk.bf16.gmra.mxu1 %vm5947_vm9, %v2986_v54  ;;  %vm5966_vm9 = vmmov %vm5953_vm7 }
 0x631   : > { %v5334_v60 = vpop.permute.xlu0 %3615 }
 0x654   : > { %v1977_v24 = vpop.f32.mrf.mxu0 }
 0x655   : > { %v1978_v28 = vadd.f32 %v1977_v24, %v1929_v42  ;;  %v3608_v24 = vunpack.i.h.bf16 %v5197_v43 }
 0x657   : > { %v5226_v23 = vmax.f32 %v1978_v28, 0.0 }
 0x659   : > { %v3624_v41 = vpack.i.bf16 %v5226_v23, %v5133_v11 }
 0x65a   : > { %v1996_v63 = vpop.f32.mrf.mxu1 }
 0x65b   : > { %v1997_v20 = vadd.f32 %v1996_v63, %v1929_v42 }
 0x65c   : > { %v1979_v30 = vpop.f32.mrf.mxu0 }
 0x65d   : > { %v5228_v12 = vmax.f32 %v1997_v20, 0.0  ;;  %v1980_v21 = vadd.f32 %v1979_v30, %v1934_v50  ;;  %v2902_v30 = vld [vmem:[%s5687_s4 + $0x10] sm:$0xff] }
 0x65f   : > { %5948 = vst [vmem:[#allocation9_spill] sm:$0xff] %v5228_v12  ;;  %v5230_v22 = vmax.f32 %v1980_v21, 0.0  ;;  %v3629_v35 = vpack.i.bf16 %v5133_v11, %v5228_v12  ;;  %v5236_v19 = vpack.i.bf16 %v5228_v12, %v5226_v23 }
 0x661   : > { %3630 = vrot.lane.b32.xlu1 %v3629_v35, %s3868_s28  ;;  %3640 = vrot.lane.b32.xlu2 %v5236_v19, %s3866_s26  ;;  %v3659_v53 = vpack.i.bf16 %v5230_v22, %v5133_v11  ;;  %v3839_v20 = vpack.i.bf16 %v5230_v22, %v5112_v55 }
 0x662   : > { %v1998_v57 = vpop.f32.mrf.mxu1  ;;  %3620 = vrot.lane.b32.xlu0 %v5236_v19, %s3870_s30 }
 0x663   : > { %v1999_v34 = vadd.f32 %v1998_v57, %v1934_v50 }
 0x664   : > { %v1982_v49 = vpop.f32.mrf.mxu0 }
 0x665   : > { %v5245_v6 = vmax.f32 %v1999_v34, 0.0  ;;  %v1983_v3 = vadd.f32 %v1982_v49, %v1939_v17 }
 0x667   : > { %5949 = vst [vmem:[#allocation3_spill] sm:$0xff] %v5245_v6  ;;  %v5247_v4 = vmax.f32 %v1983_v3, 0.0  ;;  %v3664_v59 = vpack.i.bf16 %v5133_v11, %v5245_v6  ;;  %v3669_v52 = vpack.i.bf16 %v5245_v6, %v5230_v22  ;;  %v3699_v33 = vpack.i.bf16 %v5245_v6, %v5228_v12 }
 0x668   : > { %v3844_v50 = vpack.i.bf16 %v2196_v56, %v5245_v6 }
 0x669   : > { %3645 = vrot.lane.b32.xlu1 %v5236_v19, %s3864_s24  ;;  %3665 = vrot.lane.b32.xlu2 %v3664_v59, %s3870_s30  ;;  %v3719_v44 = vpack.i.bf16 %v5247_v4, %v5133_v11 }
 0x66a   : > { %v2001_v46 = vpop.f32.mrf.mxu1  ;;  %3625 = vrot.lane.b32.xlu0 %v3624_v41, %s3868_s28 }
 0x66b   : > { %v2002_v9 = vadd.f32 %v2001_v46, %v1939_v17 }
 0x66c   : > { %v1984_v37 = vpop.f32.mrf.mxu0 }
 0x66d   : > { %v5259_v31 = vmax.f32 %v2002_v9, 0.0  ;;  %v1985_v13 = vadd.f32 %v1984_v37, %v1944_v36 }
 0x66f   : > { %5950 = vst [vmem:[#allocation4_spill] sm:$0xff] %v5259_v31  ;;  %v5261_v8 = vmax.f32 %v1985_v13, 0.0  ;;  %v3704_v7 = vpack.i.bf16 %v5259_v31, %v5247_v4  ;;  %v3714_v26 = vpack.i.bf16 %v5133_v11, %v5259_v31 }
 0x671   : > { %3650 = vrot.lane.b32.xlu1 %v5236_v19, %s3867_s27  ;;  %3670 = vrot.lane.b32.xlu2 %v3669_v52, %s3868_s28  ;;  %v3749_v10 = vpack.i.bf16 %v5261_v8, %v5133_v11  ;;  %v3824_v0 = vpack.i.bf16 %v5261_v8, %v5216_v25 }
 0x672   : > { %v2003_v32 = vpop.f32.mrf.mxu1  ;;  %3635 = vrot.lane.b32.xlu0 %v3624_v41, %s3869_s29 }
 0x673   : > { %v2004_v16 = vadd.f32 %v2003_v32, %v1944_v36 }
 0x675   : > { %v5271_v39 = vmax.f32 %v2004_v16, 0.0 }
 0x677   : > { %5951 = vst [vmem:[#allocation5_spill] sm:$0xff] %v5271_v39  ;;  %v3809_v48 = vpack.i.bf16 %v5271_v39, %v5259_v31  ;;  %v3754_v29 = vpack.i.bf16 %v5271_v39, %v5261_v8  ;;  %v3829_v18 = vpack.i.bf16 %v5218_v61, %v5271_v39 }
 0x679   : > { %3660 = vrot.lane.b32.xlu1 %v3659_v53, %s3870_s30  ;;  %3685 = vrot.lane.b32.xlu2 %v3669_v52, %s3864_s24 }
 0x67a   : > { %3655 = vrot.lane.b32.xlu0 %v3624_v41, %s3871_s6 }
 0x681   : > { %3675 = vrot.lane.b32.xlu1 %v3659_v53, %s3869_s29  ;;  %3690 = vrot.lane.b32.xlu2 %v3669_v52, %s3867_s27 }
 0x682   : > { %3680 = vrot.lane.b32.xlu0 %v3669_v52, %s3866_s26 }
 0x689   : > { %3695 = vrot.lane.b32.xlu1 %v3659_v53, %s3871_s6  ;;  %3720 = vrot.lane.b32.xlu2 %v3719_v44, %s3869_s29 }
 0x68a   : > { %3705 = vrot.lane.b32.xlu0 %v3704_v7, %s3870_s30 }
 0x691   : > { %3700 = vrot.lane.b32.xlu1 %v3699_v33, %s3869_s29  ;;  %3730 = vrot.lane.b32.xlu2 %v3704_v7, %s3864_s24 }
 0x692   : > { %3710 = vrot.lane.b32.xlu0 %v3719_v44, %s3868_s28 }
 0x699   : > { %3715 = vrot.lane.b32.xlu1 %v3714_v26, %s3868_s28  ;;  %3740 = vrot.lane.b32.xlu2 %v3719_v44, %s3871_s6 }
 0x69a   : > { %3735 = vrot.lane.b32.xlu0 %v3704_v7, %s3867_s27 }
 0x6a1   : > { %3725 = vrot.lane.b32.xlu1 %v3704_v7, %s3866_s26  ;;  %2073 = vrot.lane.b32.xlu2 %v5271_v39, %s3870_s30 }
 0x6a2   : > { %3750 = vrot.lane.b32.xlu0 %v3749_v10, %s3869_s29 }
 0x6a9   : > { %3745 = vrot.lane.b32.xlu1 %v3749_v10, %s3870_s30  ;;  %3755 = vrot.lane.b32.xlu2 %v3754_v29, %s3866_s26 }
 0x6aa   : > { %3770 = vrot.lane.b32.xlu0 %v3754_v29, %s3864_s24 }
 0x6b1   : > { %3765 = vrot.lane.b32.xlu1 %v3754_v29, %s3868_s28  ;;  %3760 = vrot.lane.b32.xlu2 %v3759_v38, %s3866_s26 }
 0x6b2   : > { %3780 = vrot.lane.b32.xlu0 %v3749_v10, %s3871_s6 }
 0x6b9   : > { %3775 = vrot.lane.b32.xlu1 %v3754_v29, %s3867_s27  ;;  %3795 = vrot.lane.b32.xlu2 %v5222_v1, %s3867_s27 }
 0x6ba   : > { %3785 = vrot.lane.b32.xlu0 %v5222_v1, %s3864_s24 }
 0x6bb   : > { %v5322_v11 = vpop.permute.xlu2 %3640 }
 0x6c1   : > { %3790 = vrot.lane.b32.xlu1 %v3759_v38, %s3864_s24  ;;  %3810 = vrot.lane.b32.xlu2 %v3809_v48, %s3869_s29 }
 0x6c2   : > { %3820 = vrot.lane.b32.xlu0 %v3809_v48, %s3871_s6 }
 0x6c3   : > { %v5327_v5 = vpop.permute.xlu2 %3665 }
 0x6c9   : > { %3800 = vrot.lane.b32.xlu1 %v3704_v7, %s3865_s25  ;;  %3815 = vrot.lane.b32.xlu2 %v3699_v33, %s3871_s6 }
 0x6ca   : > { %3830 = vrot.lane.b32.xlu0 %v3829_v18, %s3865_s25 }
 0x6cb   : > { %v3671_v58 = vpop.permute.xlu2 %3670 }
 0x6cc   : > { %v3672_v61 = vunpack.i.l.bf16 %v3671_v58  ;;  %v3673_v35 = vunpack.i.h.bf16 %v3671_v58 }
 0x6ce   : > { %v5378_v9 = vsel %vm5957_vm13, %v3672_v61, %v3673_v35 }
 0x6d1   : > { %3805 = vrot.lane.b32.xlu1 %v3759_v38, %s3867_s27  ;;  %3825 = vrot.lane.b32.xlu2 %v3824_v0, %s3865_s25  ;;  %v3667_v0 = vunpack.i.l.bf16 %v5327_v5 }
 0x6d2   : > { %3835 = vrot.lane.b32.xlu0 %v5236_v19, %s3865_s25 }
 0x6d3   : > { %v3631_v47 = vpop.permute.xlu1 %3630  ;;  %v5342_v54 = vpop.permute.xlu2 %3685 }
 0x6d4   : > { %v3633_v1 = vunpack.i.h.bf16 %v3631_v47  ;;  %v3621_v42 = vpop.permute.xlu0 %3620  ;;  %v5728_v43 = vunpack.i.h.bf16 %v5342_v54  ;;  %v3687_v21 = vunpack.i.l.bf16 %v5342_v54  ;;  %v3632_v49 = vunpack.i.l.bf16 %v3631_v47 }
 0x6d5   : > { %v3622_v28 = vunpack.i.l.bf16 %v3621_v42  ;;  %v3623_v38 = vunpack.i.h.bf16 %v3621_v42 }
 0x6d6   : > { %v5346_v63 = vsel %vm5952_vm12, %v3633_v1, %v3672_v61  ;;  %v5370_v41 = vsel %vm5955_vm2, %v3687_v21, %v5728_v43  ;;  %vm5968_vm12 = vcmask 7168  }
 0x6d7   : > { %v5349_v25 = vsel %vm5953_vm7, %v3608_v24, %v3622_v28  ;;  %v5420_v24 = vsel %vm5963_vm11, %v3622_v28, %v3623_v38  ;;  %vm5969_vm7 = vcmask 916480  }
 0x6d8   : > { %5964 = vst [vmem:[#allocation8_spill] sm:$0xff] %v5420_v24  ;;  %vm5970_vm2 = vmmov %vm5969_vm7 }
 0x6d9   : > { %3840 = vrot.lane.b32.xlu1 %v3839_v20, %s3865_s25  ;;  %3845 = vrot.lane.b32.xlu2 %v3844_v50, %s3865_s25  ;;  %vm5972_vm13 = vmmov %vm5970_vm2 }
 0x6da   : > { %2465 = vperm.xlu0 %3053, %v2902_v30   ;;  %v3642_v30 = vunpack.i.l.bf16 %v5322_v11  ;;  %vm5977_vm11 = vmmov %vm5970_vm2 }
 0x6db   : > { %v5361_v19 = vpop.permute.xlu1 %3645  ;;  %v5363_v57 = vpop.permute.xlu2 %3690 }
 0x6dc   : > { %5954 = vst [vmem:[#allocation6_spill] sm:$0xff] %v5363_v57  ;;  %v5729_v55 = vunpack.i.h.bf16 %v5361_v19  ;;  %v3647_v34 = vunpack.i.l.bf16 %v5361_v19  ;;  %v3626_v17 = vpop.permute.xlu0 %3625  ;;  %v5726_v16 = vunpack.i.h.bf16 %v5363_v57  ;;  %v3692_v53 = vunpack.i.l.bf16 %v5363_v57 }
 0x6dd   : > { %v3628_v3 = vunpack.i.h.bf16 %v3626_v17  ;;  %v3627_v59 = vunpack.i.l.bf16 %v3626_v17 }
 0x6de   : > { %v5375_v46 = vsel %vm5956_vm14, %v3647_v34, %v5729_v55  ;;  %v5405_v10 = vsel %vm5961_vm5, %v3692_v53, %v5726_v16  ;;  %vm5971_vm14 = vmmov %vm5970_vm2 }
 0x6df   : > { %v5383_v37 = vsel %vm5958_vm3, %v3628_v3, %v3632_v49  ;;  %v5386_v13 = vsel %vm5959_vm1, %v3627_v59, %v3628_v3  ;;  %vm5973_vm3 = vmmov %vm5968_vm12 }
 0x6e0   : > { %vm5974_vm1 = vmmov %vm5973_vm3 }
 0x6e1   : > { %vm5975_vm5 = vmmov %vm5970_vm2 }
 0x6e3   : > { %v5394_v48 = vpop.permute.xlu1 %3650  ;;  %v5396_v44 = vpop.permute.xlu2 %3720 }
 0x6e4   : > { %5960 = vst [vmem:[#allocation7_spill] sm:$0xff] %v5394_v48  ;;  %v5727_v7 = vunpack.i.h.bf16 %v5394_v48  ;;  %v3652_v33 = vunpack.i.l.bf16 %v5394_v48  ;;  %v5400_v26 = vpop.permute.xlu0 %3635  ;;  %v3723_v15 = vunpack.i.h.bf16 %v5396_v44  ;;  %v3722_v14 = vunpack.i.l.bf16 %v5396_v44 }
 0x6e5   : > { %v3637_v16 = vunpack.i.l.bf16 %v5400_v26 }
 0x6e6   : > { %v5410_v29 = vsel %vm5962_vm4, %v3652_v33, %v5727_v7  ;;  %vm5976_vm4 = vmmov %vm5970_vm2 }
 0x6eb   : > { %v3661_v18 = vpop.permute.xlu1 %3660  ;;  %v5414_v58 = vpop.permute.xlu2 %3730 }
 0x6ec   : > { %v3663_v47 = vunpack.i.h.bf16 %v3661_v18  ;;  %v3662_v61 = vunpack.i.l.bf16 %v3661_v18  ;;  %v5417_v1 = vpop.permute.xlu0 %3655 }
 0x6ee   : > { %v5423_v20 = vsel %vm5965_vm10, %v3662_v61, %v3663_v47  ;;  %v5426_v50 = vsel %vm5966_vm9, %v3663_v47, %v3667_v0  ;;  %v3618_v0 = vunpack.i.h.bf16 %v5334_v60  ;;  %v3643_v47 = vunpack.i.h.bf16 %v5322_v11  ;;  %vm5979_vm10 = vmmov %vm5974_vm1 }
 0x6ef   : > { %5967 = vst [vmem:[#allocation10_spill] sm:$0xff] %v5426_v50  ;;  %v3617_v61 = vunpack.i.l.bf16 %v5334_v60  ;;  %v2175_v11 = vsel %vm5968_vm12, %v3722_v14, %v3723_v15  ;;  %vm5980_vm9 = vmmov %vm5970_vm2  ;;  %vm5981_vm12 = vcmask 138240  }
 0x6f3   : > { %v5432_v21 = vpop.permute.xlu1 %3675  ;;  %v5434_v35 = vpop.permute.xlu2 %3740 }
 0x6f4   : > { %v3681_v34 = vpop.permute.xlu0 %3680  ;;  %v3678_v42 = vunpack.i.h.bf16 %v5432_v21  ;;  %v3677_v62 = vunpack.i.l.bf16 %v5432_v21 }
 0x6f5   : > { %v3683_v43 = vunpack.i.h.bf16 %v3681_v34  ;;  %v3682_v55 = vunpack.i.l.bf16 %v3681_v34 }
 0x6f6   : > { %v2173_v24 = vsel %vm5973_vm3, %v3677_v62, %v3678_v42  ;;  %v3733_v62 = vunpack.i.h.bf16 %v5414_v58 }
 0x6f7   : > { %v2413_v14 = vsel %vm5975_vm5, %v3682_v55, %v3683_v43  ;;  %vm5988_vm5 = vmmov %vm5974_vm1 }
 0x6fb   : > { %v5436_v17 = vpop.permute.xlu1 %3695  ;;  %v5438_v28 = vpop.permute.xlu2 %2073 }
 0x6fc   : > { %v5440_v49 = vpop.permute.xlu0 %3705 }
 0x6fd   : > { %v3707_v55 = vunpack.i.l.bf16 %v5440_v49 }
 0x703   : > { %v5442_v3 = vpop.permute.xlu1 %3700  ;;  %v3756_v59 = vpop.permute.xlu2 %3755 }
 0x704   : > { %v5444_v53 = vpop.permute.xlu0 %3710  ;;  %v3758_v7 = vunpack.i.h.bf16 %v3756_v59  ;;  %v3757_v40 = vunpack.i.l.bf16 %v3756_v59 }
 0x706   : > { %v2418_v31 = vsel %vm5969_vm7, %v3758_v7, %v3618_v0  ;;  %v2417_v21 = vsel %vm5970_vm2, %v3757_v40, %v3758_v7  ;;  %v5978_v0 = vunpack.i.h.bf16 %v5400_v26  ;;  %vm5982_vm7 = vmmov %vm5981_vm12 }
 0x707   : > { %vm5983_vm2 = vmmov %vm5974_vm1 }
 0x708   : > { %v2171_v40 = vsel %vm5979_vm10, %v3637_v16, %v5978_v0 }
 0x70b   : > { %v5446_v33 = vpop.permute.xlu1 %3715  ;;  %v3761_v38 = vpop.permute.xlu2 %3760 }
 0x70c   : > { %v5448_v18 = vpop.permute.xlu0 %3735  ;;  %v3763_v60 = vunpack.i.h.bf16 %v3761_v38  ;;  %v3762_v32 = vunpack.i.l.bf16 %v3761_v38  ;;  %v3718_v26 = vunpack.i.h.bf16 %v5446_v33 }
 0x70e   : > { %v2412_v48 = vsel %vm5976_vm4, %v3643_v47, %v3762_v32  ;;  %vm5989_vm4 = vcmask 121856  }
 0x70f   : > { %vm5991_vm10 = vmmov %vm5989_vm4 }
 0x713   : > { %v3726_v56 = vpop.permute.xlu1 %3725  ;;  %v5459_v52 = vpop.permute.xlu2 %3795 }
 0x714   : > { %v3728_v36 = vunpack.i.h.bf16 %v3726_v56  ;;  %v3727_v12 = vunpack.i.l.bf16 %v3726_v56  ;;  %v3751_v44 = vpop.permute.xlu0 %3750 }
 0x715   : > { %v3753_v6 = vunpack.i.h.bf16 %v3751_v44  ;;  %v3752_v59 = vunpack.i.l.bf16 %v3751_v44  ;;  %v2414_v44 = vsel %vm5977_vm11, %v3683_v43, %v3763_v60  ;;  %v2907_v43 = vpack.c.bf16 %v2173_v24, %v2171_v40  ;;  %vm5990_vm11 = vmmov %vm5989_vm4 }
 0x716   : > { %v2416_v34 = vsel %vm5971_vm14, %v3728_v36, %v3617_v61  ;;  %v2415_v39 = vsel %vm5972_vm13, %v3727_v12, %v3728_v36  ;;  %v2411_v12 = vsel %vm5980_vm9, %v3642_v30, %v3643_v47  ;;  %v3703_v36 = vunpack.i.h.bf16 %v5442_v3  ;;  %vm5984_vm14 = vmmov %vm5974_vm1 }
 0x717   : > { %v2457_v38 = vpack.c.bf16 %v2417_v21, %v2415_v39  ;;  %v2458_v50 = vpack.c.bf16 %v2418_v31, %v2416_v34  ;;  %v2177_v56 = vsel %vm5974_vm1, %v3752_v59, %v3753_v6  ;;  %v3732_v31 = vunpack.i.l.bf16 %v5414_v58  ;;  %vm5992_vm9 = vmmov %vm5989_vm4 }
 0x718   : > { %v2904_v57 = vpack.c.bf16 %v2177_v56, %v2175_v11  ;;  %v3708_v39 = vunpack.i.h.bf16 %v5440_v49  ;;  %v2455_v7 = vpack.c.bf16 %v2413_v14, %v2411_v12  ;;  %v3702_v30 = vunpack.i.l.bf16 %v5442_v3 }
 0x719   : > { %2494 = vmatpush.bf16.msra.mxu3 %v2457_v38  ;;  %2533 = vmatpush.bf16.msrb.mxu1 %v2458_v50  ;;  %v2456_v50 = vpack.c.bf16 %v2414_v44, %v2412_v48  ;;  %vm5985_vm13 = vcmask 924672   ;;  %v5987_v14 = vmov %v5978_v0  ;;  %v3713_v0 = vunpack.i.h.bf16 %v5444_v53 }
 0x71a   : > { %2905 = vmatpush.bf16.msk.msra.mxu2 %vm5854_vm15, %v2904_v57  ;;  %v5494_v24 = vsel %vm5981_vm12, %v3707_v55, %v3708_v39  ;;  %v2279_v34 = vsel %vm5985_vm13, %v3732_v31, %v3733_v62  ;;  %vm5986_vm3 = vmmov %vm5985_vm13  ;;  %v3712_v40 = vunpack.i.l.bf16 %v5444_v53  ;;  %v3717_v12 = vunpack.i.l.bf16 %v5446_v33 }
 0x71b   : > { %v5483_v32 = vpop.permute.xlu1 %3745  ;;  %v3811_v16 = vpop.permute.xlu2 %3810  ;;  %vm5994_vm12 = vcmask 130048   ;;  %vm6000_vm13 = vmmov %vm5986_vm3  ;;  %v3797_v49 = vunpack.i.l.bf16 %v5459_v52 }
 0x71c   : > { %v3748_v47 = vunpack.i.h.bf16 %v5483_v32  ;;  %v3813_v61 = vunpack.i.h.bf16 %v3811_v16  ;;  %v3812_v60 = vunpack.i.l.bf16 %v3811_v16  ;;  %v5487_v11 = vpop.permute.xlu0 %3770  ;;  %v2128_v53 = vsel %vm5990_vm11, %v3713_v0, %v3717_v12 }
 0x71d   : > { %v3773_v59 = vunpack.i.h.bf16 %v5487_v11  ;;  %v3772_v57 = vunpack.i.l.bf16 %v5487_v11  ;;  %2495 = vmatpush.bf16.msra.mxu3 %v2455_v7  ;;  %2534 = vmatpush.bf16.msrb.mxu1 %v2456_v50 }
 0x71e   : > { %v5500_v48 = vsel %vm5982_vm7, %v3748_v47, %v5438_v28  ;;  %v2176_v3 = vsel %vm5983_vm2, %v3723_v15, %v3812_v60  ;;  %v2178_v21 = vsel %vm5984_vm14, %v3753_v6, %v3813_v61  ;;  %2908 = vmatpush.bf16.msk.msra.mxu2 %vm5854_vm15, %v2907_v43  ;;  %v2172_v15 = vsel %vm5974_vm1, %v5987_v14, %v3702_v30  ;;  %vm5999_vm14 = vmmov %vm5994_vm12 }
 0x71f   : > { %v2953_v38 = vpack.c.bf16 %v5500_v48, %v5494_v24  ;;  %v2941_v56 = vpack.c.bf16 %v2178_v21, %v2176_v3  ;;  %v2281_v28 = vsel %vm5986_vm3, %v3772_v57, %v3773_v59  ;;  %v2174_v6 = vsel %vm5988_vm5, %v3678_v42, %v3703_v36  ;;  %vm6001_vm1 = vmmov %vm5994_vm12 }
 0x720   : > { %v2922_v44 = vpack.c.bf16 %v2281_v28, %v2279_v34  ;;  %v2944_v31 = vpack.c.bf16 %v2174_v6, %v2172_v15  ;;  %v2127_v36 = vsel %vm5989_vm4, %v3712_v40, %v3713_v0  ;;  %v5993_v30 = vpack.c.bf16 %v5370_v41, %v5375_v46  ;;  %vm6002_vm5 = vmmov %vm6001_vm1 }
 0x721   : > { %2942 = vmatpush.bf16.msk.msrb.mxu0 %vm4331_vm0, %v2941_v56  ;;  %v3743_v3 = vunpack.i.h.bf16 %v5434_v35  ;;  %v3742_v21 = vunpack.i.l.bf16 %v5434_v35  ;;  %v3738_v41 = vunpack.i.h.bf16 %v5448_v18  ;;  %v3737_v46 = vunpack.i.l.bf16 %v5448_v18 }
 0x722   : > { %2923 = vmatpush.bf16.msk.msra.mxu3 %vm5854_vm15, %v2922_v44  ;;  %v3698_v34 = vunpack.i.h.bf16 %v5436_v17  ;;  %v3697_v28 = vunpack.i.l.bf16 %v5436_v17  ;;  %v3658_v0 = vunpack.i.h.bf16 %v5417_v1  ;;  %v3657_v40 = vunpack.i.l.bf16 %v5417_v1 }
 0x723   : > { %v3766_v39 = vpop.permute.xlu1 %3765  ;;  %v5996_v17 = vpack.c.bf16 %v5378_v9, %v5383_v37  ;;  %vm5997_vm7 = vcmask 1039360   ;;  %v3747_v1 = vunpack.i.l.bf16 %v5483_v32  ;;  %vm6003_vm4 = vcmask 138240  }
 0x724   : > { %v3768_v43 = vunpack.i.h.bf16 %v3766_v39  ;;  %v3767_v16 = vunpack.i.l.bf16 %v3766_v39  ;;  %v5526_v42 = vpop.permute.xlu0 %3780  ;;  %v2231_v39 = vsel %vm5997_vm7, %v3737_v46, %v3738_v41  ;;  %vm5998_vm2 = vmmov %vm5997_vm7  ;;  %v2371_v58 = vsel %vm6002_vm5, %v3657_v40, %v3658_v0 }
 0x725   : > { %2945 = vmatpush.bf16.msk.msrb.mxu0 %vm4331_vm0, %v2944_v31  ;;  %v3783_v60 = vunpack.i.h.bf16 %v5526_v42  ;;  %v3782_v57 = vunpack.i.l.bf16 %v5526_v42  ;;  %v5995_v31 = vpack.c.bf16 %v5346_v63, %v5386_v13  ;;  %v3816_v63 = vpop.permute.xlu2 %3815  ;;  %vm6004_vm11 = vmmov %vm6003_vm4  ;;  %v6005_v32 = vpack.c.bf16 %v5405_v10, %v5410_v29 }
 0x726   : > { %v2129_v7 = vsel %vm5991_vm10, %v3718_v26, %v3767_v16  ;;  %v2130_v50 = vsel %vm5992_vm9, %v3767_v16, %v3768_v43  ;;  %2926 = vmatpush.bf16.msk.msra.mxu3 %vm5854_vm15, %v5993_v30  ;;  %v2375_v43 = vsel %vm5999_vm14, %v3742_v21, %v3743_v3  ;;  %v2081_v11 = vsel %vm6004_vm11, %v3747_v1, %v3748_v47  ;;  %vm6007_vm10 = vmmov %vm5986_vm3 }
 0x727   : > { %v2910_v33 = vpack.c.bf16 %v2129_v7, %v2127_v36  ;;  %v2947_v61 = vpack.c.bf16 %v2130_v50, %v2128_v53  ;;  %v2377_v44 = vsel %vm5994_vm12, %v3782_v57, %v3783_v60  ;;  %v2373_v36 = vsel %vm6001_vm1, %v3697_v28, %v3698_v34  ;;  %vm6009_vm9 = vmmov %vm5986_vm3 }
 0x728   : > { %v2433_v37 = vpack.c.bf16 %v2377_v44, %v2375_v43  ;;  %v3668_v53 = vunpack.i.h.bf16 %v5327_v5  ;;  %v2431_v7 = vpack.c.bf16 %v2373_v36, %v2371_v58  ;;  %v2900_v5 = vld [vmem:[%s5686_s3 + $0x18] sm:$0xff]  ;;  %v3818_v50 = vunpack.i.h.bf16 %v3816_v63  ;;  %vm6010_vm12 = vmmov %vm6001_vm1  ;;  %v6023_v36 = vld [vmem:[#allocation7_spill] sm:$0xff] }
 0x729   : > { %2911 = vmatpush.bf16.msk.msra.mxu2 %vm4383_vm8, %v2910_v33  ;;  %2948 = vmatpush.bf16.msk.msrb.mxu0 %vm4430_vm6, %v2947_v61  ;;  %v3817_v30 = vunpack.i.l.bf16 %v3816_v63  ;;  %v3798_v21 = vunpack.i.h.bf16 %v5459_v52  ;;  %v6006_v47 = vunpack.i.h.bf16 %v5361_v19  ;;  %v6008_v28 = vunpack.i.h.bf16 %v5342_v54  ;;  %vm6011_vm7 = vmmov %vm6001_vm1 }
 0x72a   : > { %v2471_v44 = vunpack.c.h.b16 %v2900_v5  ;;  %vm6013_vm14 = vmmov %vm6001_vm1  ;;  %v6015_v54 = vpack.c.bf16 %v5261_v8, %v5247_v4  ;;  %v6018_v18 = vpack.c.bf16 %v5230_v22, %v5226_v23 }
 0x72b   : > { %v3776_v56 = vpop.permute.xlu1 %3775 }
 0x72c   : > { %v3778_v14 = vunpack.i.h.bf16 %v3776_v56  ;;  %v3777_v15 = vunpack.i.l.bf16 %v3776_v56  ;;  %v3786_v6 = vpop.permute.xlu0 %3785 }
 0x72d   : > { %v3788_v12 = vunpack.i.h.bf16 %v3786_v6  ;;  %v3787_v35 = vunpack.i.l.bf16 %v3786_v6  ;;  %2914 = vmatpush.bf16.msk.msra.mxu2 %vm4383_vm8, %v5995_v31  ;;  %2951 = vmatpush.bf16.msk.msrb.mxu0 %vm4430_vm6, %v5996_v17  ;;  %v2470_v6 = vunpack.c.l.b16 %v2900_v5  ;;  %v2374_v31 = vsel %vm6013_vm14, %v3698_v34, %v3818_v50  ;;  %v3826_v17 = vpop.permute.xlu2 %3825  ;;  %v6030_v5 = vld [vmem:[#allocation8_spill] sm:$0xff] }
 0x72e   : > { %v2233_v26 = vsel %vm5998_vm2, %v3777_v15, %v3778_v14  ;;  %vm6012_vm2 = vmmov %vm6001_vm1  ;;  %v3827_v1 = vunpack.i.l.bf16 %v3826_v17  ;;  %vm6019_vm1 = vcmask 908288  }
 0x72f   : > { %v2928_v13 = vpack.c.bf16 %v2233_v26, %v2231_v39  ;;  %v2280_v16 = vsel %vm6000_vm13, %v3733_v62, %v3787_v35  ;;  %v2282_v9 = vsel %vm5986_vm3, %v3773_v59, %v3788_v12  ;;  %v2079_v62 = vsel %vm6003_vm4, %v3668_v53, %v3707_v55  ;;  %vm6020_vm5 = vmmov %vm6019_vm1 }
 0x730   : > { %v2959_v42 = vpack.c.bf16 %v2282_v9, %v2280_v16  ;;  %v2916_v52 = vpack.c.bf16 %v2081_v11, %v2079_v62  ;;  %v2372_v29 = vsel %vm6012_vm2, %v3658_v0, %v3817_v30  ;;  %vm6014_vm13 = vcmask 1039360   ;;  %vm6021_vm4 = vmmov %vm6019_vm1  ;;  %v6026_v62 = vld [vmem:[#allocation6_spill] sm:$0xff]  ;;  %v2901_v30 = vld [vmem:[%s5686_s3 + $0x20] sm:$0xf] }
 0x731   : > { %2485 = vmatpush.bf16.msra.mxu2 %v2433_v37  ;;  %2929 = vmatpush.bf16.msk.msra.mxu3 %vm4383_vm8, %v2928_v13  ;;  %v2234_v19 = vsel %vm6014_vm13, %v3778_v14, %v3798_v21  ;;  %vm6016_vm3 = vmmov %vm6014_vm13  ;;  %v2432_v34 = vpack.c.bf16 %v2374_v31, %v2372_v29  ;;  %v2473_v0 = vpack.c.b16 %v2470_v6, %v2470_v6  ;;  %v3828_v13 = vunpack.i.h.bf16 %v3826_v17 }
 0x732   : > { %2960 = vmatpush.bf16.msk.msrb.mxu1 %vm4331_vm0, %v2959_v42  ;;  %v2474_v14 = vpack.c.b16 %v2471_v44, %v2471_v44  ;;  %v6017_v16 = vpack.c.bf16 %v5423_v20, %v5349_v25  ;;  %vm6022_vm11 = vmmov %vm6019_vm1  ;;  %v6024_v53 = vunpack.i.h.bf16 %v6023_v36  ;;  %v6027_v11 = vunpack.i.h.bf16 %v6026_v62 }
 0x733   : > { %v3791_v59 = vpop.permute.xlu1 %3790  ;;  %v2472_v45 = vunpack.c.l.b16 %v2901_v30  ;;  %vm6042_vm2 = vcmask 261120  }
 0x734   : > { %v3793_v33 = vunpack.i.h.bf16 %v3791_v59  ;;  %v3792_v61 = vunpack.i.l.bf16 %v3791_v59  ;;  %v3821_v57 = vpop.permute.xlu0 %3820  ;;  %vm6043_vm14 = vmmov %vm6042_vm2 }
 0x735   : > { %v3823_v55 = vunpack.i.h.bf16 %v3821_v57  ;;  %v3822_v46 = vunpack.i.l.bf16 %v3821_v57  ;;  %2486 = vmatpush.bf16.msra.mxu2 %v2431_v7  ;;  %2932 = vmatpush.bf16.msk.msra.mxu3 %vm4383_vm8, %v6005_v32  ;;  %v6029_v7 = vld [vmem:[#allocation10_spill] sm:$0xff]  ;;  %v3846_v48 = vpop.permute.xlu2 %3845  ;;  %v6032_v32 = vld [vmem:[#allocation5_spill] sm:$0xff] }
 0x736   : > { %v2276_v56 = vsel %vm6007_vm10, %v6006_v47, %v3792_v61  ;;  %v2278_v15 = vsel %vm6009_vm9, %v6008_v28, %v3793_v33  ;;  %vm6028_vm10 = vmmov %vm6016_vm3  ;;  %v6031_v24 = vpack.c.bf16 %v6029_v7, %v6030_v5  ;;  %v3848_v33 = vunpack.i.h.bf16 %v3846_v48  ;;  %v6033_v47 = vld [vmem:[#allocation4_spill] sm:$0xff] }
 0x737   : > { %v2962_v40 = vpack.c.bf16 %v2278_v15, %v2276_v56  ;;  %v2376_v12 = vsel %vm6010_vm12, %v3743_v3, %v3822_v46  ;;  %v2378_v35 = vsel %vm6011_vm7, %v3783_v60, %v3823_v55  ;;  %v2232_v60 = vsel %vm6016_vm3, %v3738_v41, %v3797_v49 }
 0x738   : > { %v2434_v10 = vpack.c.bf16 %v2378_v35, %v2376_v12  ;;  %v2965_v39 = vpack.c.bf16 %v2234_v19, %v2232_v60  ;;  %v3847_v61 = vunpack.i.l.bf16 %v3846_v48  ;;  %v6034_v56 = vpack.c.bf16 %v6032_v32, %v6033_v47  ;;  %v6039_v35 = vld [vmem:[#allocation3_spill] sm:$0xff] }
 0x739   : > { %2917 = vmatpush.bf16.msk.msra.mxu2 %vm5854_vm15, %v2916_v52  ;;  %2500 = vmatpush.bf16.msra.mxu3 %v6015_v54  ;;  %v2475_v12 = vpack.c.b16 %v2472_v45, %v2472_v45 }
 0x73a   : > { %2524 = vmatpush.bf16.msrb.mxu0 %v2434_v10  ;;  %2963 = vmatpush.bf16.msk.msrb.mxu1 %vm4331_vm0, %v2962_v40  ;;  %v6040_v10 = vld [vmem:[#allocation9_spill] sm:$0xff] }
 0x73b   : > { %v3801_v3 = vpop.permute.xlu1 %3800  ;;  %v6041_v29 = vpack.c.bf16 %v6039_v35, %v6040_v10 }
 0x73c   : > { %v3803_v26 = vunpack.i.h.bf16 %v3801_v3  ;;  %v3802_v43 = vunpack.i.l.bf16 %v3801_v3  ;;  %v3831_v63 = vpop.permute.xlu0 %3830 }
 0x73d   : > { %v3833_v4 = vunpack.i.h.bf16 %v3831_v63  ;;  %v3832_v8 = vunpack.i.l.bf16 %v3831_v63  ;;  %2920 = vmatpush.bf16.msk.msra.mxu2 %vm5854_vm15, %v6017_v16  ;;  %2501 = vmatpush.bf16.msra.mxu3 %v6018_v18  ;;  %vm6025_vm15 = vmmov %vm6016_vm3 }
 0x73e   : > { %v2327_v41 = vsel %vm6019_vm1, %v3802_v43, %v3803_v26  ;;  %v2328_v9 = vsel %vm6020_vm5, %v3803_v26, %v3827_v1  ;;  %2525 = vmatpush.bf16.msrb.mxu0 %v2432_v34  ;;  %2966 = vmatpush.bf16.msk.msrb.mxu1 %vm4430_vm6, %v2965_v39 }
 0x73f   : > { %v2329_v37 = vsel %vm6021_vm4, %v3828_v13, %v3832_v8  ;;  %v2330_v42 = vsel %vm6022_vm11, %v3832_v8, %v3833_v4 }
 0x740   : > { %v2934_v25 = vpack.c.bf16 %v2329_v37, %v2327_v41  ;;  %v2971_v20 = vpack.c.bf16 %v2330_v42, %v2328_v9  ;;  %2489 = vmatmul.bf16.vlgmr.msra.gmra.mxu2 %v2473_v0  ;;  %2502 = vmatmul.bf16.vlgmr.msra.gmra.mxu3 %v2474_v14 }
 0x742   : > { %2935 = vmatpush.bf16.msk.msrb.mxu2 %vm4383_vm8, %v2934_v25  ;;  %2954 = vmatpush.bf16.msk.msrb.mxu0 %vm4331_vm0, %v2953_v38 }
 0x743   : > { %2972 = vmatpush.bf16.msk.msrb.mxu3 %vm4430_vm6, %v2971_v20  ;;  %v3806_v27 = vpop.permute.xlu1 %3805 }
 0x744   : > { %v3808_v23 = vunpack.i.h.bf16 %v3806_v27  ;;  %v3807_v22 = vunpack.i.l.bf16 %v3806_v27  ;;  %v3836_v50 = vpop.permute.xlu0 %3835 }
 0x745   : > { %v3838_v57 = vunpack.i.h.bf16 %v3836_v50  ;;  %v3837_v21 = vunpack.i.l.bf16 %v3836_v50 }
 0x746   : > { %v2228_v58 = vsel %vm6025_vm15, %v6024_v53, %v3807_v22  ;;  %v2230_v59 = vsel %vm6028_vm10, %v6027_v11, %v3808_v23  ;;  %2957 = vmatpush.bf16.msk.msrb.mxu0 %vm4331_vm0, %v6031_v24  ;;  %vm6035_vm0 = vmmov %vm6019_vm1 }
 0x747   : > { %v2968_v38 = vpack.c.bf16 %v2230_v59, %v2228_v58  ;;  %v2326_v28 = vsel %vm6035_vm0, %v3847_v61, %v3848_v33  ;;  %vm6036_vm9 = vmmov %vm6035_vm0 }
 0x748   : > { %v2323_v15 = vsel %vm6036_vm9, %v3837_v21, %v3838_v57  ;;  %vm6037_vm12 = vmmov %vm6035_vm0 }
 0x749   : > { %2528 = vmatmul.bf16.vlgmr.msrb.gmra.mxu0 %v2473_v0  ;;  %2969 = vmatpush.bf16.msk.msrb.mxu1 %vm4430_vm6, %v2968_v38  ;;  %vm6038_vm7 = vmmov %vm6035_vm0 }
 0x74b   : > { %v3841_v49 = vpop.permute.xlu1 %3840 }
 0x74c   : > { %v3843_v55 = vunpack.i.h.bf16 %v3841_v49  ;;  %v3842_v46 = vunpack.i.l.bf16 %v3841_v49  ;;  %v2466_v3 = vpop.permute.xlu0 %2465 }
 0x74d   : > { %2539 = vmatpush.bf16.msrb.mxu1 %v6034_v56 }
 0x74e   : > { %v2324_v6 = vsel %vm6037_vm12, %v3838_v57, %v3842_v46  ;;  %v2325_v44 = vsel %vm6038_vm7, %v3843_v55, %v3847_v61 }
 0x74f   : > { %v2937_v52 = vpack.c.bf16 %v2325_v44, %v2323_v15  ;;  %v2974_v40 = vpack.c.bf16 %v2326_v28, %v2324_v6 }
 0x751   : > { %2938 = vmatpush.bf16.msk.msrb.mxu2 %vm4383_vm8, %v2937_v52  ;;  %2540 = vmatpush.bf16.msrb.mxu1 %v6041_v29 }
 0x752   : > { %2975 = vmatpush.bf16.msk.msrb.mxu3 %vm4430_vm6, %v2974_v40 }
 0x754   : > { %2939 = vmatmul.msk.bf16.vlgmr.msrb.gmra.mxu2 %vm6042_vm2, %v2475_v12  ;;  %2541 = vmatmul.bf16.vlgmr.msrb.gmra.mxu1 %v2474_v14 }
 0x755   : > { %2976 = vmatmul.msk.bf16.vlgmr.msrb.gmra.mxu3 %vm6043_vm14, %v2475_v12 }
 0x7c3   : > { %v2490_v31 = vpop.f32.mrf.mxu2  ;;  %v2503_v19 = vpop.f32.mrf.mxu3 }
 0x7c4   : > { %v2491_v0 = vadd.f32 %v2490_v31, %v2466_v3 }
 0x7c6   : > { %v2529_v17 = vpop.f32.mrf.mxu0  ;;  %v2504_v1 = vadd.f32 %v2503_v19, %v2491_v0 }
 0x7c7   : > { %v2530_v39 = vadd.f32 %v2529_v17, %v2466_v3 }
 0x7cb   : > { %v2492_v54 = vpop.f32.mrf.mxu2  ;;  %v2505_v60 = vpop.f32.mrf.mxu3 }
 0x7ce   : > { %v2531_v51 = vpop.f32.mrf.mxu0 }
 0x7d1   : > { %v2542_v34 = vpop.f32.mrf.mxu1 }
 0x7d2   : > { %v2543_v26 = vadd.f32 %v2542_v34, %v2530_v39 }
 0x7d7   : > { %v2516_v2 = vpop.f32.mrf.mxu2 }
 0x7d8   : > { %v2517_v14 = vadd.f32 %v2516_v2, %v2504_v1  ;;  %v2555_v43 = vpop.f32.mrf.mxu3 }
 0x7d9   : > { %v2556_v63 = vadd.f32 %v2555_v43, %v2543_v26  ;;  %v2544_v13 = vpop.f32.mrf.mxu1 }
 0x7da   : > { %2559 = vst [vmem:[%s224_s15] sm:$0xff] %v2517_v14 }
 0x7db   : > { %2560 = vst [vmem:[%s224_s15 + $0x8] sm:$0xff] %v2556_v63 }
 0x7df   : > { %v2518_v4 = vpop.f32.mrf.mxu2 }
 0x7e0   : > { %v2557_v8 = vpop.f32.mrf.mxu3 }
 0x7e1 PF: > { %s15_s18 = sadd.s32 1, %s3861_s18  }
 0x7e2   : > { %p12_p4 = scmp.ge.s32.totalorder %s15_s18, 4  }
 0x7e4   :  { %14 = sbr.rel (!%p12_p4) target bundleno = 1 (0x1), region = 78 }

</bundles_post_ra>
